<compile_context>
chip_gen: v7x
topology: tpu7x:2x2x1
jax: 0.10.0
libtpu: 0.0.40
codegen_flags: <defaults>
</compile_context>

<pallas_src>
import functools

import numpy as np
import jax
import jax.numpy as jnp
from jax.experimental import pallas as pl
from jax.experimental.pallas import tpu as pltpu

# LeNet-5 geometry (input is (B, 1, 32, 32) NCHW; Cin == 1).
H0, W0 = 32, 32
K = 5
C1, C2, C3 = 6, 16, 120
OH1, OW1 = H0 - K + 1, W0 - K + 1        # 28, 28
PH1, PW1 = OH1 // 2, OW1 // 2            # 14, 14
OH2, OW2 = PH1 - K + 1, PW1 - K + 1      # 10, 10
PH2, PW2 = OH2 // 2, OW2 // 2            # 5, 5
OH3, OW3 = PH2 - K + 1, PW2 - K + 1      # 1, 1
F1, F2 = 84, 10

TB = 8   # samples per grid step (multiple of 8 keeps every row block aligned)


# --------------------------------------------------------------------------
# Fused Pallas kernel: whole LeNet forward for one batch block of TB samples.
# Activations are channels-last 2-D, stacked across samples along the rows.
# --------------------------------------------------------------------------
def _lenet_kernel(x_ref, m1_ref, b1_ref, p1op_ref, m2_ref, b2_ref, p2op_ref,
                  m3_ref, b3_ref, w1_ref, bl1_ref, w2_ref, bl2_ref,
                  out_ref, p1_buf, p2_buf, *, tb):
    f32, bf16 = jnp.float32, jnp.bfloat16
    rows1 = tb * H0 - (K - 1)    # stacked conv1 rows (row b*32+h, h<28 valid)
    rows2 = tb * PH1 - (K - 1)   # stacked conv2 rows (row b*14+h, h<10 valid)

    # conv1 + ReLU, batched across the tb samples of this block (M = rows1).
    acc = jnp.broadcast_to(b1_ref[...], (rows1, OW1 * C1))
    for ki in range(K):
        lhs = x_ref[pl.ds(ki, rows1), :].astype(bf16)              # (rows1, 32)
        acc = acc + jnp.dot(lhs, m1_ref[ki], preferred_element_type=f32)
    a1 = jnp.maximum(acc, 0.0)                                     # (rows1, 168)

    # AvgPool rows (0.25 * (rows 2j, 2j+1)); the column half is folded into m2.
    p1_buf[...] = jnp.dot(p1op_ref[...], a1, preferred_element_type=f32)

    # conv2 + ReLU (M = rows2, contraction K = 168 after the column-pool fold).
    acc = jnp.broadcast_to(b2_ref[...], (rows2, OW2 * C2))
    for ki in range(K):
        lhs = p1_buf[pl.ds(ki, rows2), :].astype(bf16)             # (rows2, 168)
        acc = acc + jnp.dot(lhs, m2_ref[ki], preferred_element_type=f32)
    a2 = jnp.maximum(acc, 0.0)                                     # (rows2, 160)

    # AvgPool rows, emitted ki-major: row (j*tb + b) = pooled2[sample b][row j].
    p2_buf[...] = jnp.dot(p2op_ref[...], a2, preferred_element_type=f32)

    # conv3 + ReLU -> flattened features (tb, 120); M = tb per dot.
    acc = jnp.broadcast_to(b3_ref[...], (tb, C3))
    for ki in range(K):
        lhs = p2_buf[pl.ds(ki * tb, tb), :].astype(bf16)           # (tb, 160)
        acc = acc + jnp.dot(lhs, m3_ref[ki], preferred_element_type=f32)
    feat = jnp.maximum(acc, 0.0)                                   # (tb, 120)

    # linear1 + ReLU, linear2 + sigmoid on the whole block.
    h = jnp.maximum(
        jnp.dot(feat.astype(bf16), w1_ref[...], preferred_element_type=f32)
        + bl1_ref[...], 0.0)                                       # (tb, 84)
    logits = (jnp.dot(h.astype(bf16), w2_ref[...], preferred_element_type=f32)
              + bl2_ref[...])                                      # (tb, 10)
    out_ref[...] = jax.nn.sigmoid(logits)


# --------------------------------------------------------------------------
# One-time weight repacking (runs once per weight set).
# --------------------------------------------------------------------------
def _band_matrices(w, w_in, ow):
    """PyTorch conv weight (Cout, Cin, K, K) -> K banded matrices.

    Matrix ki has shape (w_in*Cin, ow*Cout): it maps one channels-last input
    row to a channels-last output row, so a valid KxK conv becomes K
    row-shifted matmuls.
    """
    cout, cin, kh, kw = w.shape
    wt = jnp.transpose(w, (2, 3, 1, 0)).astype(jnp.float32)        # (K, K, Cin, Cout)
    eye_ow = jnp.eye(ow, dtype=jnp.float32)
    mats = []
    for ki in range(kh):
        m = jnp.zeros((w_in * cin, ow * cout), dtype=jnp.float32)
        for kj in range(kw):
            blk = jnp.kron(eye_ow, wt[ki, kj])                     # (ow*Cin, ow*Cout)
            m = m.at[kj * cin:(kj + ow) * cin, :].add(blk)
        mats.append(m)
    return mats


def _col_pool(ow, c):
    """Column half of AvgPool2d(2,2) on a channels-last row: (ow*c, ow//2*c)."""
    return jnp.kron(jnp.kron(jnp.eye(ow // 2, dtype=jnp.float32),
                             jnp.ones((2, 1), dtype=jnp.float32)),
                    jnp.eye(c, dtype=jnp.float32))


def _row_pool_operator(tb, h_in, h_out, stacked_rows, ki_major=False):
    """Row half of AvgPool2d(2,2) (factor 0.25) on the batch-stacked layout."""
    op = np.zeros((tb * h_out, stacked_rows), np.float32)
    for b in range(tb):
        for j in range(h_out):
            r = j * tb + b if ki_major else b * h_out + j
            op[r, b * h_in + 2 * j] = 0.25
            op[r, b * h_in + 2 * j + 1] = 0.25
    return jnp.asarray(op)


def prepare_params(params, tb=TB):
    """Repack PyTorch-layout weights for the fused, batch-blocked kernel."""
    p = {k: jnp.asarray(v, jnp.float32) for k, v in params.items()}
    bf16 = jnp.bfloat16

    m1 = _band_matrices(p["conv1_w"], W0, OW1)     # K x (32, 168)
    m2 = _band_matrices(p["conv2_w"], PW1, OW2)    # K x (84, 160)
    m3 = _band_matrices(p["conv3_w"], PW2, OW3)    # K x (80, 120)
    p1c = _col_pool(OW1, C1)                       # (168, 84)
    p2c = _col_pool(OW2, C2)                       # (160, 80)

    return {
        # Banded conv weights; column-pool of the preceding AvgPool folded in.
        "m1": jnp.stack(m1, 0).astype(bf16),                       # (5, 32, 168)
        "m2": jnp.stack([p1c @ m for m in m2], 0).astype(bf16),    # (5, 168, 160)
        "m3": jnp.stack([p2c @ m for m in m3], 0).astype(bf16),    # (5, 160, 120)
        "b1": jnp.tile(p["conv1_b"], OW1).reshape(1, OW1 * C1),
        "b2": jnp.tile(p["conv2_b"], OW2).reshape(1, OW2 * C2),
        "b3": jnp.tile(p["conv3_b"], OW3).reshape(1, OW3 * C3),
        # Batched row-pool operators over the stacked per-block layout.
        "p1": _row_pool_operator(tb, H0, PH1, tb * H0 - (K - 1)),
        "p2": _row_pool_operator(tb, PH1, PH2, tb * PH1 - (K - 1), ki_major=True),
        "w1": p["lin1_w"].T.astype(bf16),
        "bl1": p["lin1_b"].reshape(1, F1),
        "w2": p["lin2_w"].T.astype(bf16),
        "bl2": p["lin2_b"].reshape(1, F2),
    }


# --------------------------------------------------------------------------
# Forward: one reshape/pad + one pallas_call over a batch-blocked grid.
# --------------------------------------------------------------------------
@functools.partial(jax.jit, static_argnames=("tb",))
def lenet_forward(prep, x, tb=TB):
    B = x.shape[0]
    nblk = pl.cdiv(B, tb)
    b_pad = nblk * tb

    # NCHW with Cin == 1 -> channels-last 2-D (rows = B*H, lanes = W).
    x2d = x.astype(jnp.float32).reshape(B * H0, W0)
    if b_pad != B:
        x2d = jnp.pad(x2d, ((0, (b_pad - B) * H0), (0, 0)))

    operands = (x2d, prep["m1"], prep["b1"], prep["p1"], prep["m2"], prep["b2"],
                prep["p2"], prep["m3"], prep["b3"], prep["w1"], prep["bl1"],
                prep["w2"], prep["bl2"])

    def resident(arr):  # whole array, VMEM-resident across all grid steps
        return pl.BlockSpec(arr.shape, lambda i, _nd=arr.ndim: (0,) * _nd)

    out = pl.pallas_call(
        functools.partial(_lenet_kernel, tb=tb),
        out_shape=jax.ShapeDtypeStruct((b_pad, F2), jnp.float32),
        grid=(nblk,),
        in_specs=[pl.BlockSpec((tb * H0, W0), lambda i: (i, 0))]
                 + [resident(op) for op in operands[1:]],
        out_specs=pl.BlockSpec((tb, F2), lambda i: (i, 0)),
        scratch_shapes=[
            pltpu.VMEM((tb * PH1, OW1 * C1), jnp.float32),  # row-pooled conv1
            pltpu.VMEM((tb * PH2, OW2 * C2), jnp.float32),  # row-pooled conv2 (ki-major)
        ],
        compiler_params=pltpu.CompilerParams(
            dimension_semantics=("parallel",)),
    )(*operands)
    return out[:B]


# --------------------------------------------------------------------------
# Parameter init (PyTorch-like uniform(-1/sqrt(fan_in), +1/sqrt(fan_in)))
# --------------------------------------------------------------------------
def _uniform(key, shape, fan_in):
    bound = 1.0 / jnp.sqrt(jnp.float32(fan_in))
    return jax.random.uniform(key, shape, jnp.float32, minval=-bound, maxval=bound)


def init_params(key):
    ks = jax.random.split(key, 10)
    return {
        "conv1_w": _uniform(ks[0], (C1, 1, K, K), 1 * K * K),
        "conv1_b": _uniform(ks[1], (C1,), 1 * K * K),
        "conv2_w": _uniform(ks[2], (C2, C1, K, K), C1 * K * K),
        "conv2_b": _uniform(ks[3], (C2,), C1 * K * K),
        "conv3_w": _uniform(ks[4], (C3, C2, K, K), C2 * K * K),
        "conv3_b": _uniform(ks[5], (C3,), C2 * K * K),
        "lin1_w": _uniform(ks[6], (F1, C3), C3),
        "lin1_b": _uniform(ks[7], (F1,), C3),
        "lin2_w": _uniform(ks[8], (F2, F1), F1),
        "lin2_b": _uniform(ks[9], (F2,), F1),
    }


def lenet_reference(p, x):
    """Pure-JAX/XLA reference matching the PyTorch module (for verification)."""
    hi = jax.lax.Precision.HIGHEST

    def conv(x, w, b):
        y = jax.lax.conv_general_dilated(
            x, w, window_strides=(1, 1), padding="VALID",
            dimension_numbers=("NCHW", "OIHW", "NCHW"), precision=hi)
        return y + b.reshape(1, -1, 1, 1)

    def pool(x):
        return jax.lax.reduce_window(
            x, 0.0, jax.lax.add, (1, 1, 2, 2), (1, 1, 2, 2), "VALID") * 0.25

    x = jax.nn.relu(conv(x, p["conv1_w"], p["conv1_b"]))
    x = pool(x)
    x = jax.nn.relu(conv(x, p["conv2_w"], p["conv2_b"]))
    x = pool(x)
    x = jax.nn.relu(conv(x, p["conv3_w"], p["conv3_b"]))
    x = x.reshape(x.shape[0], -1)
    x = jax.nn.relu(jnp.dot(x, p["lin1_w"].T, precision=hi) + p["lin1_b"])
    x = jnp.dot(x, p["lin2_w"].T, precision=hi) + p["lin2_b"]
    return jax.nn.sigmoid(x)


if __name__ == "__main__":
    # LeNet-5 requires 32x32 single-channel inputs (conv3 reduces 5x5 -> 1x1).
    key = jax.random.PRNGKey(0)
    k_x, k_p = jax.random.split(key)
    params = init_params(k_p)
    prep = prepare_params(params, tb=TB)       # one-time weight repack

    # Primary small test (batch=2, padded to one TB block) plus a multi-step
    # grid test (batch=20 -> 3 grid steps with padding).
    for batch in (2, 20):
        xb = jax.random.normal(jax.random.fold_in(k_x, batch),
                               (batch, 1, H0, W0), dtype=jnp.float32)
        out = jax.block_until_ready(lenet_forward(prep, xb, tb=TB))

        assert out.shape == (batch, F2), out.shape
        assert bool(jnp.all(jnp.isfinite(out)))
        assert bool(jnp.all((out >= 0.0) & (out <= 1.0)))   # sigmoid range

        ref = lenet_reference(params, xb)
        max_err = float(jnp.max(jnp.abs(out - ref)))
        # bf16 matmul operands + f32 accumulation -> bf16-level tolerance.
        assert max_err < 1e-2, f"mismatch vs reference: max abs err {max_err}"

    print("KERNEL_OK")
</pallas_src>

<mosaic_0001>
module attributes {stable_mosaic.version = 11 : i64} {
  func.func @_lenet_kernel(%arg0: i32, %arg1: memref<256x32xf32, #tpu.memory_space<vmem>>, %arg2: memref<5x32x168xbf16, #tpu.memory_space<vmem>>, %arg3: memref<1x168xf32, #tpu.memory_space<vmem>>, %arg4: memref<112x252xf32, #tpu.memory_space<vmem>>, %arg5: memref<5x168x160xbf16, #tpu.memory_space<vmem>>, %arg6: memref<1x160xf32, #tpu.memory_space<vmem>>, %arg7: memref<40x108xf32, #tpu.memory_space<vmem>>, %arg8: memref<5x160x120xbf16, #tpu.memory_space<vmem>>, %arg9: memref<1x120xf32, #tpu.memory_space<vmem>>, %arg10: memref<120x84xbf16, #tpu.memory_space<vmem>>, %arg11: memref<1x84xf32, #tpu.memory_space<vmem>>, %arg12: memref<84x10xbf16, #tpu.memory_space<vmem>>, %arg13: memref<1x10xf32, #tpu.memory_space<vmem>>, %arg14: memref<8x10xf32, #tpu.memory_space<vmem>>, %arg15: memref<112x168xf32, #tpu.memory_space<vmem>>, %arg16: memref<40x160xf32, #tpu.memory_space<vmem>>) attributes {dimension_semantics = [#tpu.dimension_semantics<parallel>], iteration_bounds = array<i64: 1>, scalar_prefetch = 0 : i64, scratch_operands = 2 : i64, tpu.core_type = #tpu.core_type<tc>, window_params = [{transform_indices = @transform_0, window_bounds = array<i64: 256, 32>}, {pipeline_mode = #tpu.pipeline_mode<synchronous>, transform_indices = @transform_1, window_bounds = array<i64: 5, 32, 168>}, {pipeline_mode = #tpu.pipeline_mode<synchronous>, transform_indices = @transform_2, window_bounds = array<i64: 1, 168>}, {pipeline_mode = #tpu.pipeline_mode<synchronous>, transform_indices = @transform_3, window_bounds = array<i64: 112, 252>}, {pipeline_mode = #tpu.pipeline_mode<synchronous>, transform_indices = @transform_4, window_bounds = array<i64: 5, 168, 160>}, {pipeline_mode = #tpu.pipeline_mode<synchronous>, transform_indices = @transform_5, window_bounds = array<i64: 1, 160>}, {pipeline_mode = #tpu.pipeline_mode<synchronous>, transform_indices = @transform_6, window_bounds = array<i64: 40, 108>}, {pipeline_mode = #tpu.pipeline_mode<synchronous>, transform_indices = @transform_7, window_bounds = array<i64: 5, 160, 120>}, {pipeline_mode = #tpu.pipeline_mode<synchronous>, transform_indices = @transform_8, window_bounds = array<i64: 1, 120>}, {pipeline_mode = #tpu.pipeline_mode<synchronous>, transform_indices = @transform_9, window_bounds = array<i64: 120, 84>}, {pipeline_mode = #tpu.pipeline_mode<synchronous>, transform_indices = @transform_10, window_bounds = array<i64: 1, 84>}, {pipeline_mode = #tpu.pipeline_mode<synchronous>, transform_indices = @transform_11, window_bounds = array<i64: 84, 10>}, {pipeline_mode = #tpu.pipeline_mode<synchronous>, transform_indices = @transform_12, window_bounds = array<i64: 1, 10>}, {transform_indices = @transform_13, window_bounds = array<i64: 8, 10>}]} {
    %c0 = arith.constant 0 : index
    %c0_0 = arith.constant 0 : index
    %0 = vector.load %arg3[%c0, %c0_0] : memref<1x168xf32, #tpu.memory_space<vmem>>, vector<1x168xf32>
    %1 = vector.shape_cast %0 : vector<1x168xf32> to vector<1x168xf32>
    %2 = vector.broadcast %1 : vector<1x168xf32> to vector<252x168xf32>
    %c0_1 = arith.constant 0 : index
    %c0_2 = arith.constant 0 : index
    %3 = vector.load %arg1[%c0_1, %c0_2] : memref<256x32xf32, #tpu.memory_space<vmem>>, vector<252x32xf32>
    %4 = arith.truncf %3 : vector<252x32xf32> to vector<252x32xbf16>
    %c0_3 = arith.constant 0 : index
    %c0_4 = arith.constant 0 : index
    %c0_5 = arith.constant 0 : index
    %5 = vector.load %arg2[%c0_3, %c0_4, %c0_5] : memref<5x32x168xbf16, #tpu.memory_space<vmem>>, vector<1x32x168xbf16>
    %6 = vector.shape_cast %5 : vector<1x32x168xbf16> to vector<32x168xbf16>
    %cst = arith.constant dense<0.000000e+00> : vector<252x168xf32>
    %7 = tpu.matmul %4, %6, %cst {dimension_numbers = #tpu.dot_dimension_numbers<[1], [0], [0], [1], [0, 0, 1, 1], [], []>} : vector<252x32xbf16>, vector<32x168xbf16>, vector<252x168xf32> -> vector<252x168xf32>
    %8 = arith.addf %2, %7 : vector<252x168xf32>
    %c1 = arith.constant 1 : index
    %c0_6 = arith.constant 0 : index
    %9 = vector.load %arg1[%c1, %c0_6] : memref<256x32xf32, #tpu.memory_space<vmem>>, vector<252x32xf32>
    %10 = arith.truncf %9 : vector<252x32xf32> to vector<252x32xbf16>
    %c1_7 = arith.constant 1 : index
    %c0_8 = arith.constant 0 : index
    %c0_9 = arith.constant 0 : index
    %11 = vector.load %arg2[%c1_7, %c0_8, %c0_9] : memref<5x32x168xbf16, #tpu.memory_space<vmem>>, vector<1x32x168xbf16>
    %12 = vector.shape_cast %11 : vector<1x32x168xbf16> to vector<32x168xbf16>
    %cst_10 = arith.constant dense<0.000000e+00> : vector<252x168xf32>
    %13 = tpu.matmul %10, %12, %cst_10 {dimension_numbers = #tpu.dot_dimension_numbers<[1], [0], [0], [1], [0, 0, 1, 1], [], []>} : vector<252x32xbf16>, vector<32x168xbf16>, vector<252x168xf32> -> vector<252x168xf32>
    %14 = arith.addf %8, %13 : vector<252x168xf32>
    %c2 = arith.constant 2 : index
    %c0_11 = arith.constant 0 : index
    %15 = vector.load %arg1[%c2, %c0_11] : memref<256x32xf32, #tpu.memory_space<vmem>>, vector<252x32xf32>
    %16 = arith.truncf %15 : vector<252x32xf32> to vector<252x32xbf16>
    %c2_12 = arith.constant 2 : index
    %c0_13 = arith.constant 0 : index
    %c0_14 = arith.constant 0 : index
    %17 = vector.load %arg2[%c2_12, %c0_13, %c0_14] : memref<5x32x168xbf16, #tpu.memory_space<vmem>>, vector<1x32x168xbf16>
    %18 = vector.shape_cast %17 : vector<1x32x168xbf16> to vector<32x168xbf16>
    %cst_15 = arith.constant dense<0.000000e+00> : vector<252x168xf32>
    %19 = tpu.matmul %16, %18, %cst_15 {dimension_numbers = #tpu.dot_dimension_numbers<[1], [0], [0], [1], [0, 0, 1, 1], [], []>} : vector<252x32xbf16>, vector<32x168xbf16>, vector<252x168xf32> -> vector<252x168xf32>
    %20 = arith.addf %14, %19 : vector<252x168xf32>
    %c3 = arith.constant 3 : index
    %c0_16 = arith.constant 0 : index
    %21 = vector.load %arg1[%c3, %c0_16] : memref<256x32xf32, #tpu.memory_space<vmem>>, vector<252x32xf32>
    %22 = arith.truncf %21 : vector<252x32xf32> to vector<252x32xbf16>
    %c3_17 = arith.constant 3 : index
    %c0_18 = arith.constant 0 : index
    %c0_19 = arith.constant 0 : index
    %23 = vector.load %arg2[%c3_17, %c0_18, %c0_19] : memref<5x32x168xbf16, #tpu.memory_space<vmem>>, vector<1x32x168xbf16>
    %24 = vector.shape_cast %23 : vector<1x32x168xbf16> to vector<32x168xbf16>
    %cst_20 = arith.constant dense<0.000000e+00> : vector<252x168xf32>
    %25 = tpu.matmul %22, %24, %cst_20 {dimension_numbers = #tpu.dot_dimension_numbers<[1], [0], [0], [1], [0, 0, 1, 1], [], []>} : vector<252x32xbf16>, vector<32x168xbf16>, vector<252x168xf32> -> vector<252x168xf32>
    %26 = arith.addf %20, %25 : vector<252x168xf32>
    %c4 = arith.constant 4 : index
    %c0_21 = arith.constant 0 : index
    %27 = vector.load %arg1[%c4, %c0_21] : memref<256x32xf32, #tpu.memory_space<vmem>>, vector<252x32xf32>
    %28 = arith.truncf %27 : vector<252x32xf32> to vector<252x32xbf16>
    %c4_22 = arith.constant 4 : index
    %c0_23 = arith.constant 0 : index
    %c0_24 = arith.constant 0 : index
    %29 = vector.load %arg2[%c4_22, %c0_23, %c0_24] : memref<5x32x168xbf16, #tpu.memory_space<vmem>>, vector<1x32x168xbf16>
    %30 = vector.shape_cast %29 : vector<1x32x168xbf16> to vector<32x168xbf16>
    %cst_25 = arith.constant dense<0.000000e+00> : vector<252x168xf32>
    %31 = tpu.matmul %28, %30, %cst_25 {dimension_numbers = #tpu.dot_dimension_numbers<[1], [0], [0], [1], [0, 0, 1, 1], [], []>} : vector<252x32xbf16>, vector<32x168xbf16>, vector<252x168xf32> -> vector<252x168xf32>
    %32 = arith.addf %26, %31 : vector<252x168xf32>
    %cst_26 = arith.constant 0.000000e+00 : f32
    %33 = vector.broadcast %cst_26 : f32 to vector<252x168xf32>
    %34 = arith.maximumf %32, %33 : vector<252x168xf32>
    %c0_27 = arith.constant 0 : index
    %c0_28 = arith.constant 0 : index
    %35 = vector.load %arg4[%c0_27, %c0_28] : memref<112x252xf32, #tpu.memory_space<vmem>>, vector<112x252xf32>
    %cst_29 = arith.constant dense<0.000000e+00> : vector<112x168xf32>
    %36 = tpu.matmul %35, %34, %cst_29 {dimension_numbers = #tpu.dot_dimension_numbers<[1], [0], [0], [1], [0, 0, 1, 1], [], []>} : vector<112x252xf32>, vector<252x168xf32>, vector<112x168xf32> -> vector<112x168xf32>
    %c0_30 = arith.constant 0 : index
    %c0_31 = arith.constant 0 : index
    %37 = vector.load %arg15[%c0_30, %c0_31] : memref<112x168xf32, #tpu.memory_space<vmem>>, vector<112x168xf32>
    tpu.vector_store %arg15[%c0_30, %c0_31], %36 {strides = array<i32>} : memref<112x168xf32, #tpu.memory_space<vmem>>, vector<112x168xf32>,
    %c0_32 = arith.constant 0 : index
    %c0_33 = arith.constant 0 : index
    %38 = vector.load %arg6[%c0_32, %c0_33] : memref<1x160xf32, #tpu.memory_space<vmem>>, vector<1x160xf32>
    %39 = vector.shape_cast %38 : vector<1x160xf32> to vector<1x160xf32>
    %40 = vector.broadcast %39 : vector<1x160xf32> to vector<108x160xf32>
    %c0_34 = arith.constant 0 : index
    %c0_35 = arith.constant 0 : index
    %41 = vector.load %arg15[%c0_34, %c0_35] : memref<112x168xf32, #tpu.memory_space<vmem>>, vector<108x168xf32>
    %42 = arith.truncf %41 : vector<108x168xf32> to vector<108x168xbf16>
    %c0_36 = arith.constant 0 : index
    %c0_37 = arith.constant 0 : index
    %c0_38 = arith.constant 0 : index
    %43 = vector.load %arg5[%c0_36, %c0_37, %c0_38] : memref<5x168x160xbf16, #tpu.memory_space<vmem>>, vector<1x168x160xbf16>
    %44 = vector.shape_cast %43 : vector<1x168x160xbf16> to vector<168x160xbf16>
    %cst_39 = arith.constant dense<0.000000e+00> : vector<108x160xf32>
    %45 = tpu.matmul %42, %44, %cst_39 {dimension_numbers = #tpu.dot_dimension_numbers<[1], [0], [0], [1], [0, 0, 1, 1], [], []>} : vector<108x168xbf16>, vector<168x160xbf16>, vector<108x160xf32> -> vector<108x160xf32>
    %46 = arith.addf %40, %45 : vector<108x160xf32>
    %c1_40 = arith.constant 1 : index
    %c0_41 = arith.constant 0 : index
    %47 = vector.load %arg15[%c1_40, %c0_41] : memref<112x168xf32, #tpu.memory_space<vmem>>, vector<108x168xf32>
    %48 = arith.truncf %47 : vector<108x168xf32> to vector<108x168xbf16>
    %c1_42 = arith.constant 1 : index
    %c0_43 = arith.constant 0 : index
    %c0_44 = arith.constant 0 : index
    %49 = vector.load %arg5[%c1_42, %c0_43, %c0_44] : memref<5x168x160xbf16, #tpu.memory_space<vmem>>, vector<1x168x160xbf16>
    %50 = vector.shape_cast %49 : vector<1x168x160xbf16> to vector<168x160xbf16>
    %cst_45 = arith.constant dense<0.000000e+00> : vector<108x160xf32>
    %51 = tpu.matmul %48, %50, %cst_45 {dimension_numbers = #tpu.dot_dimension_numbers<[1], [0], [0], [1], [0, 0, 1, 1], [], []>} : vector<108x168xbf16>, vector<168x160xbf16>, vector<108x160xf32> -> vector<108x160xf32>
    %52 = arith.addf %46, %51 : vector<108x160xf32>
    %c2_46 = arith.constant 2 : index
    %c0_47 = arith.constant 0 : index
    %53 = vector.load %arg15[%c2_46, %c0_47] : memref<112x168xf32, #tpu.memory_space<vmem>>, vector<108x168xf32>
    %54 = arith.truncf %53 : vector<108x168xf32> to vector<108x168xbf16>
    %c2_48 = arith.constant 2 : index
    %c0_49 = arith.constant 0 : index
    %c0_50 = arith.constant 0 : index
    %55 = vector.load %arg5[%c2_48, %c0_49, %c0_50] : memref<5x168x160xbf16, #tpu.memory_space<vmem>>, vector<1x168x160xbf16>
    %56 = vector.shape_cast %55 : vector<1x168x160xbf16> to vector<168x160xbf16>
    %cst_51 = arith.constant dense<0.000000e+00> : vector<108x160xf32>
    %57 = tpu.matmul %54, %56, %cst_51 {dimension_numbers = #tpu.dot_dimension_numbers<[1], [0], [0], [1], [0, 0, 1, 1], [], []>} : vector<108x168xbf16>, vector<168x160xbf16>, vector<108x160xf32> -> vector<108x160xf32>
    %58 = arith.addf %52, %57 : vector<108x160xf32>
    %c3_52 = arith.constant 3 : index
    %c0_53 = arith.constant 0 : index
    %59 = vector.load %arg15[%c3_52, %c0_53] : memref<112x168xf32, #tpu.memory_space<vmem>>, vector<108x168xf32>
    %60 = arith.truncf %59 : vector<108x168xf32> to vector<108x168xbf16>
    %c3_54 = arith.constant 3 : index
    %c0_55 = arith.constant 0 : index
    %c0_56 = arith.constant 0 : index
    %61 = vector.load %arg5[%c3_54, %c0_55, %c0_56] : memref<5x168x160xbf16, #tpu.memory_space<vmem>>, vector<1x168x160xbf16>
    %62 = vector.shape_cast %61 : vector<1x168x160xbf16> to vector<168x160xbf16>
    %cst_57 = arith.constant dense<0.000000e+00> : vector<108x160xf32>
    %63 = tpu.matmul %60, %62, %cst_57 {dimension_numbers = #tpu.dot_dimension_numbers<[1], [0], [0], [1], [0, 0, 1, 1], [], []>} : vector<108x168xbf16>, vector<168x160xbf16>, vector<108x160xf32> -> vector<108x160xf32>
    %64 = arith.addf %58, %63 : vector<108x160xf32>
    %c4_58 = arith.constant 4 : index
    %c0_59 = arith.constant 0 : index
    %65 = vector.load %arg15[%c4_58, %c0_59] : memref<112x168xf32, #tpu.memory_space<vmem>>, vector<108x168xf32>
    %66 = arith.truncf %65 : vector<108x168xf32> to vector<108x168xbf16>
    %c4_60 = arith.constant 4 : index
    %c0_61 = arith.constant 0 : index
    %c0_62 = arith.constant 0 : index
    %67 = vector.load %arg5[%c4_60, %c0_61, %c0_62] : memref<5x168x160xbf16, #tpu.memory_space<vmem>>, vector<1x168x160xbf16>
    %68 = vector.shape_cast %67 : vector<1x168x160xbf16> to vector<168x160xbf16>
    %cst_63 = arith.constant dense<0.000000e+00> : vector<108x160xf32>
    %69 = tpu.matmul %66, %68, %cst_63 {dimension_numbers = #tpu.dot_dimension_numbers<[1], [0], [0], [1], [0, 0, 1, 1], [], []>} : vector<108x168xbf16>, vector<168x160xbf16>, vector<108x160xf32> -> vector<108x160xf32>
    %70 = arith.addf %64, %69 : vector<108x160xf32>
    %cst_64 = arith.constant 0.000000e+00 : f32
    %71 = vector.broadcast %cst_64 : f32 to vector<108x160xf32>
    %72 = arith.maximumf %70, %71 : vector<108x160xf32>
    %c0_65 = arith.constant 0 : index
    %c0_66 = arith.constant 0 : index
    %73 = vector.load %arg7[%c0_65, %c0_66] : memref<40x108xf32, #tpu.memory_space<vmem>>, vector<40x108xf32>
    %cst_67 = arith.constant dense<0.000000e+00> : vector<40x160xf32>
    %74 = tpu.matmul %73, %72, %cst_67 {dimension_numbers = #tpu.dot_dimension_numbers<[1], [0], [0], [1], [0, 0, 1, 1], [], []>} : vector<40x108xf32>, vector<108x160xf32>, vector<40x160xf32> -> vector<40x160xf32>
    %c0_68 = arith.constant 0 : index
    %c0_69 = arith.constant 0 : index
    %75 = vector.load %arg16[%c0_68, %c0_69] : memref<40x160xf32, #tpu.memory_space<vmem>>, vector<40x160xf32>
    tpu.vector_store %arg16[%c0_68, %c0_69], %74 {strides = array<i32>} : memref<40x160xf32, #tpu.memory_space<vmem>>, vector<40x160xf32>,
    %c0_70 = arith.constant 0 : index
    %c0_71 = arith.constant 0 : index
    %76 = vector.load %arg9[%c0_70, %c0_71] : memref<1x120xf32, #tpu.memory_space<vmem>>, vector<1x120xf32>
    %77 = vector.shape_cast %76 : vector<1x120xf32> to vector<1x120xf32>
    %78 = vector.broadcast %77 : vector<1x120xf32> to vector<8x120xf32>
    %c0_72 = arith.constant 0 : index
    %c0_73 = arith.constant 0 : index
    %79 = vector.load %arg16[%c0_72, %c0_73] : memref<40x160xf32, #tpu.memory_space<vmem>>, vector<8x160xf32>
    %80 = arith.truncf %79 : vector<8x160xf32> to vector<8x160xbf16>
    %c0_74 = arith.constant 0 : index
    %c0_75 = arith.constant 0 : index
    %c0_76 = arith.constant 0 : index
    %81 = vector.load %arg8[%c0_74, %c0_75, %c0_76] : memref<5x160x120xbf16, #tpu.memory_space<vmem>>, vector<1x160x120xbf16>
    %82 = vector.shape_cast %81 : vector<1x160x120xbf16> to vector<160x120xbf16>
    %cst_77 = arith.constant dense<0.000000e+00> : vector<8x120xf32>
    %83 = tpu.matmul %80, %82, %cst_77 {dimension_numbers = #tpu.dot_dimension_numbers<[1], [0], [0], [1], [0, 0, 1, 1], [], []>} : vector<8x160xbf16>, vector<160x120xbf16>, vector<8x120xf32> -> vector<8x120xf32>
    %84 = arith.addf %78, %83 : vector<8x120xf32>
    %c8 = arith.constant 8 : index
    %c0_78 = arith.constant 0 : index
    %85 = vector.load %arg16[%c8, %c0_78] : memref<40x160xf32, #tpu.memory_space<vmem>>, vector<8x160xf32>
    %86 = arith.truncf %85 : vector<8x160xf32> to vector<8x160xbf16>
    %c1_79 = arith.constant 1 : index
    %c0_80 = arith.constant 0 : index
    %c0_81 = arith.constant 0 : index
    %87 = vector.load %arg8[%c1_79, %c0_80, %c0_81] : memref<5x160x120xbf16, #tpu.memory_space<vmem>>, vector<1x160x120xbf16>
    %88 = vector.shape_cast %87 : vector<1x160x120xbf16> to vector<160x120xbf16>
    %cst_82 = arith.constant dense<0.000000e+00> : vector<8x120xf32>
    %89 = tpu.matmul %86, %88, %cst_82 {dimension_numbers = #tpu.dot_dimension_numbers<[1], [0], [0], [1], [0, 0, 1, 1], [], []>} : vector<8x160xbf16>, vector<160x120xbf16>, vector<8x120xf32> -> vector<8x120xf32>
    %90 = arith.addf %84, %89 : vector<8x120xf32>
    %c16 = arith.constant 16 : index
    %c0_83 = arith.constant 0 : index
    %91 = vector.load %arg16[%c16, %c0_83] : memref<40x160xf32, #tpu.memory_space<vmem>>, vector<8x160xf32>
    %92 = arith.truncf %91 : vector<8x160xf32> to vector<8x160xbf16>
    %c2_84 = arith.constant 2 : index
    %c0_85 = arith.constant 0 : index
    %c0_86 = arith.constant 0 : index
    %93 = vector.load %arg8[%c2_84, %c0_85, %c0_86] : memref<5x160x120xbf16, #tpu.memory_space<vmem>>, vector<1x160x120xbf16>
    %94 = vector.shape_cast %93 : vector<1x160x120xbf16> to vector<160x120xbf16>
    %cst_87 = arith.constant dense<0.000000e+00> : vector<8x120xf32>
    %95 = tpu.matmul %92, %94, %cst_87 {dimension_numbers = #tpu.dot_dimension_numbers<[1], [0], [0], [1], [0, 0, 1, 1], [], []>} : vector<8x160xbf16>, vector<160x120xbf16>, vector<8x120xf32> -> vector<8x120xf32>
    %96 = arith.addf %90, %95 : vector<8x120xf32>
    %c24 = arith.constant 24 : index
    %c0_88 = arith.constant 0 : index
    %97 = vector.load %arg16[%c24, %c0_88] : memref<40x160xf32, #tpu.memory_space<vmem>>, vector<8x160xf32>
    %98 = arith.truncf %97 : vector<8x160xf32> to vector<8x160xbf16>
    %c3_89 = arith.constant 3 : index
    %c0_90 = arith.constant 0 : index
    %c0_91 = arith.constant 0 : index
    %99 = vector.load %arg8[%c3_89, %c0_90, %c0_91] : memref<5x160x120xbf16, #tpu.memory_space<vmem>>, vector<1x160x120xbf16>
    %100 = vector.shape_cast %99 : vector<1x160x120xbf16> to vector<160x120xbf16>
    %cst_92 = arith.constant dense<0.000000e+00> : vector<8x120xf32>
    %101 = tpu.matmul %98, %100, %cst_92 {dimension_numbers = #tpu.dot_dimension_numbers<[1], [0], [0], [1], [0, 0, 1, 1], [], []>} : vector<8x160xbf16>, vector<160x120xbf16>, vector<8x120xf32> -> vector<8x120xf32>
    %102 = arith.addf %96, %101 : vector<8x120xf32>
    %c32 = arith.constant 32 : index
    %c0_93 = arith.constant 0 : index
    %103 = vector.load %arg16[%c32, %c0_93] : memref<40x160xf32, #tpu.memory_space<vmem>>, vector<8x160xf32>
    %104 = arith.truncf %103 : vector<8x160xf32> to vector<8x160xbf16>
    %c4_94 = arith.constant 4 : index
    %c0_95 = arith.constant 0 : index
    %c0_96 = arith.constant 0 : index
    %105 = vector.load %arg8[%c4_94, %c0_95, %c0_96] : memref<5x160x120xbf16, #tpu.memory_space<vmem>>, vector<1x160x120xbf16>
    %106 = vector.shape_cast %105 : vector<1x160x120xbf16> to vector<160x120xbf16>
    %cst_97 = arith.constant dense<0.000000e+00> : vector<8x120xf32>
    %107 = tpu.matmul %104, %106, %cst_97 {dimension_numbers = #tpu.dot_dimension_numbers<[1], [0], [0], [1], [0, 0, 1, 1], [], []>} : vector<8x160xbf16>, vector<160x120xbf16>, vector<8x120xf32> -> vector<8x120xf32>
    %108 = arith.addf %102, %107 : vector<8x120xf32>
    %cst_98 = arith.constant 0.000000e+00 : f32
    %109 = vector.broadcast %cst_98 : f32 to vector<8x120xf32>
    %110 = arith.maximumf %108, %109 : vector<8x120xf32>
    %111 = arith.truncf %110 : vector<8x120xf32> to vector<8x120xbf16>
    %c0_99 = arith.constant 0 : index
    %c0_100 = arith.constant 0 : index
    %112 = vector.load %arg10[%c0_99, %c0_100] : memref<120x84xbf16, #tpu.memory_space<vmem>>, vector<120x84xbf16>
    %cst_101 = arith.constant dense<0.000000e+00> : vector<8x84xf32>
    %113 = tpu.matmul %111, %112, %cst_101 {dimension_numbers = #tpu.dot_dimension_numbers<[1], [0], [0], [1], [0, 0, 1, 1], [], []>} : vector<8x120xbf16>, vector<120x84xbf16>, vector<8x84xf32> -> vector<8x84xf32>
    %c0_102 = arith.constant 0 : index
    %c0_103 = arith.constant 0 : index
    %114 = vector.load %arg11[%c0_102, %c0_103] : memref<1x84xf32, #tpu.memory_space<vmem>>, vector<1x84xf32>
    %115 = vector.broadcast %114 : vector<1x84xf32> to vector<8x84xf32>
    %116 = arith.addf %113, %115 : vector<8x84xf32>
    %cst_104 = arith.constant 0.000000e+00 : f32
    %117 = vector.broadcast %cst_104 : f32 to vector<8x84xf32>
    %118 = arith.maximumf %116, %117 : vector<8x84xf32>
    %119 = arith.truncf %118 : vector<8x84xf32> to vector<8x84xbf16>
    %c0_105 = arith.constant 0 : index
    %c0_106 = arith.constant 0 : index
    %120 = vector.load %arg12[%c0_105, %c0_106] : memref<84x10xbf16, #tpu.memory_space<vmem>>, vector<84x10xbf16>
    %cst_107 = arith.constant dense<0.000000e+00> : vector<8x10xf32>
    %121 = tpu.matmul %119, %120, %cst_107 {dimension_numbers = #tpu.dot_dimension_numbers<[1], [0], [0], [1], [0, 0, 1, 1], [], []>} : vector<8x84xbf16>, vector<84x10xbf16>, vector<8x10xf32> -> vector<8x10xf32>
    %c0_108 = arith.constant 0 : index
    %c0_109 = arith.constant 0 : index
    %122 = vector.load %arg13[%c0_108, %c0_109] : memref<1x10xf32, #tpu.memory_space<vmem>>, vector<1x10xf32>
    %123 = vector.broadcast %122 : vector<1x10xf32> to vector<8x10xf32>
    %124 = arith.addf %121, %123 : vector<8x10xf32>
    %125 = arith.negf %124 : vector<8x10xf32>
    %126 = math.exp %125 : vector<8x10xf32>
    %cst_110 = arith.constant 1.000000e+00 : f32
    %127 = vector.broadcast %cst_110 : f32 to vector<8x10xf32>
    %128 = arith.addf %127, %126 : vector<8x10xf32>
    %129 = arith.divf %127, %128 : vector<8x10xf32>
    %c0_111 = arith.constant 0 : index
    %c0_112 = arith.constant 0 : index
    %130 = vector.load %arg14[%c0_111, %c0_112] : memref<8x10xf32, #tpu.memory_space<vmem>>, vector<8x10xf32>
    tpu.vector_store %arg14[%c0_111, %c0_112], %129 {strides = array<i32>} : memref<8x10xf32, #tpu.memory_space<vmem>>, vector<8x10xf32>,
    return
  }
  func.func @transform_0(%arg0: i32) -> (i32, i32) {
    %c0_i32 = arith.constant 0 : i32
    %c0_i32_0 = arith.constant 0 : i32
    return %arg0, %c0_i32 : i32, i32
  }
  func.func @transform_1(%arg0: i32) -> (i32, i32, i32) {
    %c0_i32 = arith.constant 0 : i32
    %c0_i32_0 = arith.constant 0 : i32
    %c0_i32_1 = arith.constant 0 : i32
    %c0_i32_2 = arith.constant 0 : i32
    return %c0_i32, %c0_i32_0, %c0_i32_1 : i32, i32, i32
  }
  func.func @transform_2(%arg0: i32) -> (i32, i32) {
    %c0_i32 = arith.constant 0 : i32
    %c0_i32_0 = arith.constant 0 : i32
    %c0_i32_1 = arith.constant 0 : i32
    return %c0_i32, %c0_i32_0 : i32, i32
  }
  func.func @transform_3(%arg0: i32) -> (i32, i32) {
    %c0_i32 = arith.constant 0 : i32
    %c0_i32_0 = arith.constant 0 : i32
    %c0_i32_1 = arith.constant 0 : i32
    return %c0_i32, %c0_i32_0 : i32, i32
  }
  func.func @transform_4(%arg0: i32) -> (i32, i32, i32) {
    %c0_i32 = arith.constant 0 : i32
    %c0_i32_0 = arith.constant 0 : i32
    %c0_i32_1 = arith.constant 0 : i32
    %c0_i32_2 = arith.constant 0 : i32
    return %c0_i32, %c0_i32_0, %c0_i32_1 : i32, i32, i32
  }
  func.func @transform_5(%arg0: i32) -> (i32, i32) {
    %c0_i32 = arith.constant 0 : i32
    %c0_i32_0 = arith.constant 0 : i32
    %c0_i32_1 = arith.constant 0 : i32
    return %c0_i32, %c0_i32_0 : i32, i32
  }
  func.func @transform_6(%arg0: i32) -> (i32, i32) {
    %c0_i32 = arith.constant 0 : i32
    %c0_i32_0 = arith.constant 0 : i32
    %c0_i32_1 = arith.constant 0 : i32
    return %c0_i32, %c0_i32_0 : i32, i32
  }
  func.func @transform_7(%arg0: i32) -> (i32, i32, i32) {
    %c0_i32 = arith.constant 0 : i32
    %c0_i32_0 = arith.constant 0 : i32
    %c0_i32_1 = arith.constant 0 : i32
    %c0_i32_2 = arith.constant 0 : i32
    return %c0_i32, %c0_i32_0, %c0_i32_1 : i32, i32, i32
  }
  func.func @transform_8(%arg0: i32) -> (i32, i32) {
    %c0_i32 = arith.constant 0 : i32
    %c0_i32_0 = arith.constant 0 : i32
    %c0_i32_1 = arith.constant 0 : i32
    return %c0_i32, %c0_i32_0 : i32, i32
  }
  func.func @transform_9(%arg0: i32) -> (i32, i32) {
    %c0_i32 = arith.constant 0 : i32
    %c0_i32_0 = arith.constant 0 : i32
    %c0_i32_1 = arith.constant 0 : i32
    return %c0_i32, %c0_i32_0 : i32, i32
  }
  func.func @transform_10(%arg0: i32) -> (i32, i32) {
    %c0_i32 = arith.constant 0 : i32
    %c0_i32_0 = arith.constant 0 : i32
    %c0_i32_1 = arith.constant 0 : i32
    return %c0_i32, %c0_i32_0 : i32, i32
  }
  func.func @transform_11(%arg0: i32) -> (i32, i32) {
    %c0_i32 = arith.constant 0 : i32
    %c0_i32_0 = arith.constant 0 : i32
    %c0_i32_1 = arith.constant 0 : i32
    return %c0_i32, %c0_i32_0 : i32, i32
  }
  func.func @transform_12(%arg0: i32) -> (i32, i32) {
    %c0_i32 = arith.constant 0 : i32
    %c0_i32_0 = arith.constant 0 : i32
    %c0_i32_1 = arith.constant 0 : i32
    return %c0_i32, %c0_i32_0 : i32, i32
  }
  func.func @transform_13(%arg0: i32) -> (i32, i32) {
    %c0_i32 = arith.constant 0 : i32
    %c0_i32_0 = arith.constant 0 : i32
    return %arg0, %c0_i32 : i32, i32
  }
}

</mosaic_0001>

<bundles_post_ra>
// kernel: lenet_forward.1
= control target key start
LH: loop header
LB: loop body
LE: loop exit
PB: predicated region body
PF: predicated region fallthrough
CT: control target
= control target key end

     0   :  { %v8608_v1 = vmov 0   ;;  %vm129_vm0 = vcmask 261120   ;;  %vm2039_vm1 = vcmask 1014784   ;;  %vm2082_vm2 = vcmask 1043456   ;;  %s8594_s1 = inlined_call_operand.vmem [shape: bf16[5,32,168], index: 1, kind: input, shape index: {}]   ;;  %s8595_s0 = inlined_call_operand.vmem [shape: f32[256,32], index: 0, kind: input, shape index: {}]   ;;  %s8596_s2 = inlined_call_operand.vmem [shape: f32[1,168], index: 2, kind: input, shape index: {}]   ;;  %s8597_s3 = inlined_call_operand.vmem [shape: f32[112,252], index: 3, kind: input, shape index: {}]   ;;  %s8598_s4 = inlined_call_operand.vmem [shape: bf16[5,168,160], index: 4, kind: input, shape index: {}]   ;;  %s8599_s7 = inlined_call_operand.vmem [shape: bf16[5,160,120], index: 7, kind: input, shape index: {}]   ;;  %s8600_s5 = inlined_call_operand.vmem [shape: f32[1,160], index: 5, kind: input, shape index: {}]   ;;  %s8601_s6 = inlined_call_operand.vmem [shape: f32[40,108], index: 6, kind: input, shape index: {}]   ;;  %s8602_s9 = inlined_call_operand.vmem [shape: bf16[120,84], index: 9, kind: input, shape index: {}]   ;;  %s8603_s11 = inlined_call_operand.vmem [shape: bf16[84,10], index: 11, kind: input, shape index: {}]   ;;  %s8604_s8 = inlined_call_operand.vmem [shape: f32[1,120], index: 8, kind: input, shape index: {}]   ;;  %s8605_s10 = inlined_call_operand.vmem [shape: f32[1,84], index: 10, kind: input, shape index: {}]   ;;  %s8606_s12 = inlined_call_operand.vmem [shape: f32[1,10], index: 12, kind: input, shape index: {}]   ;;  %s8607_s13 = inlined_call_operand.vmem [shape: f32[8,10], index: 13, kind: output, shape index: {}]  }
   0x1   :  { %v6255_v0 = vld [vmem:[%s8594_s1 + $0x4] ss:$8 sps:$4 sm:$0xff]   ;;  %210 = vmatprep.mubr.bf16.mxu0 %v8608_v1  ;;  %v6257_v2 = vld [vmem:[%s8594_s1] ss:$8 sps:$4 sm:$0xff]   ;;  %v6258_v3 = vld [vmem:[%s8594_s1 + $0x14] ss:$8 sps:$4 sm:$0xff]  }
   0x2   :  { %178 = vmatprep.subr.bf16.mxu0 %v6255_v0  ;;  %v6260_v4 = vld [vmem:[%s8594_s1 + $0x10] ss:$8 sps:$4 sm:$0xff]   ;;  %v57_v5 = vld [vmem:[%s8595_s0] sm:$0xff]  ;;  %v58_v6 = vld [vmem:[%s8595_s0 + $0x8] sm:$0xff]  ;;  %vm6514_vm3 = vmmov 1   ;;  %vm2239_vm5 = vcmask 326656  }
   0x3   :  { %179 = vmatpush1.bf16.msra.mxu0 %v6257_v2  ;;  %v6263_v7 = vld [vmem:[%s8594_s1 + $0x24] ss:$8 sps:$4 sm:$0xff]   ;;  %v89_v8 = vpack.c.bf16 %v58_v6, %v57_v5  ;;  %v6261_v9 = vld [vmem:[%s8594_s1 + $0x20] ss:$8 sps:$4 sm:$0xff]   ;;  %v59_v10 = vld [vmem:[%s8595_s0 + $0x10] sm:$0xff]  ;;  %vm3055_vm6 = vcmask 1046528  }
   0x4   :  { %180 = vmatprep.subr.bf16.mxu0 %v6258_v3  ;;  %v60_v11 = vld [vmem:[%s8595_s0 + $0x18] sm:$0xff]  ;;  %v6269_v15 = vld [vmem:[%s8594_s1 + $0x44] ss:$8 sps:$4 sm:$0xff]   ;;  %v63_v19 = vld [vmem:[%s8595_s0 + $0x30] sm:$0xff]  ;;  %vm2635_vm7 = vsmask.f32 7424 }
   0x5   :  { %v6264_v12 = vld [vmem:[%s8594_s1 + $0x30] ss:$8 sps:$4 sm:$0xff]   ;;  %v6266_v13 = vld [vmem:[%s8594_s1 + $0x34] ss:$8 sps:$4 sm:$0xff]   ;;  %v90_v14 = vpack.c.bf16 %v60_v11, %v59_v10  ;;  %v61_v16 = vld [vmem:[%s8595_s0 + $0x20] sm:$0xff]  ;;  %vm3761_vm9 = vcmask 1045504  }
   0x6   :  { %v62_v17 = vld [vmem:[%s8595_s0 + $0x28] sm:$0xff]  ;;  %v64_v20 = vld [vmem:[%s8595_s0 + $0x38] sm:$0xff]  ;;  %v65_v22 = vld [vmem:[%s8595_s0 + $0x40] sm:$0xff]  ;;  %vm3382_vm8 = vsmask.f32 6400  ;;  %vm4091_vm10 = vcmask 883712  }
   0x7   :  { %181 = vmatpush1.bf16.msra.mxu0 %v6260_v4  ;;  %v91_v18 = vpack.c.bf16 %v62_v17, %v61_v16  ;;  %v92_v21 = vpack.c.bf16 %v64_v20, %v63_v19  ;;  %v66_v23 = vld [vmem:[%s8595_s0 + $0x48] sm:$0xff]  ;;  %v67_v25 = vld [vmem:[%s8595_s0 + $0x50] sm:$0xff]  ;;  %v68_v26 = vld [vmem:[%s8595_s0 + $0x58] sm:$0xff]  ;;  %vm6516_vm11 = vmmov 0   ;;  %vm5042_vm12 = vcmask 1041408  }
   0x8   :  { %556 = vmatprep.subr.bf16.mxu0 %v6263_v7  ;;  %v93_v24 = vpack.c.bf16 %v66_v23, %v65_v22  ;;  %v94_v27 = vpack.c.bf16 %v68_v26, %v67_v25  ;;  %v69_v28 = vld [vmem:[%s8595_s0 + $0x60] sm:$0xff]  ;;  %v70_v29 = vld [vmem:[%s8595_s0 + $0x68] sm:$0xff]  ;;  %v71_v31 = vld [vmem:[%s8595_s0 + $0x70] sm:$0xff]  ;;  %vm4938_vm13 = vcmask 982016   ;;  %vm5038_vm14 = vcmask 687104  }
   0x9   :  { %v95_v30 = vpack.c.bf16 %v70_v29, %v69_v28  ;;  %v72_v32 = vld [vmem:[%s8595_s0 + $0x78] sm:$0xff]  ;;  %v73_v34 = vld [vmem:[%s8595_s0 + $0x80] sm:$0xff]  ;;  %v74_v35 = vld [vmem:[%s8595_s0 + $0x88] sm:$0xff]  ;;  %vm5092_vm15 = vcmask 80896  }
   0xa   :  { %5102 = vmatmul.mubr.msk.bf16.vlgmr.msra.gmra.mrb[0].mxu0 %vm129_vm0, %v89_v8  ;;  %v96_v33 = vpack.c.bf16 %v72_v32, %v71_v31  ;;  %v97_v36 = vpack.c.bf16 %v74_v35, %v73_v34  ;;  %v75_v37 = vld [vmem:[%s8595_s0 + $0x90] sm:$0xff]  ;;  %v76_v38 = vld [vmem:[%s8595_s0 + $0x98] sm:$0xff]  ;;  %v77_v40 = vld [vmem:[%s8595_s0 + $0xa0] sm:$0xff] }
   0xb   :  { %557 = vmatpush1.bf16.msra.mxu0 %v6261_v9  ;;  %220 = vmatprep.mubr.bf16.mxu0 %v8608_v1  ;;  %v98_v39 = vpack.c.bf16 %v76_v38, %v75_v37  ;;  %v78_v41 = vld [vmem:[%s8595_s0 + $0xa8] sm:$0xff]  ;;  %v79_v43 = vld [vmem:[%s8595_s0 + $0xb0] sm:$0xff]  ;;  %v80_v44 = vld [vmem:[%s8595_s0 + $0xb8] sm:$0xff] }
   0xc   :  { %558 = vmatprep.subr.bf16.mxu0 %v6266_v13  ;;  %v99_v42 = vpack.c.bf16 %v78_v41, %v77_v40  ;;  %v100_v45 = vpack.c.bf16 %v80_v44, %v79_v43  ;;  %v81_v46 = vld [vmem:[%s8595_s0 + $0xc0] sm:$0xff]  ;;  %v82_v47 = vld [vmem:[%s8595_s0 + $0xc8] sm:$0xff]  ;;  %v83_v49 = vld [vmem:[%s8595_s0 + $0xd0] sm:$0xff] }
   0xd   :  { %v101_v48 = vpack.c.bf16 %v82_v47, %v81_v46  ;;  %v84_v50 = vld [vmem:[%s8595_s0 + $0xd8] sm:$0xff]  ;;  %v85_v52 = vld [vmem:[%s8595_s0 + $0xe0] sm:$0xff]  ;;  %v86_v53 = vld [vmem:[%s8595_s0 + $0xe8] sm:$0xff] }
   0xe   :  { %v102_v51 = vpack.c.bf16 %v84_v50, %v83_v49  ;;  %v103_v54 = vpack.c.bf16 %v86_v53, %v85_v52  ;;  %v87_v55 = vld [vmem:[%s8595_s0 + $0xf0] sm:$0xff]  ;;  %v88_v56 = vld [vmem:[%s8595_s0 + $0xf8] sm:$0xf]  ;;  %v435_v58 = vld [vmem:[%s8595_s0 + $0x1] sm:$0xff] }
   0xf   :  { %559 = vmatpush1.bf16.msra.mxu0 %v6264_v12  ;;  %v104_v57 = vpack.c.bf16 %v88_v56, %v87_v55  ;;  %v436_v59 = vld [vmem:[%s8595_s0 + $0x9] sm:$0xff]  ;;  %v6272_v62 = vld [vmem:[%s8594_s1 + $0x54] ss:$8 sps:$4 sm:$0xff]   ;;  %v439_v5 = vld [vmem:[%s8595_s0 + $0x21] sm:$0xff] }
  0x10   :  { %934 = vmatprep.subr.bf16.mxu0 %v6269_v15  ;;  %v467_v60 = vpack.c.bf16 %v436_v59, %v435_v58  ;;  %v6267_v61 = vld [vmem:[%s8594_s1 + $0x40] ss:$8 sps:$4 sm:$0xff]   ;;  %v437_v63 = vld [vmem:[%s8595_s0 + $0x11] sm:$0xff]  ;;  %v6275_v3 = vld [vmem:[%s8594_s1 + $0x64] ss:$8 sps:$4 sm:$0xff]  }
  0x11   :  { %v438_v0 = vld [vmem:[%s8595_s0 + $0x19] sm:$0xff]  ;;  %v440_v6 = vld [vmem:[%s8595_s0 + $0x29] sm:$0xff]  ;;  %v441_v8 = vld [vmem:[%s8595_s0 + $0x31] sm:$0xff] }
  0x12   :  { %5103 = vmatmul.mubr.msk.bf16.gmra.mrb[4].mxu0 %vm129_vm0, %v90_v14  ;;  %v6270_v2 = vld [vmem:[%s8594_s1 + $0x50] ss:$8 sps:$4 sm:$0xff]   ;;  %v468_v4 = vpack.c.bf16 %v438_v0, %v437_v63  ;;  %v469_v7 = vpack.c.bf16 %v440_v6, %v439_v5  ;;  %v443_v11 = vld [vmem:[%s8595_s0 + $0x41] sm:$0xff]  ;;  %vm7371_vm4 = vmpackc.low %vm2082_vm2, %vm6514_vm3 }
  0x13   :  { %230 = vmatprep.mubr.bf16.mxu0 %v8608_v1  ;;  %v442_v9 = vld [vmem:[%s8595_s0 + $0x39] sm:$0xff]  ;;  %v444_v12 = vld [vmem:[%s8595_s0 + $0x49] sm:$0xff]  ;;  %v445_v14 = vld [vmem:[%s8595_s0 + $0x51] sm:$0xff] }
  0x14   :  { %v470_v10 = vpack.c.bf16 %v442_v9, %v441_v8  ;;  %v471_v13 = vpack.c.bf16 %v444_v12, %v443_v11  ;;  %v446_v15 = vld [vmem:[%s8595_s0 + $0x59] sm:$0xff]  ;;  %v447_v17 = vld [vmem:[%s8595_s0 + $0x61] sm:$0xff]  ;;  %v449_v20 = vld [vmem:[%s8595_s0 + $0x71] sm:$0xff] }
  0x15   :  { %v472_v16 = vpack.c.bf16 %v446_v15, %v445_v14  ;;  %v451_v23 = vld [vmem:[%s8595_s0 + $0x81] sm:$0xff]  ;;  %v453_v26 = vld [vmem:[%s8595_s0 + $0x91] sm:$0xff] }
  0x16   :  { %v455_v29 = vld [vmem:[%s8595_s0 + $0xa1] sm:$0xff]  ;;  %v457_v32 = vld [vmem:[%s8595_s0 + $0xb1] sm:$0xff] }
  0x17   :  { %v459_v35 = vld [vmem:[%s8595_s0 + $0xc1] sm:$0xff]  ;;  %v461_v38 = vld [vmem:[%s8595_s0 + $0xd1] sm:$0xff] }
  0x18   :  { %v463_v41 = vld [vmem:[%s8595_s0 + $0xe1] sm:$0xff]  ;;  %v465_v44 = vld [vmem:[%s8595_s0 + $0xf1] sm:$0xff] }
  0x19   :  { %v813_v47 = vld [vmem:[%s8595_s0 + $0x2] sm:$0xff]  ;;  %v815_v52 = vld [vmem:[%s8595_s0 + $0x12] sm:$0xff]  ;;  %v816_v53 = vld [vmem:[%s8595_s0 + $0x1a] sm:$0xff] }
  0x1a   :  { %5104 = vmatmul.mubr.msk.bf16.gmra.mrb[8].mxu0 %vm129_vm0, %v91_v18  ;;  %v448_v18 = vld [vmem:[%s8595_s0 + $0x69] sm:$0xff]  ;;  %v846_v56 = vpack.c.bf16 %v816_v53, %v815_v52  ;;  %v827_v9 = vld [vmem:[%s8595_s0 + $0x72] sm:$0xff] }
  0x1b   :  { %240 = vmatprep.mubr.bf16.mxu0 %v8608_v1  ;;  %v473_v19 = vpack.c.bf16 %v448_v18, %v447_v17  ;;  %v6273_v50 = vld [vmem:[%s8594_s1 + $0x60] ss:$8 sps:$4 sm:$0xff]   ;;  %v6281_v55 = vld [vmem:[%s8594_s1 + $0x84] ss:$8 sps:$4 sm:$0xff]   ;;  %v831_v15 = vld [vmem:[%s8595_s0 + $0x92] sm:$0xff] }
  0x1c   :  { %v818_v58 = vld [vmem:[%s8595_s0 + $0x2a] sm:$0xff]  ;;  %v821_v63 = vld [vmem:[%s8595_s0 + $0x42] sm:$0xff] }
  0x1d   :  { %v822_v0 = vld [vmem:[%s8595_s0 + $0x4a] sm:$0xff]  ;;  %v825_v6 = vld [vmem:[%s8595_s0 + $0x62] sm:$0xff] }
  0x1e   :  { %v829_v12 = vld [vmem:[%s8595_s0 + $0x82] sm:$0xff]  ;;  %v1200_v52 = vld [vmem:[%s8595_s0 + $0x4b] sm:$0xff] }
  0x1f   :  { %v833_v18 = vld [vmem:[%s8595_s0 + $0xa2] sm:$0xff] }
  0x22   :  { %5105 = vmatmul.mubr.msk.bf16.gmra.mrb[12].mxu0 %vm129_vm0, %v92_v21  ;;  %v450_v21 = vld [vmem:[%s8595_s0 + $0x79] sm:$0xff] }
  0x23   :  { %250 = vmatprep.mubr.bf16.mxu0 %v8608_v1  ;;  %v474_v22 = vpack.c.bf16 %v450_v21, %v449_v20  ;;  %v835_v21 = vld [vmem:[%s8595_s0 + $0xb2] sm:$0xff] }
  0x2a   :  { %5106 = vmatmul.mubr.msk.bf16.gmra.mrb[16].mxu0 %vm129_vm0, %v93_v24  ;;  %v452_v24 = vld [vmem:[%s8595_s0 + $0x89] sm:$0xff] }
  0x2b   :  { %260 = vmatprep.mubr.bf16.mxu0 %v8608_v1  ;;  %v475_v25 = vpack.c.bf16 %v452_v24, %v451_v23  ;;  %v837_v24 = vld [vmem:[%s8595_s0 + $0xc2] sm:$0xff] }
  0x32   :  { %5107 = vmatmul.mubr.msk.bf16.gmra.mrb[20].mxu0 %vm129_vm0, %v94_v27  ;;  %v454_v27 = vld [vmem:[%s8595_s0 + $0x99] sm:$0xff] }
  0x33   :  { %270 = vmatprep.mubr.bf16.mxu0 %v8608_v1  ;;  %v476_v28 = vpack.c.bf16 %v454_v27, %v453_v26  ;;  %v839_v27 = vld [vmem:[%s8595_s0 + $0xd2] sm:$0xff] }
  0x3a   :  { %5108 = vmatmul.mubr.msk.bf16.gmra.mrb[24].mxu0 %vm129_vm0, %v95_v30  ;;  %v456_v30 = vld [vmem:[%s8595_s0 + $0xa9] sm:$0xff] }
  0x3b   :  { %280 = vmatprep.mubr.bf16.mxu0 %v8608_v1  ;;  %v477_v31 = vpack.c.bf16 %v456_v30, %v455_v29  ;;  %v841_v30 = vld [vmem:[%s8595_s0 + $0xe2] sm:$0xff] }
  0x42   :  { %5109 = vmatmul.mubr.msk.bf16.gmra.mrb[28].mxu0 %vm129_vm0, %v96_v33  ;;  %v458_v33 = vld [vmem:[%s8595_s0 + $0xb9] sm:$0xff] }
  0x43   :  { %290 = vmatprep.mubr.bf16.mxu0 %v8608_v1  ;;  %v478_v34 = vpack.c.bf16 %v458_v33, %v457_v32  ;;  %v843_v33 = vld [vmem:[%s8595_s0 + $0xf2] sm:$0xff] }
  0x4a   :  { %5110 = vmatmul.mubr.msk.bf16.gmra.mrb[32].mxu0 %vm129_vm0, %v97_v36  ;;  %v460_v36 = vld [vmem:[%s8595_s0 + $0xc9] sm:$0xff] }
  0x4b   :  { %300 = vmatprep.mubr.bf16.mxu0 %v8608_v1  ;;  %v479_v37 = vpack.c.bf16 %v460_v36, %v459_v35  ;;  %v1191_v36 = vld [vmem:[%s8595_s0 + $0x3] sm:$0xff] }
  0x52   :  { %5111 = vmatmul.mubr.msk.bf16.gmra.mrb[36].mxu0 %vm129_vm0, %v98_v39  ;;  %v462_v39 = vld [vmem:[%s8595_s0 + $0xd9] sm:$0xff] }
  0x53   :  { %310 = vmatprep.mubr.bf16.mxu0 %v8608_v1  ;;  %v480_v40 = vpack.c.bf16 %v462_v39, %v461_v38  ;;  %v6279_v39 = vld [vmem:[%s8594_s1 + $0x80] ss:$8 sps:$4 sm:$0xff]  }
  0x5a   :  { %5112 = vmatmul.mubr.msk.bf16.gmra.mrb[40].mxu0 %vm129_vm0, %v99_v42  ;;  %v464_v42 = vld [vmem:[%s8595_s0 + $0xe9] sm:$0xff] }
  0x5b   :  { %320 = vmatprep.mubr.bf16.mxu0 %v8608_v1  ;;  %v481_v43 = vpack.c.bf16 %v464_v42, %v463_v41  ;;  %v1193_v41 = vld [vmem:[%s8595_s0 + $0x13] sm:$0xff]  ;;  %v1194_v42 = vld [vmem:[%s8595_s0 + $0x1b] sm:$0xff] }
  0x62   :  { %5113 = vmatmul.mubr.msk.bf16.gmra.mrb[44].mxu0 %vm129_vm0, %v100_v45  ;;  %v466_v45 = vld [vmem:[%s8595_s0 + $0xf9] sm:$0xf] }
  0x63   :  { %330 = vmatprep.mubr.bf16.mxu0 %v8608_v1  ;;  %v482_v46 = vpack.c.bf16 %v466_v45, %v465_v44  ;;  %v1224_v44 = vpack.c.bf16 %v1194_v42, %v1193_v41  ;;  %v1195_v45 = vld [vmem:[%s8595_s0 + $0x23] sm:$0xff] }
  0x64   :  { %v1581_v42 = vld [vmem:[%s8595_s0 + $0x64] sm:$0xff] }
  0x6a   :  { %5114 = vmatmul.mubr.msk.bf16.gmra.mrb[48].mxu0 %vm129_vm0, %v101_v48  ;;  %v814_v48 = vld [vmem:[%s8595_s0 + $0xa] sm:$0xff] }
  0x6b   :  { %340 = vmatprep.mubr.bf16.mxu0 %v8608_v1  ;;  %v845_v49 = vpack.c.bf16 %v814_v48, %v813_v47  ;;  %v1197_v48 = vld [vmem:[%s8595_s0 + $0x33] sm:$0xff] }
  0x72   :  { %5115 = vmatmul.mubr.msk.bf16.gmra.mrb[52].mxu0 %vm129_vm0, %v102_v51  ;;  %v6278_v51 = vld [vmem:[%s8594_s1 + $0x74] ss:$8 sps:$4 sm:$0xff]  }
  0x73   :  { %350 = vmatprep.mubr.bf16.mxu0 %v8608_v1 }
  0x7a   :  { %5116 = vmatmul.mubr.msk.bf16.gmra.mrb[56].mxu0 %vm129_vm0, %v103_v54  ;;  %v6276_v54 = vld [vmem:[%s8594_s1 + $0x70] ss:$8 sps:$4 sm:$0xff]  }
  0x7b   :  { %360 = vmatprep.mubr.bf16.mxu0 %v8608_v1 }
  0x82   :  { %5117 = vmatmul.mubr.msk.bf16.gmra.mrb[60].mxu0 %vm129_vm0, %v104_v57  ;;  %v817_v57 = vld [vmem:[%s8595_s0 + $0x22] sm:$0xff] }
  0x83   :  { %588 = vmatprep.mubr.bf16.mxu0 %v8608_v1  ;;  %v847_v59 = vpack.c.bf16 %v818_v58, %v817_v57  ;;  %v1203_v57 = vld [vmem:[%s8595_s0 + $0x63] sm:$0xff]  ;;  %v1204_v58 = vld [vmem:[%s8595_s0 + $0x6b] sm:$0xff] }
  0x8a   :  { %5126 = vmatmul.mubr.msk.bf16.vlgmr.msra.gmra.mrb[0].mxu0 %vm129_vm0, %v467_v60  ;;  %v819_v60 = vld [vmem:[%s8595_s0 + $0x32] sm:$0xff] }
  0x8b   :  { %935 = vmatpush1.bf16.msra.mxu0 %v6267_v61  ;;  %598 = vmatprep.mubr.bf16.mxu0 %v8608_v1  ;;  %v820_v61 = vld [vmem:[%s8595_s0 + $0x3a] sm:$0xff] }
  0x8c   :  { %936 = vmatprep.subr.bf16.mxu0 %v6272_v62  ;;  %v848_v62 = vpack.c.bf16 %v820_v61, %v819_v60  ;;  %v1205_v60 = vld [vmem:[%s8595_s0 + $0x73] sm:$0xff]  ;;  %v1206_v61 = vld [vmem:[%s8595_s0 + $0x7b] sm:$0xff] }
  0x8f   :  { %937 = vmatpush1.bf16.msra.mxu0 %v6270_v2  ;;  %v849_v2 = vpack.c.bf16 %v822_v0, %v821_v63  ;;  %v1207_v63 = vld [vmem:[%s8595_s0 + $0x83] sm:$0xff]  ;;  %v1208_v0 = vld [vmem:[%s8595_s0 + $0x8b] sm:$0xff] }
  0x90   :  { %1312 = vmatprep.subr.bf16.mxu0 %v6275_v3  ;;  %v823_v3 = vld [vmem:[%s8595_s0 + $0x52] sm:$0xff] }
  0x92   :  { %5127 = vmatmul.mubr.msk.bf16.gmra.mrb[4].mxu0 %vm129_vm0, %v468_v4  ;;  %v824_v4 = vld [vmem:[%s8595_s0 + $0x5a] sm:$0xff] }
  0x93   :  { %608 = vmatprep.mubr.bf16.mxu0 %v8608_v1  ;;  %v850_v5 = vpack.c.bf16 %v824_v4, %v823_v3  ;;  %v1209_v3 = vld [vmem:[%s8595_s0 + $0x93] sm:$0xff]  ;;  %v1210_v4 = vld [vmem:[%s8595_s0 + $0x9b] sm:$0xff] }
  0x9a   :  { %5128 = vmatmul.mubr.msk.bf16.gmra.mrb[8].mxu0 %vm129_vm0, %v469_v7  ;;  %v826_v7 = vld [vmem:[%s8595_s0 + $0x6a] sm:$0xff] }
  0x9b   :  { %618 = vmatprep.mubr.bf16.mxu0 %v8608_v1  ;;  %v851_v8 = vpack.c.bf16 %v826_v7, %v825_v6  ;;  %v1211_v6 = vld [vmem:[%s8595_s0 + $0xa3] sm:$0xff]  ;;  %v1212_v7 = vld [vmem:[%s8595_s0 + $0xab] sm:$0xff] }
  0xa2   :  { %5129 = vmatmul.mubr.msk.bf16.gmra.mrb[12].mxu0 %vm129_vm0, %v470_v10  ;;  %v828_v10 = vld [vmem:[%s8595_s0 + $0x7a] sm:$0xff] }
  0xa3   :  { %628 = vmatprep.mubr.bf16.mxu0 %v8608_v1  ;;  %v852_v11 = vpack.c.bf16 %v828_v10, %v827_v9  ;;  %v1213_v9 = vld [vmem:[%s8595_s0 + $0xb3] sm:$0xff]  ;;  %v1214_v10 = vld [vmem:[%s8595_s0 + $0xbb] sm:$0xff] }
  0xaa   :  { %5130 = vmatmul.mubr.msk.bf16.gmra.mrb[16].mxu0 %vm129_vm0, %v471_v13  ;;  %v830_v13 = vld [vmem:[%s8595_s0 + $0x8a] sm:$0xff] }
  0xab   :  { %638 = vmatprep.mubr.bf16.mxu0 %v8608_v1  ;;  %v853_v14 = vpack.c.bf16 %v830_v13, %v829_v12  ;;  %v1215_v12 = vld [vmem:[%s8595_s0 + $0xc3] sm:$0xff]  ;;  %v1216_v13 = vld [vmem:[%s8595_s0 + $0xcb] sm:$0xff] }
  0xb2   :  { %5131 = vmatmul.mubr.msk.bf16.gmra.mrb[20].mxu0 %vm129_vm0, %v472_v16  ;;  %v832_v16 = vld [vmem:[%s8595_s0 + $0x9a] sm:$0xff] }
  0xb3   :  { %648 = vmatprep.mubr.bf16.mxu0 %v8608_v1  ;;  %v854_v17 = vpack.c.bf16 %v832_v16, %v831_v15  ;;  %v1217_v15 = vld [vmem:[%s8595_s0 + $0xd3] sm:$0xff]  ;;  %v1218_v16 = vld [vmem:[%s8595_s0 + $0xdb] sm:$0xff] }
  0xba   :  { %5132 = vmatmul.mubr.msk.bf16.gmra.mrb[24].mxu0 %vm129_vm0, %v473_v19  ;;  %v834_v19 = vld [vmem:[%s8595_s0 + $0xaa] sm:$0xff] }
  0xbb   :  { %658 = vmatprep.mubr.bf16.mxu0 %v8608_v1  ;;  %v855_v20 = vpack.c.bf16 %v834_v19, %v833_v18  ;;  %v1219_v18 = vld [vmem:[%s8595_s0 + $0xe3] sm:$0xff]  ;;  %v1220_v19 = vld [vmem:[%s8595_s0 + $0xeb] sm:$0xff] }
  0xc2   :  { %5133 = vmatmul.mubr.msk.bf16.gmra.mrb[28].mxu0 %vm129_vm0, %v474_v22  ;;  %v836_v22 = vld [vmem:[%s8595_s0 + $0xba] sm:$0xff] }
  0xc3   :  { %668 = vmatprep.mubr.bf16.mxu0 %v8608_v1  ;;  %v856_v23 = vpack.c.bf16 %v836_v22, %v835_v21  ;;  %v1221_v21 = vld [vmem:[%s8595_s0 + $0xf3] sm:$0xff]  ;;  %v1222_v22 = vld [vmem:[%s8595_s0 + $0xfb] sm:$0xf] }
  0xca   :  { %5134 = vmatmul.mubr.msk.bf16.gmra.mrb[32].mxu0 %vm129_vm0, %v475_v25  ;;  %v838_v25 = vld [vmem:[%s8595_s0 + $0xca] sm:$0xff] }
  0xcb   :  { %678 = vmatprep.mubr.bf16.mxu0 %v8608_v1  ;;  %v857_v26 = vpack.c.bf16 %v838_v25, %v837_v24  ;;  %v1569_v24 = vld [vmem:[%s8595_s0 + $0x4] sm:$0xff]  ;;  %v1570_v25 = vld [vmem:[%s8595_s0 + $0xc] sm:$0xff] }
  0xd2   :  { %5135 = vmatmul.mubr.msk.bf16.gmra.mrb[36].mxu0 %vm129_vm0, %v476_v28  ;;  %v840_v28 = vld [vmem:[%s8595_s0 + $0xda] sm:$0xff] }
  0xd3   :  { %688 = vmatprep.mubr.bf16.mxu0 %v8608_v1  ;;  %v858_v29 = vpack.c.bf16 %v840_v28, %v839_v27  ;;  %v1571_v27 = vld [vmem:[%s8595_s0 + $0x14] sm:$0xff]  ;;  %v1572_v28 = vld [vmem:[%s8595_s0 + $0x1c] sm:$0xff] }
  0xda   :  { %5136 = vmatmul.mubr.msk.bf16.gmra.mrb[40].mxu0 %vm129_vm0, %v477_v31  ;;  %v842_v31 = vld [vmem:[%s8595_s0 + $0xea] sm:$0xff] }
  0xdb   :  { %698 = vmatprep.mubr.bf16.mxu0 %v8608_v1  ;;  %v859_v32 = vpack.c.bf16 %v842_v31, %v841_v30  ;;  %v1573_v30 = vld [vmem:[%s8595_s0 + $0x24] sm:$0xff]  ;;  %v1574_v31 = vld [vmem:[%s8595_s0 + $0x2c] sm:$0xff] }
  0xe2   :  { %5137 = vmatmul.mubr.msk.bf16.gmra.mrb[44].mxu0 %vm129_vm0, %v478_v34  ;;  %v844_v34 = vld [vmem:[%s8595_s0 + $0xfa] sm:$0xf] }
  0xe3   :  { %708 = vmatprep.mubr.bf16.mxu0 %v8608_v1  ;;  %v860_v35 = vpack.c.bf16 %v844_v34, %v843_v33  ;;  %v1575_v33 = vld [vmem:[%s8595_s0 + $0x34] sm:$0xff]  ;;  %v1576_v34 = vld [vmem:[%s8595_s0 + $0x3c] sm:$0xff] }
  0xea   :  { %5138 = vmatmul.mubr.msk.bf16.gmra.mrb[48].mxu0 %vm129_vm0, %v479_v37  ;;  %v1192_v37 = vld [vmem:[%s8595_s0 + $0xb] sm:$0xff] }
  0xeb   :  { %718 = vmatprep.mubr.bf16.mxu0 %v8608_v1  ;;  %v1223_v38 = vpack.c.bf16 %v1192_v37, %v1191_v36  ;;  %v1577_v36 = vld [vmem:[%s8595_s0 + $0x44] sm:$0xff]  ;;  %v1578_v37 = vld [vmem:[%s8595_s0 + $0x4c] sm:$0xff] }
  0xf2   :  { %5139 = vmatmul.mubr.msk.bf16.gmra.mrb[52].mxu0 %vm129_vm0, %v480_v40  ;;  %v6284_v40 = vld [vmem:[%s8594_s1 + $0x94] ss:$8 sps:$4 sm:$0xff]  }
  0xf3   :  { %728 = vmatprep.mubr.bf16.mxu0 %v8608_v1 }
  0xfa   :  { %5140 = vmatmul.mubr.msk.bf16.gmra.mrb[56].mxu0 %vm129_vm0, %v481_v43  ;;  %v6282_v43 = vld [vmem:[%s8594_s1 + $0x90] ss:$8 sps:$4 sm:$0xff]  }
  0xfb   :  { %738 = vmatprep.mubr.bf16.mxu0 %v8608_v1 }
 0x102   :  { %5141 = vmatmul.mubr.msk.bf16.gmra.mrb[60].mxu0 %vm129_vm0, %v482_v46  ;;  %v1196_v46 = vld [vmem:[%s8595_s0 + $0x2b] sm:$0xff] }
 0x103   :  { %966 = vmatprep.mubr.bf16.mxu0 %v8608_v1  ;;  %v1225_v47 = vpack.c.bf16 %v1196_v46, %v1195_v45  ;;  %v1583_v45 = vld [vmem:[%s8595_s0 + $0x74] sm:$0xff]  ;;  %v1584_v46 = vld [vmem:[%s8595_s0 + $0x7c] sm:$0xff] }
 0x10a   :  { %5150 = vmatmul.mubr.msk.bf16.vlgmr.msra.gmra.mrb[0].mxu0 %vm129_vm0, %v845_v49  ;;  %v1198_v49 = vld [vmem:[%s8595_s0 + $0x3b] sm:$0xff] }
 0x10b   :  { %1313 = vmatpush1.bf16.msra.mxu0 %v6273_v50  ;;  %976 = vmatprep.mubr.bf16.mxu0 %v8608_v1  ;;  %v1226_v50 = vpack.c.bf16 %v1198_v49, %v1197_v48  ;;  %v1585_v48 = vld [vmem:[%s8595_s0 + $0x84] sm:$0xff]  ;;  %v1586_v49 = vld [vmem:[%s8595_s0 + $0x8c] sm:$0xff] }
 0x10c   :  { %1314 = vmatprep.subr.bf16.mxu0 %v6278_v51  ;;  %v1199_v51 = vld [vmem:[%s8595_s0 + $0x43] sm:$0xff] }
 0x10d   :  { %v1227_v53 = vpack.c.bf16 %v1200_v52, %v1199_v51  ;;  %v1587_v51 = vld [vmem:[%s8595_s0 + $0x94] sm:$0xff]  ;;  %v1588_v52 = vld [vmem:[%s8595_s0 + $0x9c] sm:$0xff] }
 0x10f   :  { %1315 = vmatpush1.bf16.msra.mxu0 %v6276_v54  ;;  %v1201_v54 = vld [vmem:[%s8595_s0 + $0x53] sm:$0xff] }
 0x110   :  { %1690 = vmatprep.subr.bf16.mxu0 %v6281_v55  ;;  %v1202_v55 = vld [vmem:[%s8595_s0 + $0x5b] sm:$0xff] }
 0x112   :  { %5151 = vmatmul.mubr.msk.bf16.gmra.mrb[4].mxu0 %vm129_vm0, %v846_v56  ;;  %v1228_v56 = vpack.c.bf16 %v1202_v55, %v1201_v54  ;;  %v1589_v54 = vld [vmem:[%s8595_s0 + $0xa4] sm:$0xff]  ;;  %v1590_v55 = vld [vmem:[%s8595_s0 + $0xac] sm:$0xff] }
 0x113   :  { %986 = vmatprep.mubr.bf16.mxu0 %v8608_v1 }
 0x11a   :  { %5152 = vmatmul.mubr.msk.bf16.gmra.mrb[8].mxu0 %vm129_vm0, %v847_v59  ;;  %v1229_v59 = vpack.c.bf16 %v1204_v58, %v1203_v57  ;;  %v1591_v57 = vld [vmem:[%s8595_s0 + $0xb4] sm:$0xff]  ;;  %v1592_v58 = vld [vmem:[%s8595_s0 + $0xbc] sm:$0xff] }
 0x11b   :  { %996 = vmatprep.mubr.bf16.mxu0 %v8608_v1 }
 0x122   :  { %5153 = vmatmul.mubr.msk.bf16.gmra.mrb[12].mxu0 %vm129_vm0, %v848_v62  ;;  %v1230_v62 = vpack.c.bf16 %v1206_v61, %v1205_v60  ;;  %v1593_v60 = vld [vmem:[%s8595_s0 + $0xc4] sm:$0xff]  ;;  %v1594_v61 = vld [vmem:[%s8595_s0 + $0xcc] sm:$0xff] }
 0x123   :  { %1006 = vmatprep.mubr.bf16.mxu0 %v8608_v1 }
 0x12a   :  { %5154 = vmatmul.mubr.msk.bf16.gmra.mrb[16].mxu0 %vm129_vm0, %v849_v2  ;;  %v1231_v2 = vpack.c.bf16 %v1208_v0, %v1207_v63  ;;  %v1595_v63 = vld [vmem:[%s8595_s0 + $0xd4] sm:$0xff]  ;;  %v1596_v0 = vld [vmem:[%s8595_s0 + $0xdc] sm:$0xff] }
 0x12b   :  { %1016 = vmatprep.mubr.bf16.mxu0 %v8608_v1 }
 0x132   :  { %5155 = vmatmul.mubr.msk.bf16.gmra.mrb[20].mxu0 %vm129_vm0, %v850_v5  ;;  %v1232_v5 = vpack.c.bf16 %v1210_v4, %v1209_v3  ;;  %v1597_v3 = vld [vmem:[%s8595_s0 + $0xe4] sm:$0xff]  ;;  %v1598_v4 = vld [vmem:[%s8595_s0 + $0xec] sm:$0xff] }
 0x133   :  { %1026 = vmatprep.mubr.bf16.mxu0 %v8608_v1 }
 0x13a   :  { %5156 = vmatmul.mubr.msk.bf16.gmra.mrb[24].mxu0 %vm129_vm0, %v851_v8  ;;  %v1233_v8 = vpack.c.bf16 %v1212_v7, %v1211_v6  ;;  %v1599_v6 = vld [vmem:[%s8595_s0 + $0xf4] sm:$0xff]  ;;  %v1600_v7 = vld [vmem:[%s8595_s0 + $0xfc] sm:$0xf] }
 0x13b   :  { %1036 = vmatprep.mubr.bf16.mxu0 %v8608_v1 }
 0x142   :  { %5157 = vmatmul.mubr.msk.bf16.gmra.mrb[28].mxu0 %vm129_vm0, %v852_v11  ;;  %v1234_v11 = vpack.c.bf16 %v1214_v10, %v1213_v9  ;;  %v47_v9 = vlaneseq }
 0x143   :  { %1046 = vmatprep.mubr.bf16.mxu0 %v8608_v1 }
 0x144   :  { %v7287_v10 = vshrl.u32 %v47_v9, 7 }
 0x146   :  { %8628 = vst [vmem:[#allocation4_spill] sm:$0xff] %v7287_v10 }
 0x14a   :  { %5158 = vmatmul.mubr.msk.bf16.gmra.mrb[32].mxu0 %vm129_vm0, %v853_v14  ;;  %v1235_v14 = vpack.c.bf16 %v1216_v13, %v1215_v12  ;;  %v45_v12 = vld [vmem:[%s8596_s2] sm:$0x3]  ;;  %v8610_v13 = vsub.s32 1, %v7287_v10 }
 0x14b   :  { %1056 = vmatprep.mubr.bf16.mxu0 %v8608_v1 }
 0x152   :  { %5159 = vmatmul.mubr.msk.bf16.gmra.mrb[36].mxu0 %vm129_vm0, %v854_v17  ;;  %v1236_v17 = vpack.c.bf16 %v1218_v16, %v1217_v15  ;;  %v7300_v15 = vrot.slane %v45_v12, %v8610_v13 }
 0x153   :  { %1066 = vmatprep.mubr.bf16.mxu0 %v8608_v1 }
 0x15a   :  { %5160 = vmatmul.mubr.msk.bf16.gmra.mrb[40].mxu0 %vm129_vm0, %v855_v20  ;;  %v1237_v20 = vpack.c.bf16 %v1220_v19, %v1219_v18 }
 0x15b   :  { %1076 = vmatprep.mubr.bf16.mxu0 %v8608_v1 }
 0x162   :  { %5161 = vmatmul.mubr.msk.bf16.gmra.mrb[44].mxu0 %vm129_vm0, %v856_v23  ;;  %v1238_v23 = vpack.c.bf16 %v1222_v22, %v1221_v21 }
 0x163   :  { %1086 = vmatprep.mubr.bf16.mxu0 %v8608_v1 }
 0x16a   :  { %5162 = vmatmul.mubr.msk.bf16.gmra.mrb[48].mxu0 %vm129_vm0, %v857_v26  ;;  %v1601_v26 = vpack.c.bf16 %v1570_v25, %v1569_v24  ;;  %v2012_v24 = vld [vmem:[%s8597_s3 + $0x8] sm:$0xff] }
 0x16b   :  { %1096 = vmatprep.mubr.bf16.mxu0 %v8608_v1  ;;  %5216 = vmatprep.mubr.msk.f32.mxu1 %vm2039_vm1, %v2012_v24 }
 0x172   :  { %5163 = vmatmul.mubr.msk.bf16.gmra.mrb[52].mxu0 %vm129_vm0, %v858_v29  ;;  %v1602_v29 = vpack.c.bf16 %v1572_v28, %v1571_v27 }
 0x173   :  { %1106 = vmatprep.mubr.bf16.mxu0 %v8608_v1 }
 0x17a   :  { %5164 = vmatmul.mubr.msk.bf16.gmra.mrb[56].mxu0 %vm129_vm0, %v859_v32  ;;  %v1603_v32 = vpack.c.bf16 %v1574_v31, %v1573_v30 }
 0x17b   :  { %1116 = vmatprep.mubr.bf16.mxu0 %v8608_v1 }
 0x182   :  { %5165 = vmatmul.mubr.msk.bf16.gmra.mrb[60].mxu0 %vm129_vm0, %v860_v35  ;;  %v1604_v35 = vpack.c.bf16 %v1576_v34, %v1575_v33 }
 0x183   :  { %1344 = vmatprep.mubr.bf16.mxu0 %v8608_v1 }
 0x18a   :  { %5174 = vmatmul.mubr.msk.bf16.vlgmr.msra.gmra.mrb[0].mxu0 %vm129_vm0, %v1223_v38  ;;  %v1605_v38 = vpack.c.bf16 %v1578_v37, %v1577_v36 }
 0x18b   :  { %1691 = vmatpush1.bf16.msra.mxu0 %v6279_v39  ;;  %1354 = vmatprep.mubr.bf16.mxu0 %v8608_v1  ;;  %v1579_v39 = vld [vmem:[%s8595_s0 + $0x54] sm:$0xff] }
 0x18c   :  { %1692 = vmatprep.subr.bf16.mxu0 %v6284_v40  ;;  %v1580_v40 = vld [vmem:[%s8595_s0 + $0x5c] sm:$0xff] }
 0x18d   :  { %v1606_v41 = vpack.c.bf16 %v1580_v40, %v1579_v39 }
 0x18f   :  { %1693 = vmatpush1.bf16.msra.mxu0 %v6282_v43  ;;  %v1582_v43 = vld [vmem:[%s8595_s0 + $0x6c] sm:$0xff] }
 0x192   :  { %5175 = vmatmul.mubr.msk.bf16.gmra.mrb[4].mxu0 %vm129_vm0, %v1224_v44  ;;  %v1607_v44 = vpack.c.bf16 %v1582_v43, %v1581_v42 }
 0x193   :  { %1364 = vmatprep.mubr.bf16.mxu0 %v8608_v1 }
 0x19a   :  { %5176 = vmatmul.mubr.msk.bf16.gmra.mrb[8].mxu0 %vm129_vm0, %v1225_v47  ;;  %v1608_v47 = vpack.c.bf16 %v1584_v46, %v1583_v45 }
 0x19b   :  { %1374 = vmatprep.mubr.bf16.mxu0 %v8608_v1 }
 0x1a2   :  { %5177 = vmatmul.mubr.msk.bf16.gmra.mrb[12].mxu0 %vm129_vm0, %v1226_v50  ;;  %v1609_v50 = vpack.c.bf16 %v1586_v49, %v1585_v48 }
 0x1a3   :  { %1384 = vmatprep.mubr.bf16.mxu0 %v8608_v1 }
 0x1aa   :  { %5178 = vmatmul.mubr.msk.bf16.gmra.mrb[16].mxu0 %vm129_vm0, %v1227_v53  ;;  %v1610_v53 = vpack.c.bf16 %v1588_v52, %v1587_v51 }
 0x1ab   :  { %1394 = vmatprep.mubr.bf16.mxu0 %v8608_v1 }
 0x1b2   :  { %5179 = vmatmul.mubr.msk.bf16.gmra.mrb[20].mxu0 %vm129_vm0, %v1228_v56  ;;  %v1611_v56 = vpack.c.bf16 %v1590_v55, %v1589_v54 }
 0x1b3   :  { %1404 = vmatprep.mubr.bf16.mxu0 %v8608_v1 }
 0x1ba   :  { %5180 = vmatmul.mubr.msk.bf16.gmra.mrb[24].mxu0 %vm129_vm0, %v1229_v59  ;;  %v1612_v59 = vpack.c.bf16 %v1592_v58, %v1591_v57 }
 0x1bb   :  { %1414 = vmatprep.mubr.bf16.mxu0 %v8608_v1 }
 0x1c2   :  { %5181 = vmatmul.mubr.msk.bf16.gmra.mrb[28].mxu0 %vm129_vm0, %v1230_v62  ;;  %v1613_v62 = vpack.c.bf16 %v1594_v61, %v1593_v60 }
 0x1c3   :  { %1424 = vmatprep.mubr.bf16.mxu0 %v8608_v1 }
 0x1ca   :  { %5182 = vmatmul.mubr.msk.bf16.gmra.mrb[32].mxu0 %vm129_vm0, %v1231_v2  ;;  %v1614_v2 = vpack.c.bf16 %v1596_v0, %v1595_v63 }
 0x1cb   :  { %1434 = vmatprep.mubr.bf16.mxu0 %v8608_v1 }
 0x1d2   :  { %5183 = vmatmul.mubr.msk.bf16.gmra.mrb[36].mxu0 %vm129_vm0, %v1232_v5  ;;  %v1615_v5 = vpack.c.bf16 %v1598_v4, %v1597_v3 }
 0x1d3   :  { %1444 = vmatprep.mubr.bf16.mxu0 %v8608_v1 }
 0x1da   :  { %5184 = vmatmul.mubr.msk.bf16.gmra.mrb[40].mxu0 %vm129_vm0, %v1233_v8  ;;  %v1616_v8 = vpack.c.bf16 %v1600_v7, %v1599_v6 }
 0x1db   :  { %1454 = vmatprep.mubr.bf16.mxu0 %v8608_v1 }
 0x1e2   :  { %5185 = vmatmul.mubr.msk.bf16.gmra.mrb[44].mxu0 %vm129_vm0, %v1234_v11  ;;  %v8611_v11 = vsub.s32 0, %v7287_v10 }
 0x1e3   :  { %1464 = vmatprep.mubr.bf16.mxu0 %v8608_v1 }
 0x1ea   :  { %5186 = vmatmul.mubr.msk.bf16.gmra.mrb[48].mxu0 %vm129_vm0, %v1235_v14  ;;  %v7296_v14 = vrot.slane %v45_v12, %v8611_v11 }
 0x1eb   :  { %1474 = vmatprep.mubr.bf16.mxu0 %v8608_v1 }
 0x1f2   :  { %5187 = vmatmul.mubr.msk.bf16.gmra.mrb[52].mxu0 %vm129_vm0, %v1236_v17 }
 0x1f3   :  { %1484 = vmatprep.mubr.bf16.mxu0 %v8608_v1 }
 0x1fa   :  { %5188 = vmatmul.mubr.msk.bf16.gmra.mrb[56].mxu0 %vm129_vm0, %v1237_v20 }
 0x1fb   :  { %1494 = vmatprep.mubr.bf16.mxu0 %v8608_v1 }
 0x202   :  { %5189 = vmatmul.mubr.msk.bf16.gmra.mrb[60].mxu0 %vm129_vm0, %v1238_v23 }
 0x203   :  { %1722 = vmatprep.mubr.bf16.mxu0 %v8608_v1 }
 0x20a   :  { %5198 = vmatmul.mubr.msk.bf16.vlgmr.msra.gmra.mrb[0].mxu0 %vm129_vm0, %v1601_v26 }
 0x20b   :  { %1732 = vmatprep.mubr.bf16.mxu0 %v8608_v1 }
 0x212   :  { %5199 = vmatmul.mubr.msk.bf16.gmra.mrb[4].mxu0 %vm129_vm0, %v1602_v29 }
 0x213   :  { %1742 = vmatprep.mubr.bf16.mxu0 %v8608_v1 }
 0x21a   :  { %5200 = vmatmul.mubr.msk.bf16.gmra.mrb[8].mxu0 %vm129_vm0, %v1603_v32 }
 0x21b   :  { %1752 = vmatprep.mubr.bf16.mxu0 %v8608_v1 }
 0x222   :  { %5201 = vmatmul.mubr.msk.bf16.gmra.mrb[12].mxu0 %vm129_vm0, %v1604_v35 }
 0x223   :  { %1762 = vmatprep.mubr.bf16.mxu0 %v8608_v1 }
 0x22a   :  { %5202 = vmatmul.mubr.msk.bf16.gmra.mrb[16].mxu0 %vm129_vm0, %v1605_v38 }
 0x22b   :  { %1772 = vmatprep.mubr.bf16.mxu0 %v8608_v1 }
 0x232   :  { %5203 = vmatmul.mubr.msk.bf16.gmra.mrb[20].mxu0 %vm129_vm0, %v1606_v41 }
 0x233   :  { %1782 = vmatprep.mubr.bf16.mxu0 %v8608_v1 }
 0x23a   :  { %5204 = vmatmul.mubr.msk.bf16.gmra.mrb[24].mxu0 %vm129_vm0, %v1607_v44 }
 0x23b   :  { %1792 = vmatprep.mubr.bf16.mxu0 %v8608_v1 }
 0x242   :  { %5205 = vmatmul.mubr.msk.bf16.gmra.mrb[28].mxu0 %vm129_vm0, %v1608_v47 }
 0x243   :  { %1802 = vmatprep.mubr.bf16.mxu0 %v8608_v1 }
 0x24a   :  { %5206 = vmatmul.mubr.msk.bf16.gmra.mrb[32].mxu0 %vm129_vm0, %v1609_v50 }
 0x24b   :  { %1812 = vmatprep.mubr.bf16.mxu0 %v8608_v1 }
 0x252   :  { %5207 = vmatmul.mubr.msk.bf16.gmra.mrb[36].mxu0 %vm129_vm0, %v1610_v53 }
 0x253   :  { %1822 = vmatprep.mubr.bf16.mxu0 %v8608_v1 }
 0x25a   :  { %5208 = vmatmul.mubr.msk.bf16.gmra.mrb[40].mxu0 %vm129_vm0, %v1611_v56 }
 0x25b   :  { %1832 = vmatprep.mubr.bf16.mxu0 %v8608_v1 }
 0x262   :  { %5209 = vmatmul.mubr.msk.bf16.gmra.mrb[44].mxu0 %vm129_vm0, %v1612_v59 }
 0x263   :  { %1842 = vmatprep.mubr.bf16.mxu0 %v8608_v1 }
 0x26a   :  { %5210 = vmatmul.mubr.msk.bf16.gmra.mrb[48].mxu0 %vm129_vm0, %v1613_v62 }
 0x26b   :  { %1852 = vmatprep.mubr.bf16.mxu0 %v8608_v1 }
 0x272   :  { %5211 = vmatmul.mubr.msk.bf16.gmra.mrb[52].mxu0 %vm129_vm0, %v1614_v2 }
 0x273   :  { %1862 = vmatprep.mubr.bf16.mxu0 %v8608_v1 }
 0x27a   :  { %5212 = vmatmul.mubr.msk.bf16.gmra.mrb[56].mxu0 %vm129_vm0, %v1615_v5 }
 0x27b   :  { %1872 = vmatprep.mubr.bf16.mxu0 %v8608_v1 }
 0x282   :  { %5213 = vmatmul.mubr.msk.bf16.gmra.mrb[60].mxu0 %vm129_vm0, %v1616_v8 }
 0x2dd   :  { %v1724_v16 = vpop.f32.mrb[0].mxu0 }
 0x2de   :  { %v5774_v17 = vadd.f32 %v1724_v16, %v7296_v14  ;;  %v1726_v18 = vpop.f32.mrb[1].mxu0 }
 0x2df   :  { %v5775_v19 = vadd.f32 %v1726_v18, %v7300_v15  ;;  %v1728_v20 = vpop.f32.mrb[2].mxu0 }
 0x2e0   :  { %v5776_v21 = vadd.f32 %v1728_v20, %v7296_v14  ;;  %v1730_v22 = vpop.f32.mrb[3].mxu0  ;;  %v1947_v25 = vmax.f32 %v5774_v17, 0.0 }
 0x2e1   :  { %v5777_v23 = vadd.f32 %v1730_v22, %v7300_v15  ;;  %v1948_v27 = vmax.f32 %v5775_v19, 0.0 }
 0x2e2   :  { %v1949_v26 = vmax.f32 %v5776_v21, 0.0 }
 0x2e3   :  { %v1950_v28 = vmax.f32 %v5777_v23, 0.0 }
 0x2e4   :  { %v5680_v29 = vpack.c.bf16 %v1949_v26, %v1947_v25 }
 0x2e5   :  { %v1734_v30 = vpop.f32.mrb[4].mxu0  ;;  %v5678_v31 = vpack.c.bf16 %v1950_v28, %v1948_v27 }
 0x2e6   :  { %v5778_v32 = vadd.f32 %v1734_v30, %v7296_v14  ;;  %v1736_v33 = vpop.f32.mrb[5].mxu0 }
 0x2e7   :  { %v5779_v34 = vadd.f32 %v1736_v33, %v7300_v15  ;;  %v1738_v35 = vpop.f32.mrb[6].mxu0  ;;  %5679 = vmatprep.subr.bf16.mxu1 %v5678_v31 }
 0x2e8   :  { %v5780_v36 = vadd.f32 %v1738_v35, %v7296_v14  ;;  %v1740_v37 = vpop.f32.mrb[7].mxu0  ;;  %5681 = vmatpush1.bf16.msra.mxu1 %v5680_v29  ;;  %v1951_v39 = vmax.f32 %v5778_v32, 0.0 }
 0x2e9   :  { %v5781_v38 = vadd.f32 %v1740_v37, %v7300_v15  ;;  %v1952_v41 = vmax.f32 %v5779_v34, 0.0 }
 0x2ea   :  { %v1953_v40 = vmax.f32 %v5780_v36, 0.0 }
 0x2eb   :  { %v1954_v42 = vmax.f32 %v5781_v38, 0.0 }
 0x2ec   :  { %v5684_v43 = vpack.c.bf16 %v1953_v40, %v1951_v39 }
 0x2ed   :  { %v5682_v44 = vpack.c.bf16 %v1954_v42, %v1952_v41  ;;  %v1744_v45 = vpop.f32.mrb[8].mxu0 }
 0x2ee   :  { %v5782_v46 = vadd.f32 %v1744_v45, %v7296_v14  ;;  %v1746_v47 = vpop.f32.mrb[9].mxu0 }
 0x2ef   :  { %v5783_v48 = vadd.f32 %v1746_v47, %v7300_v15  ;;  %v1748_v49 = vpop.f32.mrb[10].mxu0  ;;  %5683 = vmatprep.subr.bf16.mxu1 %v5682_v44 }
 0x2f0   :  { %v5784_v50 = vadd.f32 %v1748_v49, %v7296_v14  ;;  %v1750_v51 = vpop.f32.mrb[11].mxu0  ;;  %5685 = vmatpush1.bf16.msra.mxu1 %v5684_v43  ;;  %v1955_v53 = vmax.f32 %v5782_v46, 0.0 }
 0x2f1   :  { %v5785_v52 = vadd.f32 %v1750_v51, %v7300_v15  ;;  %v1956_v55 = vmax.f32 %v5783_v48, 0.0 }
 0x2f2   :  { %v1957_v54 = vmax.f32 %v5784_v50, 0.0 }
 0x2f3   :  { %v1958_v56 = vmax.f32 %v5785_v52, 0.0 }
 0x2f4   :  { %v5688_v57 = vpack.c.bf16 %v1957_v54, %v1955_v53 }
 0x2f5   :  { %v5686_v58 = vpack.c.bf16 %v1958_v56, %v1956_v55  ;;  %v1754_v59 = vpop.f32.mrb[12].mxu0 }
 0x2f6   :  { %v5786_v60 = vadd.f32 %v1754_v59, %v7296_v14  ;;  %v1756_v61 = vpop.f32.mrb[13].mxu0 }
 0x2f7   :  { %v5787_v62 = vadd.f32 %v1756_v61, %v7300_v15  ;;  %v1758_v63 = vpop.f32.mrb[14].mxu0  ;;  %5687 = vmatprep.subr.bf16.mxu1 %v5686_v58 }
 0x2f8   :  { %v5788_v0 = vadd.f32 %v1758_v63, %v7296_v14  ;;  %v1760_v2 = vpop.f32.mrb[15].mxu0  ;;  %5689 = vmatpush1.bf16.msra.mxu1 %v5688_v57  ;;  %v1959_v4 = vmax.f32 %v5786_v60, 0.0 }
 0x2f9   :  { %v5789_v3 = vadd.f32 %v1760_v2, %v7300_v15  ;;  %v1960_v6 = vmax.f32 %v5787_v62, 0.0 }
 0x2fa   :  { %v1961_v5 = vmax.f32 %v5788_v0, 0.0 }
 0x2fb   :  { %v1962_v7 = vmax.f32 %v5789_v3, 0.0 }
 0x2fc   :  { %v5692_v8 = vpack.c.bf16 %v1961_v5, %v1959_v4 }
 0x2fd   :  { %v5690_v9 = vpack.c.bf16 %v1962_v7, %v1960_v6  ;;  %v1764_v12 = vpop.f32.mrb[16].mxu0 }
 0x2fe   :  { %v5790_v16 = vadd.f32 %v1764_v12, %v7296_v14  ;;  %v1766_v17 = vpop.f32.mrb[17].mxu0 }
 0x2ff   :  { %v5791_v18 = vadd.f32 %v1766_v17, %v7300_v15  ;;  %v1768_v19 = vpop.f32.mrb[18].mxu0  ;;  %5691 = vmatprep.subr.bf16.mxu1 %v5690_v9 }
 0x300   :  { %v5792_v20 = vadd.f32 %v1768_v19, %v7296_v14  ;;  %v1770_v21 = vpop.f32.mrb[19].mxu0  ;;  %5693 = vmatpush1.bf16.msra.mxu1 %v5692_v8  ;;  %v1963_v23 = vmax.f32 %v5790_v16, 0.0 }
 0x301   :  { %v5793_v22 = vadd.f32 %v1770_v21, %v7300_v15  ;;  %v1964_v25 = vmax.f32 %v5791_v18, 0.0 }
 0x302   :  { %v1965_v24 = vmax.f32 %v5792_v20, 0.0 }
 0x303   :  { %v1966_v26 = vmax.f32 %v5793_v22, 0.0 }
 0x304   :  { %v5696_v27 = vpack.c.bf16 %v1965_v24, %v1963_v23 }
 0x305   :  { %v5694_v28 = vpack.c.bf16 %v1966_v26, %v1964_v25  ;;  %v1774_v29 = vpop.f32.mrb[20].mxu0 }
 0x306   :  { %v5794_v30 = vadd.f32 %v1774_v29, %v7296_v14  ;;  %v1776_v31 = vpop.f32.mrb[21].mxu0 }
 0x307   :  { %v5795_v32 = vadd.f32 %v1776_v31, %v7300_v15  ;;  %v1778_v33 = vpop.f32.mrb[22].mxu0  ;;  %5695 = vmatprep.subr.bf16.mxu1 %v5694_v28 }
 0x308   :  { %v5796_v34 = vadd.f32 %v1778_v33, %v7296_v14  ;;  %v1780_v35 = vpop.f32.mrb[23].mxu0  ;;  %5697 = vmatpush1.bf16.msra.mxu1 %v5696_v27  ;;  %v1967_v37 = vmax.f32 %v5794_v30, 0.0 }
 0x309   :  { %v5797_v36 = vadd.f32 %v1780_v35, %v7300_v15  ;;  %v1968_v39 = vmax.f32 %v5795_v32, 0.0 }
 0x30a   :  { %v1969_v38 = vmax.f32 %v5796_v34, 0.0 }
 0x30b   :  { %v1970_v40 = vmax.f32 %v5797_v36, 0.0 }
 0x30c   :  { %v5700_v41 = vpack.c.bf16 %v1969_v38, %v1967_v37 }
 0x30d   :  { %v5698_v42 = vpack.c.bf16 %v1970_v40, %v1968_v39  ;;  %v1784_v43 = vpop.f32.mrb[24].mxu0 }
 0x30e   :  { %v5798_v44 = vadd.f32 %v1784_v43, %v7296_v14  ;;  %v1786_v45 = vpop.f32.mrb[25].mxu0 }
 0x30f   :  { %v5799_v46 = vadd.f32 %v1786_v45, %v7300_v15  ;;  %v1788_v47 = vpop.f32.mrb[26].mxu0  ;;  %5699 = vmatprep.subr.bf16.mxu1 %v5698_v42 }
 0x310   :  { %v5800_v48 = vadd.f32 %v1788_v47, %v7296_v14  ;;  %v1790_v49 = vpop.f32.mrb[27].mxu0  ;;  %5701 = vmatpush1.bf16.msra.mxu1 %v5700_v41  ;;  %v1971_v51 = vmax.f32 %v5798_v44, 0.0 }
 0x311   :  { %v5801_v50 = vadd.f32 %v1790_v49, %v7300_v15  ;;  %v1972_v53 = vmax.f32 %v5799_v46, 0.0 }
 0x312   :  { %v1973_v52 = vmax.f32 %v5800_v48, 0.0 }
 0x313   :  { %v1974_v54 = vmax.f32 %v5801_v50, 0.0 }
 0x314   :  { %v5704_v55 = vpack.c.bf16 %v1973_v52, %v1971_v51 }
 0x315   :  { %v5702_v56 = vpack.c.bf16 %v1974_v54, %v1972_v53  ;;  %v1794_v57 = vpop.f32.mrb[28].mxu0 }
 0x316   :  { %v5802_v58 = vadd.f32 %v1794_v57, %v7296_v14  ;;  %v1796_v59 = vpop.f32.mrb[29].mxu0 }
 0x317   :  { %v5803_v60 = vadd.f32 %v1796_v59, %v7300_v15  ;;  %v1798_v61 = vpop.f32.mrb[30].mxu0  ;;  %5703 = vmatprep.subr.bf16.mxu1 %v5702_v56 }
 0x318   :  { %v5804_v62 = vadd.f32 %v1798_v61, %v7296_v14  ;;  %v1800_v63 = vpop.f32.mrb[31].mxu0  ;;  %5705 = vmatpush1.bf16.msra.mxu1 %v5704_v55  ;;  %v1975_v2 = vmax.f32 %v5802_v58, 0.0 }
 0x319   :  { %v5805_v0 = vadd.f32 %v1800_v63, %v7300_v15  ;;  %v1976_v4 = vmax.f32 %v5803_v60, 0.0 }
 0x31a   :  { %v1977_v3 = vmax.f32 %v5804_v62, 0.0 }
 0x31b   :  { %v1978_v5 = vmax.f32 %v5805_v0, 0.0 }
 0x31c   :  { %v5708_v6 = vpack.c.bf16 %v1977_v3, %v1975_v2 }
 0x31d   :  { %v5706_v7 = vpack.c.bf16 %v1978_v5, %v1976_v4  ;;  %v1804_v8 = vpop.f32.mrb[32].mxu0 }
 0x31e   :  { %v5806_v9 = vadd.f32 %v1804_v8, %v7296_v14  ;;  %v1806_v12 = vpop.f32.mrb[33].mxu0 }
 0x31f   :  { %v5807_v16 = vadd.f32 %v1806_v12, %v7300_v15  ;;  %v1808_v17 = vpop.f32.mrb[34].mxu0  ;;  %5707 = vmatprep.subr.bf16.mxu1 %v5706_v7 }
 0x320   :  { %v5808_v18 = vadd.f32 %v1808_v17, %v7296_v14  ;;  %v1810_v19 = vpop.f32.mrb[35].mxu0  ;;  %5709 = vmatpush1.bf16.msra.mxu1 %v5708_v6  ;;  %v1979_v21 = vmax.f32 %v5806_v9, 0.0 }
 0x321   :  { %v5809_v20 = vadd.f32 %v1810_v19, %v7300_v15  ;;  %v1980_v23 = vmax.f32 %v5807_v16, 0.0 }
 0x322   :  { %v1981_v22 = vmax.f32 %v5808_v18, 0.0 }
 0x323   :  { %v1982_v24 = vmax.f32 %v5809_v20, 0.0 }
 0x324   :  { %v5712_v25 = vpack.c.bf16 %v1981_v22, %v1979_v21 }
 0x325   :  { %v5710_v26 = vpack.c.bf16 %v1982_v24, %v1980_v23  ;;  %v1814_v27 = vpop.f32.mrb[36].mxu0 }
 0x326   :  { %v5810_v28 = vadd.f32 %v1814_v27, %v7296_v14  ;;  %v1816_v29 = vpop.f32.mrb[37].mxu0 }
 0x327   :  { %v5811_v30 = vadd.f32 %v1816_v29, %v7300_v15  ;;  %v1818_v31 = vpop.f32.mrb[38].mxu0  ;;  %5711 = vmatprep.subr.bf16.mxu1 %v5710_v26 }
 0x328   :  { %v5812_v32 = vadd.f32 %v1818_v31, %v7296_v14  ;;  %v1820_v33 = vpop.f32.mrb[39].mxu0  ;;  %5713 = vmatpush1.bf16.msra.mxu1 %v5712_v25  ;;  %v1983_v35 = vmax.f32 %v5810_v28, 0.0 }
 0x329   :  { %v5813_v34 = vadd.f32 %v1820_v33, %v7300_v15  ;;  %v1984_v37 = vmax.f32 %v5811_v30, 0.0 }
 0x32a   :  { %v1985_v36 = vmax.f32 %v5812_v32, 0.0 }
 0x32b   :  { %v1986_v38 = vmax.f32 %v5813_v34, 0.0 }
 0x32c   :  { %v5716_v39 = vpack.c.bf16 %v1985_v36, %v1983_v35 }
 0x32d   :  { %v5714_v40 = vpack.c.bf16 %v1986_v38, %v1984_v37  ;;  %v1824_v41 = vpop.f32.mrb[40].mxu0 }
 0x32e   :  { %v5814_v42 = vadd.f32 %v1824_v41, %v7296_v14  ;;  %v1826_v43 = vpop.f32.mrb[41].mxu0 }
 0x32f   :  { %v5815_v44 = vadd.f32 %v1826_v43, %v7300_v15  ;;  %v1828_v45 = vpop.f32.mrb[42].mxu0  ;;  %5715 = vmatprep.subr.bf16.mxu1 %v5714_v40 }
 0x330   :  { %v5816_v46 = vadd.f32 %v1828_v45, %v7296_v14  ;;  %v1830_v47 = vpop.f32.mrb[43].mxu0  ;;  %5717 = vmatpush1.bf16.msra.mxu1 %v5716_v39  ;;  %v1987_v49 = vmax.f32 %v5814_v42, 0.0 }
 0x331   :  { %v5817_v48 = vadd.f32 %v1830_v47, %v7300_v15  ;;  %v1988_v51 = vmax.f32 %v5815_v44, 0.0 }
 0x332   :  { %v1989_v50 = vmax.f32 %v5816_v46, 0.0 }
 0x333   :  { %v1990_v52 = vmax.f32 %v5817_v48, 0.0 }
 0x334   :  { %v5720_v53 = vpack.c.bf16 %v1989_v50, %v1987_v49 }
 0x335   :  { %v5718_v54 = vpack.c.bf16 %v1990_v52, %v1988_v51  ;;  %v1834_v55 = vpop.f32.mrb[44].mxu0 }
 0x336   :  { %v5818_v56 = vadd.f32 %v1834_v55, %v7296_v14  ;;  %v1836_v57 = vpop.f32.mrb[45].mxu0 }
 0x337   :  { %v5819_v58 = vadd.f32 %v1836_v57, %v7300_v15  ;;  %v1838_v59 = vpop.f32.mrb[46].mxu0  ;;  %5719 = vmatprep.subr.bf16.mxu1 %v5718_v54 }
 0x338   :  { %v5820_v60 = vadd.f32 %v1838_v59, %v7296_v14  ;;  %v1840_v61 = vpop.f32.mrb[47].mxu0  ;;  %5721 = vmatpush1.bf16.msra.mxu1 %v5720_v53  ;;  %v1991_v63 = vmax.f32 %v5818_v56, 0.0 }
 0x339   :  { %v5821_v62 = vadd.f32 %v1840_v61, %v7300_v15  ;;  %v1992_v2 = vmax.f32 %v5819_v58, 0.0 }
 0x33a   :  { %v1993_v0 = vmax.f32 %v5820_v60, 0.0 }
 0x33b   :  { %v1994_v3 = vmax.f32 %v5821_v62, 0.0 }
 0x33c   :  { %v5724_v4 = vpack.c.bf16 %v1993_v0, %v1991_v63 }
 0x33d   :  { %v5722_v5 = vpack.c.bf16 %v1994_v3, %v1992_v2  ;;  %v1844_v6 = vpop.f32.mrb[48].mxu0  ;;  %v8629_v3 = vmov 0 }
 0x33e   :  { %v5822_v7 = vadd.f32 %v1844_v6, %v7296_v14  ;;  %v1846_v8 = vpop.f32.mrb[49].mxu0  ;;  %v8630_v3 = vsel %vm7371_vm4, 4294967295, %v8629_v3  ;;  %v2014_v6 = vld [vmem:[%s8597_s3 + $0x18] sm:$0xff] }
 0x33f   :  { %v5823_v9 = vadd.f32 %v1846_v8, %v7300_v15  ;;  %v1848_v12 = vpop.f32.mrb[50].mxu0  ;;  %5723 = vmatprep.subr.bf16.mxu1 %v5722_v5  ;;  %8631 = vst [vmem:[#allocation5_spill] sm:$0xff] %v8630_v3  ;;  %v6285_v5 = vld [vmem:[%s8598_s4] ss:$8 sps:$4 sm:$0xff]   ;;  %v2013_v8 = vld [vmem:[%s8597_s3 + $0x10] sm:$0xff] }
 0x340   :  { %v5824_v16 = vadd.f32 %v1848_v12, %v7296_v14  ;;  %v1850_v17 = vpop.f32.mrb[51].mxu0  ;;  %5725 = vmatpush1.bf16.msra.mxu1 %v5724_v4  ;;  %v1995_v19 = vmax.f32 %v5822_v7, 0.0  ;;  %v6290_v7 = vld [vmem:[%s8598_s4 + $0x14] ss:$8 sps:$4 sm:$0xff]   ;;  %v2016_v12 = vld [vmem:[%s8597_s3 + $0x28] sm:$0xff] }
 0x341   :  { %v5825_v18 = vadd.f32 %v1850_v17, %v7300_v15  ;;  %v1996_v21 = vmax.f32 %v5823_v9, 0.0  ;;  %v6288_v9 = vld [vmem:[%s8598_s4 + $0x10] ss:$8 sps:$4 sm:$0xff]   ;;  %v2015_v17 = vld [vmem:[%s8597_s3 + $0x20] sm:$0xff] }
 0x342   :  { %v1997_v20 = vmax.f32 %v5824_v16, 0.0  ;;  %v6293_v16 = vld [vmem:[%s8598_s4 + $0x24] ss:$8 sps:$4 sm:$0xff]  }
 0x343   :  { %v1998_v22 = vmax.f32 %v5825_v18, 0.0  ;;  %v6291_v18 = vld [vmem:[%s8598_s4 + $0x20] ss:$8 sps:$4 sm:$0xff]  }
 0x344   :  { %v5728_v23 = vpack.c.bf16 %v1997_v20, %v1995_v19  ;;  %v2018_v19 = vld [vmem:[%s8597_s3 + $0x38] sm:$0xff] }
 0x345   :  { %v5726_v24 = vpack.c.bf16 %v1998_v22, %v1996_v21  ;;  %v1854_v25 = vpop.f32.mrb[52].mxu0  ;;  %v6296_v20 = vld [vmem:[%s8598_s4 + $0x34] ss:$8 sps:$4 sm:$0xff]   ;;  %v6294_v22 = vld [vmem:[%s8598_s4 + $0x30] ss:$8 sps:$4 sm:$0xff]  }
 0x346   :  { %v5826_v26 = vadd.f32 %v1854_v25, %v7296_v14  ;;  %v1856_v27 = vpop.f32.mrb[53].mxu0  ;;  %v2017_v21 = vld [vmem:[%s8597_s3 + $0x30] sm:$0xff]  ;;  %v2019_v25 = vld [vmem:[%s8597_s3 + $0x40] sm:$0xff] }
 0x347   :  { %v5827_v28 = vadd.f32 %v1856_v27, %v7300_v15  ;;  %v1858_v29 = vpop.f32.mrb[54].mxu0  ;;  %5727 = vmatprep.subr.bf16.mxu1 %v5726_v24  ;;  %v6299_v24 = vld [vmem:[%s8598_s4 + $0x44] ss:$8 sps:$4 sm:$0xff]   ;;  %v2022_v27 = vld [vmem:[%s8597_s3 + $0x58] sm:$0xff] }
 0x348   :  { %v5828_v30 = vadd.f32 %v1858_v29, %v7296_v14  ;;  %v1860_v31 = vpop.f32.mrb[55].mxu0  ;;  %5729 = vmatpush1.bf16.msra.mxu1 %v5728_v23  ;;  %v1999_v33 = vmax.f32 %v5826_v26, 0.0  ;;  %v2020_v23 = vld [vmem:[%s8597_s3 + $0x48] sm:$0xff]  ;;  %v2021_v29 = vld [vmem:[%s8597_s3 + $0x50] sm:$0xff] }
 0x349   :  { %v5829_v32 = vadd.f32 %v1860_v31, %v7300_v15  ;;  %v2000_v35 = vmax.f32 %v5827_v28, 0.0  ;;  %v6297_v26 = vld [vmem:[%s8598_s4 + $0x40] ss:$8 sps:$4 sm:$0xff]   ;;  %v6302_v28 = vld [vmem:[%s8598_s4 + $0x54] ss:$8 sps:$4 sm:$0xff]  }
 0x34a   :  { %v2001_v34 = vmax.f32 %v5828_v30, 0.0  ;;  %v6300_v30 = vld [vmem:[%s8598_s4 + $0x50] ss:$8 sps:$4 sm:$0xff]   ;;  %v2024_v31 = vld [vmem:[%s8597_s3 + $0x68] sm:$0xff] }
 0x34b   :  { %v2002_v36 = vmax.f32 %v5829_v32, 0.0  ;;  %v6305_v32 = vld [vmem:[%s8598_s4 + $0x64] ss:$8 sps:$4 sm:$0xff]  }
 0x34c   :  { %v5732_v37 = vpack.c.bf16 %v2001_v34, %v1999_v33  ;;  %v2023_v33 = vld [vmem:[%s8597_s3 + $0x60] sm:$0xff] }
 0x34d   :  { %v5730_v38 = vpack.c.bf16 %v2002_v36, %v2000_v35  ;;  %v1864_v39 = vpop.f32.mrb[56].mxu0  ;;  %v6303_v34 = vld [vmem:[%s8598_s4 + $0x60] ss:$8 sps:$4 sm:$0xff]   ;;  %v2026_v35 = vld [vmem:[%s8597_s3 + $0x78] sm:$0xff]  ;;  %v2025_v36 = vld [vmem:[%s8597_s3 + $0x70] sm:$0xff] }
 0x34e   :  { %v5830_v40 = vadd.f32 %v1864_v39, %v7296_v14  ;;  %v1866_v41 = vpop.f32.mrb[57].mxu0  ;;  %v2030_v39 = vld [vmem:[%s8597_s3 + $0x98] sm:$0xff] }
 0x34f   :  { %v5831_v42 = vadd.f32 %v1866_v41, %v7300_v15  ;;  %v1868_v43 = vpop.f32.mrb[58].mxu0  ;;  %5731 = vmatprep.subr.bf16.mxu1 %v5730_v38  ;;  %v2027_v38 = vld [vmem:[%s8597_s3 + $0x80] sm:$0xff]  ;;  %v2032_v41 = vld [vmem:[%s8597_s3 + $0xa8] sm:$0xff] }
 0x350   :  { %v5832_v44 = vadd.f32 %v1868_v43, %v7296_v14  ;;  %v1870_v45 = vpop.f32.mrb[59].mxu0  ;;  %5733 = vmatpush1.bf16.msra.mxu1 %v5732_v37  ;;  %v2003_v47 = vmax.f32 %v5830_v40, 0.0  ;;  %v2028_v37 = vld [vmem:[%s8597_s3 + $0x88] sm:$0xff]  ;;  %v2029_v40 = vld [vmem:[%s8597_s3 + $0x90] sm:$0xff]  ;;  %v2034_v43 = vld [vmem:[%s8597_s3 + $0xb8] sm:$0xff] }
 0x351   :  { %v5833_v46 = vadd.f32 %v1870_v45, %v7300_v15  ;;  %v2004_v49 = vmax.f32 %v5831_v42, 0.0  ;;  %v2031_v42 = vld [vmem:[%s8597_s3 + $0xa0] sm:$0xff]  ;;  %v2036_v45 = vld [vmem:[%s8597_s3 + $0xc8] sm:$0xff] }
 0x352   :  { %v2005_v48 = vmax.f32 %v5832_v44, 0.0  ;;  %v2033_v44 = vld [vmem:[%s8597_s3 + $0xb0] sm:$0xff] }
 0x353   :  { %v2006_v50 = vmax.f32 %v5833_v46, 0.0  ;;  %v2035_v46 = vld [vmem:[%s8597_s3 + $0xc0] sm:$0xff] }
 0x354   :  { %v5736_v51 = vpack.c.bf16 %v2005_v48, %v2003_v47  ;;  %v2038_v47 = vld [vmem:[%s8597_s3 + $0xd8] sm:$0xff]  ;;  %v2037_v48 = vld [vmem:[%s8597_s3 + $0xd0] sm:$0xff] }
 0x355   :  { %v5734_v52 = vpack.c.bf16 %v2006_v50, %v2004_v49  ;;  %v1874_v53 = vpop.f32.mrb[60].mxu0  ;;  %v6308_v49 = vld [vmem:[%s8598_s4 + $0x74] ss:$8 sps:$4 sm:$0xff]   ;;  %v6306_v50 = vld [vmem:[%s8598_s4 + $0x70] ss:$8 sps:$4 sm:$0xff]  }
 0x356   :  { %v5834_v54 = vadd.f32 %v1874_v53, %v7296_v14  ;;  %v1876_v55 = vpop.f32.mrb[61].mxu0  ;;  %v6314_v53 = vld [vmem:[%s8598_s4 + $0x94] ss:$8 sps:$4 sm:$0xff]  }
 0x357   :  { %v5835_v56 = vadd.f32 %v1876_v55, %v7300_v15  ;;  %v1878_v57 = vpop.f32.mrb[62].mxu0  ;;  %5735 = vmatprep.subr.bf16.mxu1 %v5734_v52  ;;  %v6309_v52 = vld [vmem:[%s8598_s4 + $0x80] ss:$8 sps:$4 sm:$0xff]  }
 0x358   :  { %v5836_v58 = vadd.f32 %v1878_v57, %v7296_v14  ;;  %v1880_v59 = vpop.f32.mrb[63].mxu0  ;;  %5737 = vmatpush1.bf16.msra.mxu1 %v5736_v51  ;;  %v2007_v61 = vmax.f32 %v5834_v54, 0.0  ;;  %v6287_v14 = vld [vmem:[%s8598_s4 + $0x4] ss:$8 sps:$4 sm:$0xff]   ;;  %v6312_v54 = vld [vmem:[%s8598_s4 + $0x90] ss:$8 sps:$4 sm:$0xff]  }
 0x359   :  { %v5837_v60 = vadd.f32 %v1880_v59, %v7300_v15  ;;  %v2008_v63 = vmax.f32 %v5835_v56, 0.0  ;;  %v2011_v15 = vld [vmem:[%s8597_s3] sm:$0xff]  ;;  %v6319_v59 = vld [vmem:[%s8598_s4 + $0xac] ss:$8 sps:$4 sm:$0xff]  }
 0x35a   :  { %v2009_v62 = vmax.f32 %v5836_v58, 0.0  ;;  %v6311_v51 = vld [vmem:[%s8598_s4 + $0x84] ss:$8 sps:$4 sm:$0xff]  }
 0x35b   :  { %v2010_v0 = vmax.f32 %v5837_v60, 0.0  ;;  %v2341_v55 = vld [vmem:[%s8598_s4 + $0xa0] sm:$0xff] }
 0x35c   :  { %v5741_v2 = vpack.c.bf16 %v2009_v62, %v2007_v61  ;;  %v5251_v56 = vcombine.high %v2341_v55, %v2341_v55  ;;  %v5250_v57 = vcombine.low %v2341_v55, %v2341_v55 }
 0x35d   :  { %v5738_v4 = vpack.c.bf16 %v2010_v0, %v2008_v63 }
 0x35e   :  { %v2469_v58 = vsel %vm2082_vm2, %v5250_v57, 0 }
 0x35f   :  { %5740 = vmatprep.subr.msk.bf16.mxu1 %vm7371_vm4, %v5738_v4 }
 0x360   :  { %5743 = vmatpush1.bf16.msk.msra.mxu1 %vm7371_vm4, %v5741_v2 }
 0x361   :  { %2474 = vmatprep.subr.bf16.mxu1 %v6287_v14 }
 0x363   :  { %2154 = vmatmul.mubr.f32.vlgmr.msra.gmra.mrb[0].mxu1 %v2011_v15 }
 0x364   :  { %5217 = vmatprep.mubr.msk.f32.mxu1 %vm2039_vm1, %v2014_v6  ;;  %2475 = vmatpush1.bf16.msra.mxu1 %v6285_v5 }
 0x365   :  { %2476 = vmatprep.subr.bf16.mxu1 %v6290_v7 }
 0x367   :  { %2160 = vmatmul.mubr.f32.gmra.mrb[2].mxu1 %v2013_v8 }
 0x368   :  { %5218 = vmatprep.mubr.msk.f32.mxu1 %vm2039_vm1, %v2016_v12  ;;  %2477 = vmatpush1.bf16.msra.mxu1 %v6288_v9 }
 0x369   :  { %2478 = vmatprep.subr.bf16.mxu1 %v6293_v16 }
 0x36b   :  { %2166 = vmatmul.mubr.f32.gmra.mrb[4].mxu1 %v2015_v17 }
 0x36c   :  { %5219 = vmatprep.mubr.msk.f32.mxu1 %vm2039_vm1, %v2018_v19  ;;  %2479 = vmatpush1.bf16.msra.mxu1 %v6291_v18 }
 0x36d   :  { %2480 = vmatprep.subr.bf16.mxu1 %v6296_v20 }
 0x36f   :  { %2172 = vmatmul.mubr.f32.gmra.mrb[6].mxu1 %v2017_v21 }
 0x370   :  { %5220 = vmatprep.mubr.msk.f32.mxu1 %vm2039_vm1, %v2020_v23  ;;  %2481 = vmatpush1.bf16.msra.mxu1 %v6294_v22  ;;  %v6317_v23 = vld [vmem:[%s8598_s4 + $0xa8] ss:$8 sps:$4 sm:$0xff]  }
 0x371   :  { %2482 = vmatprep.subr.bf16.mxu1 %v6299_v24 }
 0x373   :  { %2178 = vmatmul.mubr.f32.gmra.mrb[8].mxu1 %v2019_v25 }
 0x374   :  { %5221 = vmatprep.mubr.msk.f32.mxu1 %vm2039_vm1, %v2022_v27  ;;  %2483 = vmatpush1.bf16.msra.mxu1 %v6297_v26 }
 0x375   :  { %2484 = vmatprep.subr.bf16.mxu1 %v6302_v28  ;;  %v6322_v28 = vld [vmem:[%s8598_s4 + $0xbc] ss:$8 sps:$4 sm:$0xff]  }
 0x377   :  { %2184 = vmatmul.mubr.f32.gmra.mrb[10].mxu1 %v2021_v29 }
 0x378   :  { %5222 = vmatprep.mubr.msk.f32.mxu1 %vm2039_vm1, %v2024_v31  ;;  %2485 = vmatpush1.bf16.msra.mxu1 %v6300_v30 }
 0x379   :  { %2486 = vmatprep.subr.bf16.mxu1 %v6305_v32 }
 0x37b   :  { %2190 = vmatmul.mubr.f32.gmra.mrb[12].mxu1 %v2023_v33 }
 0x37c   :  { %5223 = vmatprep.mubr.msk.f32.mxu1 %vm2039_vm1, %v2026_v35  ;;  %2487 = vmatpush1.bf16.msra.mxu1 %v6303_v34 }
 0x37d   :  { %2488 = vmatprep.subr.bf16.mxu1 %v6308_v49 }
 0x37f   :  { %2196 = vmatmul.mubr.f32.gmra.mrb[14].mxu1 %v2025_v36 }
 0x380   :  { %5224 = vmatprep.mubr.msk.f32.mxu1 %vm2039_vm1, %v2028_v37  ;;  %2489 = vmatpush1.bf16.msra.mxu1 %v6306_v50 }
 0x381   :  { %2490 = vmatprep.subr.bf16.mxu1 %v6311_v51 }
 0x383   :  { %2202 = vmatmul.mubr.f32.gmra.mrb[16].mxu1 %v2027_v38 }
 0x384   :  { %5225 = vmatprep.mubr.msk.f32.mxu1 %vm2039_vm1, %v2030_v39  ;;  %2491 = vmatpush1.bf16.msra.mxu1 %v6309_v52 }
 0x385   :  { %2492 = vmatprep.subr.bf16.mxu1 %v6314_v53 }
 0x387   :  { %2208 = vmatmul.mubr.f32.gmra.mrb[18].mxu1 %v2029_v40 }
 0x388   :  { %5226 = vmatprep.mubr.msk.f32.mxu1 %vm2039_vm1, %v2032_v41  ;;  %2493 = vmatpush1.bf16.msra.mxu1 %v6312_v54  ;;  %v6320_v41 = vld [vmem:[%s8598_s4 + $0xb8] ss:$8 sps:$4 sm:$0xff]  }
 0x389   :  { %5252 = vmatprep.subr.msk.bf16.mxu1 %vm2082_vm2, %v5251_v56 }
 0x38b   :  { %2214 = vmatmul.mubr.f32.gmra.mrb[20].mxu1 %v2031_v42  ;;  %v6325_v42 = vld [vmem:[%s8598_s4 + $0xcc] ss:$8 sps:$4 sm:$0xff]  }
 0x38c   :  { %5227 = vmatprep.mubr.msk.f32.mxu1 %vm2039_vm1, %v2034_v43  ;;  %2495 = vmatpush1.bf16.msra.mxu1 %v2469_v58 }
 0x38d   :  { %2880 = vmatprep.subr.bf16.mxu1 %v6319_v59 }
 0x38f   :  { %2220 = vmatmul.mubr.f32.gmra.mrb[22].mxu1 %v2033_v44 }
 0x390   :  { %5228 = vmatprep.mubr.msk.f32.mxu1 %vm2039_vm1, %v2036_v45 }
 0x393   :  { %2226 = vmatmul.mubr.f32.gmra.mrb[24].mxu1 %v2035_v46 }
 0x394   :  { %5229 = vmatprep.mubr.msk.f32.mxu1 %vm2039_vm1, %v2038_v47 }
 0x397   :  { %2232 = vmatmul.mubr.f32.gmra.mrb[26].mxu1 %v2037_v48 }
 0x436   :  { %v2155_v60 = vpop.f32.mrb[0].mxu1 }
 0x437   :  { %2238 = vst [vmem:[#allocation2] sm:$0xff] %v2155_v60  ;;  %v2157_v61 = vpop.f32.mrb[1].mxu1 }
 0x438   :  { %2240 = vst.msk [vmem:[#allocation2 + $0x8] sm:$0xff] %vm2239_vm5, %v2157_v61 }
 0x43a   :  { %v7542_v62 = vpop.f32.mrb[2].mxu1 }
 0x43b   :  { %v2163_v63 = vpop.f32.mrb[3].mxu1  ;;  %v2307_v0 = vpack.c.bf16 %v7542_v62, %v2155_v60 }
 0x43c   :  { %2242 = vst.msk [vmem:[#allocation2 + $0x18] sm:$0xff] %vm2239_vm5, %v2163_v63  ;;  %v6323_v63 = vld [vmem:[%s8598_s4 + $0xc8] ss:$8 sps:$4 sm:$0xff]  }
 0x43e   :  { %v2167_v2 = vpop.f32.mrb[4].mxu1  ;;  %v2605_v4 = vld [vmem:[#allocation2] sm:$0xfe] }
 0x43f   :  { %v3011_v14 = vld [vmem:[#allocation2] sm:$0xfc]  ;;  %v2169_v15 = vpop.f32.mrb[5].mxu1  ;;  %v2609_v5 = vpack.c.bf16 %v7542_v62, %v2605_v4  ;;  %v2280_v9 = vld [vmem:[#allocation2 + $0x8] sm:$0xff] }
 0x440   :  { %2244 = vst.msk [vmem:[#allocation2 + $0x28] sm:$0xff] %vm2239_vm5, %v2169_v15  ;;  %v3015_v6 = vpack.c.bf16 %v7542_v62, %v3011_v14  ;;  %v3352_v12 = vld [vmem:[#allocation2] sm:$0xf8]  ;;  %v3353_v21 = vld [vmem:[#allocation2 + $0x8] sm:$0xf8] }
 0x441   :  { %v2639_v7 = vshll.u32 %v2609_v5, 16  ;;  %v2637_v19 = vshrl.u32 %v2609_v5, 16  ;;  %v3012_v24 = vld [vmem:[#allocation2 + $0x8] sm:$0xfc]  ;;  %v3356_v27 = vpack.c.bf16 %v7542_v62, %v3352_v12  ;;  %v3727_v40 = vld [vmem:[#allocation2] sm:$0xf0] }
 0x442   :  { %v2173_v8 = vpop.f32.mrb[6].mxu1  ;;  %v3056_v25 = vrot.slane %v3015_v6, 1  ;;  %v3728_v48 = vld [vmem:[#allocation2 + $0x8] sm:$0xf0]  ;;  %v3731_v53 = vpack.c.bf16 %v7542_v62, %v3727_v40  ;;  %v6328_v4 = vld [vmem:[%s8598_s4 + $0xdc] ss:$8 sps:$4 sm:$0xff]  }
 0x443   :  { %v2175_v16 = vpop.f32.mrb[7].mxu1  ;;  %v7549_v17 = vld [vmem:[#allocation2 + $0x18] sm:$0xff]  ;;  %v7551_v18 = vpack.c.bf16 %v2173_v8, %v2167_v2  ;;  %v2641_v20 = vrot.slane %v2639_v7, 1  ;;  %v3384_v47 = vshrl.u32 %v3356_v27, 16  ;;  %v3387_v50 = vshll.u32 %v3356_v27, 16 }
 0x444   :  { %2246 = vst.msk [vmem:[#allocation2 + $0x38] sm:$0xff] %vm2239_vm5, %v2175_v16  ;;  %v2308_v22 = vpack.c.bf16 %v7549_v17, %v2280_v9  ;;  %v3357_v26 = vpack.c.bf16 %v7549_v17, %v3353_v21  ;;  %v3016_v31 = vpack.c.bf16 %v7549_v17, %v3012_v24  ;;  %v3732_v52 = vpack.c.bf16 %v7549_v17, %v3728_v48  ;;  %v6326_v24 = vld [vmem:[%s8598_s4 + $0xd8] ss:$8 sps:$4 sm:$0xff]  }
 0x445   :  { %v2644_v29 = vshll.u32 %v7551_v18, 16  ;;  %v2659_v30 = vshrl.u32 %v7551_v18, 16  ;;  %v3057_v32 = vrot.slane %v7551_v18, 1  ;;  %v2642_v36 = vor.u32 %v2641_v20, %v2637_v19 }
 0x446   :  { %v2179_v33 = vpop.f32.mrb[8].mxu1  ;;  %5253 = vmatprep.mubr.msk.bf16.mxu1 %vm2239_vm5, %v2308_v22  ;;  %v3396_v34 = vshrl.u32 %v3357_v26, 16  ;;  %v3399_v39 = vshll.u32 %v3357_v26, 16  ;;  %v3059_v45 = vrot.slane %v3016_v31, 1  ;;  %v3386_v60 = vrot.slane %v3384_v47, 1 }
 0x447   :  { %v2181_v35 = vpop.f32.mrb[9].mxu1  ;;  %2507 = vmatmul.mubr.bf16.vlgmr.msra.gmra.mrb[28].mxu1 %v2307_v0  ;;  %v2646_v37 = vrot.slane %v2644_v29, 1  ;;  %v7569_v38 = vsel %vm3055_vm6, %v3056_v25, %v3057_v32  ;;  %v3391_v43 = vrot.slane %v2659_v30, 1  ;;  %v3392_v51 = vrot.slane %v2644_v29, 2  ;;  %v2284_v55 = vld [vmem:[#allocation2 + $0x28] sm:$0xff] }
 0x448   :  { %2248 = vst.msk [vmem:[#allocation2 + $0x48] sm:$0xff] %vm2239_vm5, %v2181_v35  ;;  %2881 = vmatpush1.bf16.msra.mxu1 %v6317_v23  ;;  %v7581_v46 = vrot.slane %v3396_v34, 1  ;;  %v7587_v59 = vrot.slane %v3399_v39, 2  ;;  %v3389_v0 = vrot.slane %v3387_v50, 2  ;;  %v3763_v2 = vrot.slane %v7551_v18, 2 }
 0x449   :  { %2882 = vmatprep.subr.bf16.mxu1 %v6322_v28  ;;  %v7579_v44 = vsel %vm2635_vm7, %v2642_v36, %v2646_v37  ;;  %v2661_v58 = vor.u32 %v2659_v30, %v2646_v37  ;;  %v3393_v62 = vor.u32 %v3392_v51, %v3391_v43  ;;  %v3762_v27 = vrot.slane %v3731_v53, 2  ;;  %v6331_v28 = vld [vmem:[%s8598_s4 + $0xec] ss:$8 sps:$4 sm:$0xff]   ;;  %v6329_v47 = vld [vmem:[%s8598_s4 + $0xe8] ss:$8 sps:$4 sm:$0xff]  }
 0x44a   :  { %v2185_v49 = vpop.f32.mrb[10].mxu1  ;;  %v3390_v16 = vor.u32 %v3389_v0, %v3386_v60  ;;  %v3765_v34 = vrot.slane %v3732_v52, 2  ;;  %v6334_v50 = vld [vmem:[%s8598_s4 + $0xfc] ss:$8 sps:$4 sm:$0xff]  }
 0x44b   :  { %v2187_v54 = vpop.f32.mrb[11].mxu1  ;;  %v2286_v56 = vld [vmem:[#allocation2 + $0x38] sm:$0xff]  ;;  %v7585_v57 = vpack.c.bf16 %v2185_v49, %v2179_v33  ;;  %v3402_v33 = vor.u32 %v7587_v59, %v7581_v46  ;;  %v7636_v36 = vsel %vm3761_vm9, %v3762_v27, %v3763_v2 }
 0x44c   :  { %2250 = vst.msk [vmem:[#allocation2 + $0x58] sm:$0xff] %vm2239_vm5, %v2187_v54  ;;  %v7590_v61 = vpack.c.bf16 %v2286_v56, %v2284_v55  ;;  %2883 = vmatpush1.bf16.msra.mxu1 %v6320_v41 }
 0x44d   :  { %2884 = vmatprep.subr.bf16.mxu1 %v6325_v42  ;;  %v2663_v14 = vshll.u32 %v7585_v57, 16  ;;  %v2674_v15 = vshrl.u32 %v7585_v57, 16  ;;  %v3062_v5 = vrot.slane %v7585_v57, 1  ;;  %v3768_v6 = vrot.slane %v7585_v57, 2 }
 0x44e   :  { %v2191_v7 = vpop.f32.mrb[12].mxu1  ;;  %5254 = vmatprep.mubr.msk.bf16.mxu1 %vm2239_vm5, %v7590_v61  ;;  %v2655_v8 = vshll.u32 %v7590_v61, 16  ;;  %v8615_v9 = vshrl.u32 %v7590_v61, 16  ;;  %v3060_v12 = vrot.slane %v7590_v61, 1  ;;  %v3766_v35 = vrot.slane %v7590_v61, 2 }
 0x44f   :  { %v2193_v19 = vpop.f32.mrb[13].mxu1  ;;  %2517 = vmatmul.mubr.bf16.gmra.mrb[32].mxu1 %v7551_v18  ;;  %v2665_v20 = vrot.slane %v2663_v14, 1  ;;  %v7610_v21 = vsel %vm3055_vm6, %v3057_v32, %v3062_v5  ;;  %v3407_v22 = vrot.slane %v2674_v15, 1  ;;  %v3408_v23 = vrot.slane %v2663_v14, 2  ;;  %v2288_v39 = vld [vmem:[#allocation2 + $0x48] sm:$0xff] }
 0x450   :  { %2252 = vst.msk [vmem:[#allocation2 + $0x68] sm:$0xff] %vm2239_vm5, %v2193_v19  ;;  %2885 = vmatpush1.bf16.msra.mxu1 %v6323_v63  ;;  %v7617_v25 = vsel %vm3055_vm6, %v3059_v45, %v3060_v12  ;;  %v3403_v26 = vrot.slane %v8615_v9, 1  ;;  %v7622_v18 = vsel %vm3382_vm8, %v3390_v16, %v3393_v62  ;;  %v3404_v30 = vrot.slane %v2655_v8, 2  ;;  %v6332_v14 = vld [vmem:[%s8598_s4 + $0xf8] ss:$8 sps:$4 sm:$0xff]  }
 0x451   :  { %2886 = vmatprep.subr.bf16.mxu1 %v6328_v4  ;;  %v7628_v29 = vsel %vm2635_vm7, %v2661_v58, %v2665_v20  ;;  %v3409_v31 = vor.u32 %v3408_v23, %v3407_v22  ;;  %v7646_v45 = vsel %vm3761_vm9, %v3763_v2, %v3768_v6  ;;  %v2676_v48 = vor.u32 %v2674_v15, %v2665_v20  ;;  %v6337_v16 = vld [vmem:[%s8598_s4 + $0x10c] ss:$8 sps:$4 sm:$0xff]  }
 0x452   :  { %v2197_v32 = vpop.f32.mrb[14].mxu1  ;;  %v3405_v42 = vor.u32 %v3404_v30, %v3403_v26  ;;  %8632 = vst [vmem:[#allocation6_spill] sm:$0xff] %v7646_v45  ;;  %v7655_v49 = vsel %vm3761_vm9, %v3765_v34, %v3766_v35  ;;  %v6335_v34 = vld [vmem:[%s8598_s4 + $0x108] ss:$8 sps:$4 sm:$0xff]  }
 0x453   :  { %v2199_v37 = vpop.f32.mrb[15].mxu1  ;;  %v2290_v40 = vld [vmem:[#allocation2 + $0x58] sm:$0xff]  ;;  %v7638_v41 = vpack.c.bf16 %v2197_v32, %v2191_v7  ;;  %v7641_v43 = vsel %vm3382_vm8, %v3393_v62, %v3409_v31 }
 0x454   :  { %2254 = vst.msk [vmem:[#allocation2 + $0x78] sm:$0xff] %vm2239_vm5, %v2199_v37  ;;  %v7649_v46 = vpack.c.bf16 %v2290_v40, %v2288_v39  ;;  %2887 = vmatpush1.bf16.msra.mxu1 %v6326_v24  ;;  %v7664_v54 = vsel %vm3382_vm8, %v3402_v33, %v3405_v42 }
 0x455   :  { %2888 = vmatprep.subr.bf16.mxu1 %v6331_v28  ;;  %v2678_v51 = vshll.u32 %v7638_v41, 16  ;;  %v2689_v52 = vshrl.u32 %v7638_v41, 16  ;;  %v3066_v53 = vrot.slane %v7638_v41, 1  ;;  %v3772_v23 = vrot.slane %v7638_v41, 2 }
 0x456   :  { %v2203_v55 = vpop.f32.mrb[16].mxu1  ;;  %5255 = vmatprep.mubr.msk.bf16.mxu1 %vm2239_vm5, %v7649_v46  ;;  %v8616_v56 = vshll.u32 %v7649_v46, 16  ;;  %v8613_v58 = vshrl.u32 %v7649_v46, 16  ;;  %v3064_v59 = vrot.slane %v7649_v46, 1  ;;  %v3770_v60 = vrot.slane %v7649_v46, 2 }
 0x457   :  { %v2205_v63 = vpop.f32.mrb[17].mxu1  ;;  %2527 = vmatmul.mubr.bf16.gmra.mrb[36].mxu1 %v7585_v57  ;;  %v2680_v0 = vrot.slane %v2678_v51, 1  ;;  %v7674_v62 = vsel %vm3055_vm6, %v3062_v5, %v3066_v53  ;;  %v3415_v2 = vrot.slane %v2689_v52, 1  ;;  %v3416_v4 = vrot.slane %v2678_v51, 2  ;;  %v2292_v26 = vld [vmem:[#allocation2 + $0x68] sm:$0xff] }
 0x458   :  { %2256 = vst.msk [vmem:[#allocation2 + $0x88] sm:$0xff] %vm2239_vm5, %v2205_v63  ;;  %2889 = vmatpush1.bf16.msra.mxu1 %v6329_v47  ;;  %v7681_v15 = vsel %vm3055_vm6, %v3060_v12, %v3064_v59  ;;  %v3411_v7 = vrot.slane %v8613_v58, 1  ;;  %v7688_v5 = vsel %vm3761_vm9, %v3766_v35, %v3770_v60  ;;  %v3412_v12 = vrot.slane %v8616_v56, 2 }
 0x459   :  { %2890 = vmatprep.subr.bf16.mxu1 %v6334_v50  ;;  %v7694_v19 = vsel %vm2635_vm7, %v2676_v48, %v2680_v0  ;;  %v3417_v20 = vor.u32 %v3416_v4, %v3415_v2  ;;  %v7713_v35 = vsel %vm3761_vm9, %v3768_v6, %v3772_v23  ;;  %v2691_v50 = vor.u32 %v2689_v52, %v2680_v0 }
 0x45a   :  { %v2209_v22 = vpop.f32.mrb[18].mxu1  ;;  %v3413_v30 = vor.u32 %v3412_v12, %v3411_v7  ;;  %8633 = vst [vmem:[#allocation7_spill] sm:$0xff] %v7713_v35 }
 0x45b   :  { %v2211_v24 = vpop.f32.mrb[19].mxu1  ;;  %v2294_v27 = vld [vmem:[#allocation2 + $0x78] sm:$0xff]  ;;  %v7699_v28 = vpack.c.bf16 %v2209_v22, %v2203_v55  ;;  %v7702_v32 = vsel %vm3382_vm8, %v3409_v31, %v3417_v20 }
 0x45c   :  { %2258 = vst.msk [vmem:[#allocation2 + $0x98] sm:$0xff] %vm2239_vm5, %v2211_v24  ;;  %v7705_v33 = vpack.c.bf16 %v2294_v27, %v2292_v26  ;;  %2891 = vmatpush1.bf16.msra.mxu1 %v6332_v14  ;;  %v6340_v31 = vld [vmem:[%s8598_s4 + $0x11c] ss:$8 sps:$4 sm:$0xff]   ;;  %v7722_v47 = vsel %vm3382_vm8, %v3405_v42, %v3413_v30  ;;  %v6338_v14 = vld [vmem:[%s8598_s4 + $0x118] ss:$8 sps:$4 sm:$0xff]  }
 0x45d   :  { %2892 = vmatprep.subr.bf16.mxu1 %v6337_v16  ;;  %v2693_v37 = vshll.u32 %v7699_v28, 16  ;;  %v2704_v39 = vshrl.u32 %v7699_v28, 16  ;;  %v3070_v40 = vrot.slane %v7699_v28, 1 }
 0x45e   :  { %v2215_v48 = vpop.f32.mrb[20].mxu1  ;;  %5256 = vmatprep.mubr.msk.bf16.mxu1 %vm2239_vm5, %v7705_v33  ;;  %v8614_v57 = vshll.u32 %v7705_v33, 16  ;;  %v8612_v6 = vshrl.u32 %v7705_v33, 16  ;;  %v3068_v51 = vrot.slane %v7705_v33, 1  ;;  %v3774_v22 = vrot.slane %v7705_v33, 2 }
 0x45f   :  { %v2217_v55 = vpop.f32.mrb[21].mxu1  ;;  %2537 = vmatmul.mubr.bf16.gmra.mrb[40].mxu1 %v7638_v41  ;;  %v2695_v63 = vrot.slane %v2693_v37, 1  ;;  %v7731_v2 = vsel %vm3055_vm6, %v3066_v53, %v3070_v40  ;;  %v3423_v42 = vrot.slane %v2704_v39, 1  ;;  %v3424_v4 = vrot.slane %v2693_v37, 2  ;;  %v6343_v41 = vld [vmem:[%s8598_s4 + $0x12c] ss:$8 sps:$4 sm:$0xff]  }
 0x460   :  { %2260 = vst.msk [vmem:[#allocation2 + $0xa8] sm:$0xff] %vm2239_vm5, %v2217_v55  ;;  %2893 = vmatpush1.bf16.msra.mxu1 %v6335_v34  ;;  %v7738_v52 = vsel %vm3055_vm6, %v3064_v59, %v3068_v51  ;;  %v3419_v0 = vrot.slane %v8612_v6, 1  ;;  %v3420_v7 = vrot.slane %v8614_v57, 2  ;;  %v3776_v59 = vrot.slane %v7699_v28, 2  ;;  %v2296_v26 = vld [vmem:[#allocation2 + $0x88] sm:$0xff] }
 0x461   :  { %2894 = vmatprep.subr.bf16.mxu1 %v6340_v31  ;;  %v7746_v53 = vsel %vm2635_vm7, %v2691_v50, %v2695_v63  ;;  %v3425_v16 = vor.u32 %v3424_v4, %v3423_v42  ;;  %v6341_v55 = vld [vmem:[%s8598_s4 + $0x128] ss:$8 sps:$4 sm:$0xff]   ;;  %v6346_v42 = vld [vmem:[%s8598_s4 + $0x13c] ss:$8 sps:$4 sm:$0xff]  }
 0x462   :  { %v2221_v12 = vpop.f32.mrb[22].mxu1  ;;  %v3421_v31 = vor.u32 %v3420_v7, %v3419_v0 }
 0x463   :  { %v2223_v24 = vpop.f32.mrb[23].mxu1  ;;  %v2298_v27 = vld [vmem:[#allocation2 + $0x98] sm:$0xff]  ;;  %v7752_v34 = vpack.c.bf16 %v2221_v12, %v2215_v48  ;;  %v7755_v37 = vsel %vm3382_vm8, %v3417_v20, %v3425_v16  ;;  %v7768_v48 = vsel %vm3761_vm9, %v3770_v60, %v3774_v22  ;;  %v7773_v20 = vsel %vm3761_vm9, %v3772_v23, %v3776_v59  ;;  %v5280_v23 = vld [vmem:[%s8598_s4 + $0x148] sm:$0xff] }
 0x464   :  { %2262 = vst.msk [vmem:[#allocation2 + $0xb8] sm:$0xff] %vm2239_vm5, %v2223_v24  ;;  %v7758_v50 = vpack.c.bf16 %v2298_v27, %v2296_v26  ;;  %2895 = vmatpush1.bf16.msra.mxu1 %v6338_v14  ;;  %8634 = vst [vmem:[#allocation8_spill] sm:$0xff] %v7768_v48  ;;  %v7782_v7 = vsel %vm3382_vm8, %v3413_v30, %v3421_v31  ;;  %v2706_v24 = vor.u32 %v2704_v39, %v2695_v63  ;;  %v2606_v30 = vld [vmem:[#allocation2 + $0x8] sm:$0xfe]  ;;  %v6344_v39 = vld [vmem:[%s8598_s4 + $0x138] ss:$8 sps:$4 sm:$0xff]  }
 0x465   :  { %8635 = vst [vmem:[#allocation9_spill] sm:$0xff] %v7773_v20  ;;  %2896 = vmatprep.subr.bf16.mxu1 %v6343_v41  ;;  %v2708_v4 = vshll.u32 %v7752_v34, 16  ;;  %v8619_v14 = vshrl.u32 %v7752_v34, 16  ;;  %v8617_v0 = vrot.slane %v7752_v34, 1  ;;  %v2610_v63 = vpack.c.bf16 %v7549_v17, %v2606_v30 }
 0x466   :  { %v7784_v60 = vpop.f32.mrb[24].mxu1  ;;  %5257 = vmatprep.mubr.msk.bf16.mxu1 %vm2239_vm5, %v7758_v50  ;;  %v8620_v41 = vshll.u32 %v7758_v50, 16  ;;  %v8618_v12 = vshrl.u32 %v7758_v50, 16  ;;  %v3072_v26 = vrot.slane %v7758_v50, 1  ;;  %v5301_v9 = vcombine.low %v5280_v23, %v5280_v23 }
 0x467   :  { %v2229_v27 = vpop.f32.mrb[25].mxu1  ;;  %2547 = vmatmul.mubr.bf16.gmra.mrb[44].mxu1 %v7699_v28  ;;  %v7795_v1 = vrot.slane %v2708_v4, 1  ;;  %v7800_v13 = vsel %vm3055_vm6, %v3070_v40, %v8617_v0  ;;  %v3431_v11 = vrot.slane %v8619_v14, 1  ;;  %v3432_v6 = vrot.slane %v2708_v4, 2 }
 0x468   :  { %2264 = vst.msk [vmem:[#allocation2 + $0xc8] sm:$0xff] %vm2239_vm5, %v2229_v27  ;;  %2897 = vmatpush1.bf16.msra.mxu1 %v6341_v55  ;;  %v7810_v58 = vsel %vm3055_vm6, %v3068_v51, %v3072_v26  ;;  %v3427_v40 = vrot.slane %v8618_v12, 1  ;;  %v3428_v57 = vrot.slane %v8620_v41, 2  ;;  %v5302_v4 = vcombine.high %v5280_v23, %v5280_v23  ;;  %v2300_v51 = vld [vmem:[#allocation2 + $0xa8] sm:$0xff] }
 0x469   :  { %2898 = vmatprep.subr.bf16.mxu1 %v6346_v42  ;;  %v7818_v55 = vsel %vm2635_vm7, %v2706_v24, %v7795_v1  ;;  %v7820_v0 = vor.u32 %v3432_v6, %v3431_v11  ;;  %v3778_v12 = vrot.slane %v7758_v50, 2  ;;  %v8621_v14 = vrot.slane %v7752_v34, 2  ;;  %v6351_v6 = vld [vmem:[%s8598_s4 + $0x154] ss:$8 sps:$4 sm:$0xff]  }
 0x46a   :  { %v2233_v27 = vpop.f32.mrb[26].mxu1  ;;  %v3429_v56 = vor.u32 %v3428_v57, %v3427_v40  ;;  %v2651_v23 = vshll.u32 %v2610_v63, 16  ;;  %v2875_v57 = vsel %vm2082_vm2, %v5301_v9, 0 }
 0x46b   :  { %2265 = vst [vmem:[#allocation2 + $0xd0] sm:$0xff] %v2233_v27  ;;  %v2235_v17 = vpop.f32.mrb[27].mxu1  ;;  %v2302_v30 = vld [vmem:[#allocation2 + $0xb8] sm:$0xff]  ;;  %v7832_v11 = vsel %vm3382_vm8, %v3425_v16, %v7820_v0  ;;  %v7849_v16 = vsel %vm3761_vm9, %v3776_v59, %v8621_v14 }
 0x46c   :  { %2266 = vst.msk [vmem:[#allocation2 + $0xd8] sm:$0xff] %vm2239_vm5, %v2235_v17  ;;  %v7825_v42 = vpack.c.bf16 %v2302_v30, %v2300_v51  ;;  %2899 = vmatpush1.bf16.msra.mxu1 %v6344_v39  ;;  %v7828_v24 = vsel %vm3382_vm8, %v3421_v31, %v3429_v56  ;;  %v7842_v39 = vsel %vm3761_vm9, %v3774_v22, %v3778_v12  ;;  %8637 = vst [vmem:[#allocation11_spill] sm:$0xff] %v7849_v16 }
 0x46d   :  { %5303 = vmatprep.subr.msk.bf16.mxu1 %vm2082_vm2, %v5302_v4  ;;  %8636 = vst [vmem:[#allocation10_spill] sm:$0xff] %v7842_v39  ;;  %v2653_v22 = vrot.slane %v2651_v23, 1  ;;  %v2649_v17 = vshrl.u32 %v2610_v63, 16  ;;  %v2657_v51 = vrot.slane %v2655_v8, 1 }
 0x46e   :  { %5258 = vmatprep.mubr.msk.bf16.mxu1 %vm2239_vm5, %v7825_v42  ;;  %v8627_v9 = vshll.u32 %v7825_v42, 16  ;;  %v8624_v31 = vshrl.u32 %v7825_v42, 16  ;;  %v3076_v40 = vrot.slane %v7825_v42, 1  ;;  %v3782_v4 = vrot.slane %v7825_v42, 2 }
 0x46f   :  { %2557 = vmatmul.mubr.bf16.gmra.mrb[48].mxu1 %v7752_v34  ;;  %v7870_v14 = vld [vmem:[#allocation2 + $0xc8] sm:$0xff]  ;;  %v2654_v8 = vor.u32 %v2653_v22, %v2649_v17 }
 0x470   :  { %2901 = vmatpush1.bf16.msra.mxu1 %v2875_v57  ;;  %v7859_v28 = vsel %vm3055_vm6, %v3072_v26, %v3076_v40  ;;  %v3435_v59 = vrot.slane %v8624_v31, 1  ;;  %v7864_v27 = vsel %vm3761_vm9, %v3778_v12, %v3782_v4  ;;  %v3436_v30 = vrot.slane %v8627_v9, 2 }
 0x471   :  { %8638 = vst [vmem:[#allocation12_spill] sm:$0xff] %v7864_v27  ;;  %3221 = vmatprep.subr.bf16.mxu1 %v6351_v6 }
 0x472   :  { %v2305_v41 = vld [vmem:[#allocation2 + $0xd0] sm:$0xf]  ;;  %v3437_v63 = vor.u32 %v3436_v30, %v3435_v59  ;;  %v2658_v59 = vsel %vm2635_vm7, %v2654_v8, %v2657_v51 }
 0x473   :  { %v2607_v23 = vld [vmem:[#allocation2 + $0xd0] sm:$0x1f]  ;;  %v2306_v26 = vld [vmem:[#allocation2 + $0xd8] sm:$0xf]  ;;  %v2319_v20 = vpack.c.bf16 %v2305_v41, %v7784_v60 }
 0x474   :  { %v3013_v57 = vld [vmem:[#allocation2 + $0xd0] sm:$0x3f]  ;;  %v7873_v3 = vpack.c.bf16 %v2607_v23, %v7784_v60  ;;  %v3014_v31 = vld [vmem:[#allocation2 + $0xd8] sm:$0x3f]  ;;  %v2320_v10 = vpack.c.bf16 %v2306_v26, %v7870_v14  ;;  %v7883_v23 = vsel %vm3382_vm8, %v3429_v56, %v3437_v63  ;;  %v8640_v56 = vrot.slane %v7752_v34, 1 }
 0x475   :  { %v3017_v12 = vpack.c.bf16 %v3013_v57, %v7784_v60  ;;  %v3018_v6 = vpack.c.bf16 %v3014_v31, %v7870_v14  ;;  %v3355_v16 = vld [vmem:[#allocation2 + $0xd8] sm:$0x7f]  ;;  %v3354_v9 = vld [vmem:[#allocation2 + $0xd0] sm:$0x7f]  ;;  %v8639_v31 = vshrl.u32 %v7752_v34, 16 }
 0x476   :  { %v3730_v27 = vld [vmem:[#allocation2 + $0xd8] sm:$0xff]  ;;  %v2723_v39 = vshll.u32 %v7873_v3, 16  ;;  %v3729_v48 = vld [vmem:[#allocation2 + $0xd0] sm:$0xff]  ;;  %5259 = vmatprep.mubr.msk.bf16.mxu1 %vm2239_vm5, %v2320_v10  ;;  %v3359_v41 = vpack.c.bf16 %v3355_v16, %v7870_v14  ;;  %v3358_v10 = vpack.c.bf16 %v3354_v9, %v7784_v60 }
 0x477   :  { %v7880_v35 = vrot.slane %v3017_v12, 1  ;;  %v2721_v22 = vor.u32 %v8639_v31, %v7795_v1  ;;  %v7890_v17 = vrot.slane %v3018_v6, 1  ;;  %2567 = vmatmul.mubr.bf16.gmra.mrb[52].mxu1 %v2319_v20  ;;  %v3734_v26 = vpack.c.bf16 %v3730_v27, %v7870_v14 }
 0x478   :  { %v7893_v30 = vrot.slane %v2723_v39, 1  ;;  %5304 = vmatprep.mubr.msk.bf16.mxu1 %vm2239_vm5, %v2658_v59  ;;  %v3449_v16 = vshrl.u32 %v3359_v41, 16  ;;  %v3733_v20 = vpack.c.bf16 %v3729_v48, %v7784_v60  ;;  %v3452_v12 = vshll.u32 %v3359_v41, 16  ;;  %v6349_v48 = vld [vmem:[%s8598_s4 + $0x150] ss:$8 sps:$4 sm:$0xff]  }
 0x479   :  { %v7899_v57 = vsel %vm3055_vm6, %v8640_v56, %v7880_v35  ;;  %v7906_v1 = vsel %vm3055_vm6, %v3076_v40, %v7890_v17  ;;  %v3440_v8 = vshrl.u32 %v3358_v10, 16  ;;  %v8641_v6 = vshll.u32 %v7649_v46, 16 }
 0x47a   :  { %v7911_v39 = vsel %vm2635_vm7, %v2721_v22, %v7893_v30  ;;  %v3451_v31 = vrot.slane %v3449_v16, 1  ;;  %v3443_v27 = vshll.u32 %v3358_v10, 16  ;;  %v3454_v56 = vrot.slane %v3452_v12, 2 }
 0x47b   :  { %v2672_v9 = vrot.slane %v8641_v6, 1  ;;  %v3442_v59 = vrot.slane %v3440_v8, 1  ;;  %v7915_v45 = vrot.slane %v3734_v26, 2  ;;  %v7917_v40 = vrot.slane %v3733_v20, 2  ;;  %v6354_v6 = vld [vmem:[%s8598_s4 + $0x164] ss:$8 sps:$4 sm:$0xff]  }
 0x47c   :  { %v3445_v60 = vrot.slane %v3443_v27, 2  ;;  %v8642_v22 = vshrl.u32 %v7590_v61, 16  ;;  %v7927_v16 = vor.u32 %v3454_v56, %v3451_v31  ;;  %v8643_v26 = vrot.slane %v7752_v34, 2  ;;  %v6352_v34 = vld [vmem:[%s8598_s4 + $0x160] ss:$8 sps:$4 sm:$0xff]  }
 0x47d   :  { %v7931_v10 = vsel %vm3761_vm9, %v3782_v4, %v7915_v45  ;;  %v6355_v31 = vld [vmem:[%s8598_s4 + $0x170] ss:$8 sps:$4 sm:$0xff]   ;;  %v8645_v27 = vshrl.u32 %v7649_v46, 16  ;;  %v6363_v46 = vld [vmem:[%s8598_s4 + $0x194] ss:$8 sps:$4 sm:$0xff]  }
 0x47e   :  { %v2669_v41 = vor.u32 %v8642_v22, %v2657_v51  ;;  %v7937_v20 = vsel %vm3761_vm9, %v8643_v26, %v7917_v40  ;;  %v7939_v12 = vor.u32 %v3445_v60, %v3442_v59  ;;  %v7945_v51 = vsel %vm3382_vm8, %v3437_v63, %v7927_v16 }
 0x47f   :  { %2913 = vmatmul.mubr.bf16.vlgmr.msra.gmra.mrb[28].mxu1 %v7579_v44  ;;  %v6357_v44 = vld [vmem:[%s8598_s4 + $0x174] ss:$8 sps:$4 sm:$0xff]   ;;  %v8644_v63 = vshll.u32 %v7705_v33, 16  ;;  %v2684_v56 = vor.u32 %v8645_v27, %v2672_v9  ;;  %v8647_v22 = vshrl.u32 %v7705_v33, 16 }
 0x480   :  { %v2673_v61 = vsel %vm2635_vm7, %v2669_v41, %v2672_v9  ;;  %3222 = vmatpush1.bf16.msra.mxu1 %v6349_v48  ;;  %v7954_v4 = vsel %vm3382_vm8, %v7820_v0, %v7939_v12  ;;  %v6360_v0 = vld [vmem:[%s8598_s4 + $0x184] ss:$8 sps:$4 sm:$0xff]   ;;  %v6358_v48 = vld [vmem:[%s8598_s4 + $0x180] ss:$8 sps:$4 sm:$0xff]   ;;  %v8646_v9 = vshll.u32 %v7758_v50, 16 }
 0x481   :  { %5305 = vmatprep.mubr.msk.bf16.mxu1 %vm2239_vm5, %v2673_v61  ;;  %3223 = vmatprep.subr.bf16.mxu1 %v6354_v6  ;;  %v2687_v8 = vrot.slane %v8644_v63, 1  ;;  %v6366_v6 = vld [vmem:[%s8598_s4 + $0x1a4] ss:$8 sps:$4 sm:$0xff]   ;;  %v6364_v61 = vld [vmem:[%s8598_s4 + $0x1a0] ss:$8 sps:$4 sm:$0xff]  }
 0x482   :  { %v2702_v60 = vrot.slane %v8646_v9, 1  ;;  %v6369_v33 = vld [vmem:[%s8598_s4 + $0x1b4] ss:$8 sps:$4 sm:$0xff]  }
 0x483   :  { %v2688_v59 = vsel %vm2635_vm7, %v2684_v56, %v2687_v8  ;;  %v2699_v41 = vor.u32 %v8647_v22, %v2687_v8  ;;  %v6367_v8 = vld [vmem:[%s8598_s4 + $0x1b0] ss:$8 sps:$4 sm:$0xff]   ;;  %v6372_v56 = vld [vmem:[%s8598_s4 + $0x1c4] ss:$8 sps:$4 sm:$0xff]  }
 0x484   :  { %3224 = vmatpush1.bf16.msra.mxu1 %v6352_v34  ;;  %v2608_v34 = vld [vmem:[#allocation2 + $0xd8] sm:$0x1f] }
 0x485   :  { %3225 = vmatprep.subr.bf16.mxu1 %v6357_v44  ;;  %v2703_v26 = vsel %vm2635_vm7, %v2699_v41, %v2702_v60  ;;  %v8648_v44 = vshll.u32 %v7825_v42, 16 }
 0x487   :  { %2923 = vmatmul.mubr.bf16.gmra.mrb[32].mxu1 %v7628_v29  ;;  %v6361_v29 = vld [vmem:[%s8598_s4 + $0x190] ss:$8 sps:$4 sm:$0xff]   ;;  %v2717_v63 = vrot.slane %v8648_v44, 1 }
 0x488   :  { %5306 = vmatprep.mubr.msk.bf16.mxu1 %vm2239_vm5, %v2688_v59  ;;  %3226 = vmatpush1.bf16.msra.mxu1 %v6355_v31  ;;  %v8649_v31 = vshrl.u32 %v7758_v50, 16  ;;  %v6375_v50 = vld [vmem:[%s8598_s4 + $0x1d4] ss:$8 sps:$4 sm:$0xff]  }
 0x489   :  { %3227 = vmatprep.subr.bf16.mxu1 %v6360_v0 }
 0x48a   :  { %v2714_v27 = vor.u32 %v8649_v31, %v2702_v60  ;;  %v6378_v60 = vld [vmem:[%s8598_s4 + $0x1e4] ss:$8 sps:$4 sm:$0xff]  }
 0x48b   :  { %v6401_v31 = vld [vmem:[%s8598_s4 + $0x25c] ss:$8 sps:$4 sm:$0xff]  }
 0x48c   :  { %3228 = vmatpush1.bf16.msra.mxu1 %v6358_v48  ;;  %v2718_v0 = vsel %vm2635_vm7, %v2714_v27, %v2717_v63  ;;  %v6399_v27 = vld [vmem:[%s8598_s4 + $0x258] ss:$8 sps:$4 sm:$0xff]  }
 0x48d   :  { %3229 = vmatprep.subr.bf16.mxu1 %v6363_v46  ;;  %v8650_v46 = vshrl.u32 %v7825_v42, 16  ;;  %v6376_v42 = vld [vmem:[%s8598_s4 + $0x1e0] ss:$8 sps:$4 sm:$0xff]  }
 0x48f   :  { %2933 = vmatmul.mubr.bf16.gmra.mrb[36].mxu1 %v7694_v19  ;;  %v2612_v19 = vpack.c.bf16 %v2608_v34, %v7870_v14  ;;  %v6370_v14 = vld [vmem:[%s8598_s4 + $0x1c0] ss:$8 sps:$4 sm:$0xff]   ;;  %v2729_v9 = vor.u32 %v8650_v46, %v2717_v63 }
 0x490   :  { %5307 = vmatprep.mubr.msk.bf16.mxu1 %vm2239_vm5, %v2703_v26  ;;  %3230 = vmatpush1.bf16.msra.mxu1 %v6361_v29  ;;  %v5331_v29 = vld [vmem:[%s8598_s4 + $0x1f0] sm:$0xff]  ;;  %v6381_v63 = vld [vmem:[%s8598_s4 + $0x1f8] ss:$8 sps:$4 sm:$0xff]  }
 0x491   :  { %3231 = vmatprep.subr.bf16.mxu1 %v6366_v6  ;;  %v2731_v59 = vshll.u32 %v2612_v19, 16  ;;  %v5353_v41 = vcombine.high %v5331_v29, %v5331_v29  ;;  %v5352_v6 = vcombine.low %v5331_v29, %v5331_v29  ;;  %v2738_v26 = vshrl.u32 %v2612_v19, 16  ;;  %v6395_v19 = vld [vmem:[%s8598_s4 + $0x23c] ss:$8 sps:$4 sm:$0xff]   ;;  %v6425_v46 = vld [vmem:[%s8598_s4 + $0x2e0] ss:$8 sps:$4 sm:$0xff]  }
 0x492   :  { %v6439_v29 = vld [vmem:[%s8598_s4 + $0x324] ss:$8 sps:$4 sm:$0xff]  }
 0x493   :  { %v2733_v48 = vrot.slane %v2731_v59, 1  ;;  %v6408_v59 = vld [vmem:[%s8598_s4 + $0x288] ss:$8 sps:$4 sm:$0xff]  }
 0x494   :  { %3232 = vmatpush1.bf16.msra.mxu1 %v6364_v61  ;;  %v3216_v61 = vsel %vm2082_vm2, %v5352_v6, 0 }
 0x495   :  { %3233 = vmatprep.subr.bf16.mxu1 %v6369_v33  ;;  %v2734_v22 = vsel %vm2635_vm7, %v2729_v9, %v2733_v48  ;;  %v2740_v34 = vor.u32 %v2738_v26, %v2733_v48  ;;  %v2735_v33 = vshrl.u32 %v7873_v3, 16  ;;  %v6384_v3 = vld [vmem:[%s8598_s4 + $0x208] ss:$8 sps:$4 sm:$0xff]   ;;  %v6433_v9 = vld [vmem:[%s8598_s4 + $0x304] ss:$8 sps:$4 sm:$0xff]  }
 0x497   :  { %2943 = vmatmul.mubr.bf16.gmra.mrb[40].mxu1 %v7746_v53  ;;  %v6373_v53 = vld [vmem:[%s8598_s4 + $0x1d0] ss:$8 sps:$4 sm:$0xff]   ;;  %v2737_v44 = vor.u32 %v2735_v33, %v7893_v30 }
 0x498   :  { %5308 = vmatprep.mubr.msk.bf16.mxu1 %vm2239_vm5, %v2718_v0  ;;  %3234 = vmatpush1.bf16.msra.mxu1 %v6367_v8  ;;  %v6387_v30 = vld [vmem:[%s8598_s4 + $0x218] ss:$8 sps:$4 sm:$0xff]  }
 0x499   :  { %3235 = vmatprep.subr.bf16.mxu1 %v6372_v56  ;;  %v6393_v8 = vld [vmem:[%s8598_s4 + $0x238] ss:$8 sps:$4 sm:$0xff]   ;;  %v6407_v56 = vld [vmem:[%s8598_s4 + $0x27c] ss:$8 sps:$4 sm:$0xff]  }
 0x49a   :  { %v6405_v0 = vld [vmem:[%s8598_s4 + $0x278] ss:$8 sps:$4 sm:$0xff]  }
 0x49c   :  { %3236 = vmatpush1.bf16.msra.mxu1 %v6370_v14 }
 0x49d   :  { %3237 = vmatprep.subr.bf16.mxu1 %v6375_v50 }
 0x49f   :  { %2953 = vmatmul.mubr.bf16.gmra.mrb[44].mxu1 %v7818_v55  ;;  %v6383_v55 = vld [vmem:[%s8598_s4 + $0x1fc] ss:$8 sps:$4 sm:$0xff]  }
 0x4a0   :  { %5309 = vmatprep.mubr.msk.bf16.mxu1 %vm2239_vm5, %v2734_v22  ;;  %3238 = vmatpush1.bf16.msra.mxu1 %v6373_v53  ;;  %v6418_v53 = vld [vmem:[%s8598_s4 + $0x2b4] ss:$8 sps:$4 sm:$0xff]   ;;  %v6437_v22 = vld [vmem:[%s8598_s4 + $0x320] ss:$8 sps:$4 sm:$0xff]  }
 0x4a1   :  { %3239 = vmatprep.subr.bf16.mxu1 %v6378_v60  ;;  %v6431_v60 = vld [vmem:[%s8598_s4 + $0x300] ss:$8 sps:$4 sm:$0xff]  }
 0x4a4   :  { %3240 = vmatpush1.bf16.msra.mxu1 %v6376_v42  ;;  %v6440_v42 = vld [vmem:[%s8598_s4 + $0x330] ss:$8 sps:$4 sm:$0xff]  }
 0x4a5   :  { %5354 = vmatprep.subr.msk.bf16.mxu1 %vm2082_vm2, %v5353_v41 }
 0x4a7   :  { %2963 = vmatmul.mubr.bf16.gmra.mrb[48].mxu1 %v7911_v39  ;;  %v6386_v39 = vld [vmem:[%s8598_s4 + $0x20c] ss:$8 sps:$4 sm:$0xff]  }
 0x4a8   :  { %5310 = vmatprep.mubr.msk.bf16.mxu1 %vm2239_vm5, %v2740_v34  ;;  %3242 = vmatpush1.bf16.msra.mxu1 %v3216_v61  ;;  %v8654_v61 = vld [vmem:[#allocation10_spill] sm:$0xff] }
 0x4a9   :  { %3596 = vmatprep.subr.bf16.mxu1 %v6383_v55  ;;  %v8658_v55 = vld [vmem:[#allocation4_spill] sm:$0xff] }
 0x4aa   :  { %v8659_v34 = vsub.s32 0, %v8658_v55 }
 0x4af   :  { %2973 = vmatmul.mubr.bf16.gmra.mrb[52].mxu1 %v2737_v44 }
 0x4b0   :  { %5355 = vmatprep.mubr.msk.bf16.mxu1 %vm2239_vm5, %v7617_v25  ;;  %v6389_v25 = vld [vmem:[%s8598_s4 + $0x21c] ss:$8 sps:$4 sm:$0xff]  }
 0x4b7   :  { %3254 = vmatmul.mubr.bf16.vlgmr.msra.gmra.mrb[28].mxu1 %v7569_v38  ;;  %v6392_v38 = vld [vmem:[%s8598_s4 + $0x22c] ss:$8 sps:$4 sm:$0xff]  }
 0x4b8   :  { %5356 = vmatprep.mubr.msk.bf16.mxu1 %vm2239_vm5, %v7681_v15  ;;  %3597 = vmatpush1.bf16.msra.mxu1 %v6381_v63  ;;  %v6390_v15 = vld [vmem:[%s8598_s4 + $0x228] ss:$8 sps:$4 sm:$0xff]  }
 0x4b9   :  { %3598 = vmatprep.subr.bf16.mxu1 %v6386_v39 }
 0x4bc   :  { %3599 = vmatpush1.bf16.msra.mxu1 %v6384_v3 }
 0x4bd   :  { %3600 = vmatprep.subr.bf16.mxu1 %v6389_v25 }
 0x4bf   :  { %3264 = vmatmul.mubr.bf16.gmra.mrb[32].mxu1 %v7610_v21  ;;  %v6398_v21 = vld [vmem:[%s8598_s4 + $0x24c] ss:$8 sps:$4 sm:$0xff]  }
 0x4c0   :  { %5357 = vmatprep.mubr.msk.bf16.mxu1 %vm2239_vm5, %v7738_v52  ;;  %3601 = vmatpush1.bf16.msra.mxu1 %v6387_v30  ;;  %v6396_v52 = vld [vmem:[%s8598_s4 + $0x248] ss:$8 sps:$4 sm:$0xff]  }
 0x4c1   :  { %3602 = vmatprep.subr.bf16.mxu1 %v6392_v38 }
 0x4c4   :  { %3603 = vmatpush1.bf16.msra.mxu1 %v6390_v15 }
 0x4c5   :  { %3604 = vmatprep.subr.bf16.mxu1 %v6395_v19 }
 0x4c7   :  { %3274 = vmatmul.mubr.bf16.gmra.mrb[36].mxu1 %v7674_v62  ;;  %v6402_v62 = vld [vmem:[%s8598_s4 + $0x268] ss:$8 sps:$4 sm:$0xff]  }
 0x4c8   :  { %5358 = vmatprep.mubr.msk.bf16.mxu1 %vm2239_vm5, %v7810_v58  ;;  %3605 = vmatpush1.bf16.msra.mxu1 %v6393_v8  ;;  %v6404_v58 = vld [vmem:[%s8598_s4 + $0x26c] ss:$8 sps:$4 sm:$0xff]  }
 0x4c9   :  { %3606 = vmatprep.subr.bf16.mxu1 %v6398_v21 }
 0x4cc   :  { %3607 = vmatpush1.bf16.msra.mxu1 %v6396_v52 }
 0x4cd   :  { %3608 = vmatprep.subr.bf16.mxu1 %v6401_v31 }
 0x4cf   :  { %3284 = vmatmul.mubr.bf16.gmra.mrb[40].mxu1 %v7731_v2  ;;  %v6410_v2 = vld [vmem:[%s8598_s4 + $0x28c] ss:$8 sps:$4 sm:$0xff]  }
 0x4d0   :  { %5359 = vmatprep.mubr.msk.bf16.mxu1 %vm2239_vm5, %v7859_v28  ;;  %3609 = vmatpush1.bf16.msra.mxu1 %v6399_v27  ;;  %v5382_v28 = vld [vmem:[%s8598_s4 + $0x298] sm:$0xff] }
 0x4d1   :  { %3610 = vmatprep.subr.bf16.mxu1 %v6404_v58  ;;  %v5404_v14 = vcombine.high %v5382_v28, %v5382_v28  ;;  %v5403_v50 = vcombine.low %v5382_v28, %v5382_v28 }
 0x4d3   :  { %v3591_v48 = vsel %vm2082_vm2, %v5403_v50, 0 }
 0x4d4   :  { %3611 = vmatpush1.bf16.msra.mxu1 %v6402_v62 }
 0x4d5   :  { %3612 = vmatprep.subr.bf16.mxu1 %v6407_v56 }
 0x4d7   :  { %3294 = vmatmul.mubr.bf16.gmra.mrb[44].mxu1 %v7800_v13  ;;  %v6415_v13 = vld [vmem:[%s8598_s4 + $0x2a4] ss:$8 sps:$4 sm:$0xff]  }
 0x4d8   :  { %5360 = vmatprep.mubr.msk.bf16.mxu1 %vm2239_vm5, %v7906_v1  ;;  %3613 = vmatpush1.bf16.msra.mxu1 %v6405_v0  ;;  %v6413_v1 = vld [vmem:[%s8598_s4 + $0x2a0] ss:$8 sps:$4 sm:$0xff]  }
 0x4d9   :  { %3614 = vmatprep.subr.bf16.mxu1 %v6410_v2 }
 0x4dc   :  { %3615 = vmatpush1.bf16.msra.mxu1 %v6408_v59 }
 0x4dd   :  { %5405 = vmatprep.subr.msk.bf16.mxu1 %vm2082_vm2, %v5404_v14 }
 0x4df   :  { %3304 = vmatmul.mubr.bf16.gmra.mrb[48].mxu1 %v7899_v57  ;;  %v6427_v57 = vld [vmem:[%s8598_s4 + $0x2e4] ss:$8 sps:$4 sm:$0xff]  }
 0x4e0   :  { %5361 = vmatprep.mubr.msk.bf16.mxu1 %vm2239_vm5, %v7890_v17  ;;  %3617 = vmatpush1.bf16.msra.mxu1 %v3591_v48  ;;  %v6419_v17 = vld [vmem:[%s8598_s4 + $0x2c0] ss:$8 sps:$4 sm:$0xff]  }
 0x4e1   :  { %3927 = vmatprep.subr.bf16.mxu1 %v6415_v13 }
 0x4e7   :  { %3314 = vmatmul.mubr.bf16.gmra.mrb[52].mxu1 %v7880_v35  ;;  %v6416_v35 = vld [vmem:[%s8598_s4 + $0x2b0] ss:$8 sps:$4 sm:$0xff]  }
 0x4e8   :  { %5406 = vmatprep.mubr.msk.bf16.mxu1 %vm2239_vm5, %v7664_v54  ;;  %v6421_v54 = vld [vmem:[%s8598_s4 + $0x2c4] ss:$8 sps:$4 sm:$0xff]  }
 0x4ef   :  { %3629 = vmatmul.mubr.bf16.vlgmr.msra.gmra.mrb[28].mxu1 %v7622_v18  ;;  %v6424_v18 = vld [vmem:[%s8598_s4 + $0x2d4] ss:$8 sps:$4 sm:$0xff]  }
 0x4f0   :  { %5407 = vmatprep.mubr.msk.bf16.mxu1 %vm2239_vm5, %v7722_v47  ;;  %3928 = vmatpush1.bf16.msra.mxu1 %v6413_v1  ;;  %v6422_v47 = vld [vmem:[%s8598_s4 + $0x2d0] ss:$8 sps:$4 sm:$0xff]  }
 0x4f1   :  { %3929 = vmatprep.subr.bf16.mxu1 %v6418_v53 }
 0x4f4   :  { %3930 = vmatpush1.bf16.msra.mxu1 %v6416_v35 }
 0x4f5   :  { %3931 = vmatprep.subr.bf16.mxu1 %v6421_v54 }
 0x4f7   :  { %3639 = vmatmul.mubr.bf16.gmra.mrb[32].mxu1 %v7641_v43  ;;  %v6430_v43 = vld [vmem:[%s8598_s4 + $0x2f4] ss:$8 sps:$4 sm:$0xff]  }
 0x4f8   :  { %5408 = vmatprep.mubr.msk.bf16.mxu1 %vm2239_vm5, %v7782_v7  ;;  %3932 = vmatpush1.bf16.msra.mxu1 %v6419_v17  ;;  %v6428_v7 = vld [vmem:[%s8598_s4 + $0x2f0] ss:$8 sps:$4 sm:$0xff]  }
 0x4f9   :  { %3933 = vmatprep.subr.bf16.mxu1 %v6424_v18 }
 0x4fc   :  { %3934 = vmatpush1.bf16.msra.mxu1 %v6422_v47 }
 0x4fd   :  { %3935 = vmatprep.subr.bf16.mxu1 %v6427_v57 }
 0x4ff   :  { %3649 = vmatmul.mubr.bf16.gmra.mrb[36].mxu1 %v7702_v32  ;;  %v6436_v32 = vld [vmem:[%s8598_s4 + $0x314] ss:$8 sps:$4 sm:$0xff]  }
 0x500   :  { %5409 = vmatprep.mubr.msk.bf16.mxu1 %vm2239_vm5, %v7828_v24  ;;  %3936 = vmatpush1.bf16.msra.mxu1 %v6425_v46  ;;  %v6434_v24 = vld [vmem:[%s8598_s4 + $0x310] ss:$8 sps:$4 sm:$0xff]  }
 0x501   :  { %3937 = vmatprep.subr.bf16.mxu1 %v6430_v43 }
 0x504   :  { %3938 = vmatpush1.bf16.msra.mxu1 %v6428_v7 }
 0x505   :  { %3939 = vmatprep.subr.bf16.mxu1 %v6433_v9 }
 0x507   :  { %3659 = vmatmul.mubr.bf16.gmra.mrb[40].mxu1 %v7755_v37  ;;  %v6442_v37 = vld [vmem:[%s8598_s4 + $0x334] ss:$8 sps:$4 sm:$0xff]  }
 0x508   :  { %5410 = vmatprep.mubr.msk.bf16.mxu1 %vm2239_vm5, %v7883_v23  ;;  %3940 = vmatpush1.bf16.msra.mxu1 %v6431_v60  ;;  %v5433_v23 = vld [vmem:[%s8598_s4 + $0x340] sm:$0xff] }
 0x509   :  { %3941 = vmatprep.subr.bf16.mxu1 %v6436_v32  ;;  %v5455_v41 = vcombine.high %v5433_v23, %v5433_v23  ;;  %v5454_v6 = vcombine.low %v5433_v23, %v5433_v23 }
 0x50b   :  { %v3922_v26 = vsel %vm2082_vm2, %v5454_v6, 0 }
 0x50c   :  { %3942 = vmatpush1.bf16.msra.mxu1 %v6434_v24 }
 0x50d   :  { %3943 = vmatprep.subr.bf16.mxu1 %v6439_v29 }
 0x50f   :  { %3669 = vmatmul.mubr.bf16.gmra.mrb[44].mxu1 %v7832_v11  ;;  %v8651_v11 = vld [vmem:[#allocation6_spill] sm:$0xff] }
 0x510   :  { %5411 = vmatprep.mubr.msk.bf16.mxu1 %vm2239_vm5, %v7945_v51  ;;  %3944 = vmatpush1.bf16.msra.mxu1 %v6437_v22  ;;  %v8652_v51 = vld [vmem:[#allocation8_spill] sm:$0xff] }
 0x511   :  { %3945 = vmatprep.subr.bf16.mxu1 %v6442_v37 }
 0x514   :  { %3946 = vmatpush1.bf16.msra.mxu1 %v6440_v42 }
 0x515   :  { %5456 = vmatprep.subr.msk.bf16.mxu1 %vm2082_vm2, %v5455_v41 }
 0x517   :  { %3679 = vmatmul.mubr.bf16.gmra.mrb[48].mxu1 %v7954_v4  ;;  %v8653_v4 = vld [vmem:[#allocation7_spill] sm:$0xff] }
 0x518   :  { %5412 = vmatprep.mubr.msk.bf16.mxu1 %vm2239_vm5, %v7927_v16  ;;  %3948 = vmatpush1.bf16.msra.mxu1 %v3922_v26  ;;  %v8655_v16 = vld [vmem:[#allocation9_spill] sm:$0xff] }
 0x51f   :  { %3689 = vmatmul.mubr.bf16.gmra.mrb[52].mxu1 %v7939_v12  ;;  %v8656_v12 = vld [vmem:[#allocation12_spill] sm:$0xff] }
 0x520   :  { %5457 = vmatprep.mubr.msk.bf16.mxu1 %vm2239_vm5, %v7655_v49  ;;  %v8657_v49 = vld [vmem:[#allocation11_spill] sm:$0xff] }
 0x527   :  { %3960 = vmatmul.mubr.bf16.vlgmr.msra.gmra.mrb[28].mxu1 %v7636_v36  ;;  %v6515_v36 = vmov 0.0  }
 0x528   :  { %5458 = vmatprep.mubr.msk.bf16.mxu1 %vm2239_vm5, %v7688_v5  ;;  %5662 = vmatprep.subr.bf16.mxu0 %v6515_v36  ;;  %v2267_v5 = vld [vmem:[%s8600_s5] sm:$0x3] }
 0x529   :  { %v8240_v33 = vrot.slane %v2267_v5, %v8659_v34  ;;  %5674 = vmatprep.mubr.msk.bf16.mxu0 %vm6516_vm11, %v6515_v36 }
 0x52f   :  { %3970 = vmatmul.mubr.bf16.gmra.mrb[32].mxu1 %v8651_v11 }
 0x530   :  { %5459 = vmatprep.mubr.msk.bf16.mxu1 %vm2239_vm5, %v8652_v51 }
 0x537   :  { %3980 = vmatmul.mubr.bf16.gmra.mrb[36].mxu1 %v8653_v4 }
 0x538   :  { %5460 = vmatprep.mubr.msk.bf16.mxu1 %vm2239_vm5, %v8654_v61 }
 0x53f   :  { %3990 = vmatmul.mubr.bf16.gmra.mrb[40].mxu1 %v8655_v16 }
 0x540   :  { %5461 = vmatprep.mubr.msk.bf16.mxu1 %vm2239_vm5, %v8656_v12 }
 0x547   :  { %4000 = vmatmul.mubr.bf16.gmra.mrb[44].mxu1 %v8657_v49 }
 0x548   :  { %5462 = vmatprep.mubr.msk.bf16.mxu1 %vm2239_vm5, %v7931_v10  ;;  %v8660_v10 = vsub.s32 1, %v8658_v55 }
 0x54f   :  { %4010 = vmatmul.mubr.bf16.gmra.mrb[48].mxu1 %v7937_v20  ;;  %v8244_v20 = vrot.slane %v2267_v5, %v8660_v10 }
 0x550   :  { %5463 = vmatprep.mubr.msk.bf16.mxu1 %vm2239_vm5, %v7915_v45 }
 0x557   :  { %4020 = vmatmul.mubr.bf16.gmra.mrb[52].mxu1 %v7917_v40 }
 0x558   :  { %4177 = vmatprep.mubr.f32.mxu1 %v6515_v36 }
 0x5fa   :  { %v3961_v45 = vpop.f32.mrb[28].mxu1 }
 0x5fb   :  { %v5838_v40 = vadd.f32 %v3961_v45, %v8240_v33  ;;  %v3963_v44 = vpop.f32.mrb[29].mxu1 }
 0x5fc   :  { %v5839_v63 = vadd.f32 %v3963_v44, %v8244_v20  ;;  %v3965_v39 = vpop.f32.mrb[30].mxu1 }
 0x5fd   :  { %v5840_v3 = vadd.f32 %v3965_v39, %v8240_v33  ;;  %v3967_v25 = vpop.f32.mrb[31].mxu1  ;;  %v4058_v38 = vmax.f32 %v5838_v40, 0.0 }
 0x5fe   :  { %v5841_v30 = vadd.f32 %v3967_v25, %v8244_v20  ;;  %v4059_v19 = vmax.f32 %v5839_v63, 0.0 }
 0x5ff   :  { %v4060_v15 = vmax.f32 %v5840_v3, 0.0 }
 0x600   :  { %v4061_v8 = vmax.f32 %v5841_v30, 0.0 }
 0x601   :  { %v5746_v21 = vpack.c.bf16 %v4060_v15, %v4058_v38 }
 0x602   :  { %v5744_v52 = vpack.c.bf16 %v4061_v8, %v4059_v19  ;;  %v3971_v31 = vpop.f32.mrb[32].mxu1 }
 0x603   :  { %v5842_v27 = vadd.f32 %v3971_v31, %v8240_v33  ;;  %v3973_v58 = vpop.f32.mrb[33].mxu1 }
 0x604   :  { %v5843_v62 = vadd.f32 %v3973_v58, %v8244_v20  ;;  %v3975_v56 = vpop.f32.mrb[34].mxu1  ;;  %5745 = vmatprep.subr.bf16.mxu1 %v5744_v52 }
 0x605   :  { %v5844_v0 = vadd.f32 %v3975_v56, %v8240_v33  ;;  %v3977_v2 = vpop.f32.mrb[35].mxu1  ;;  %5747 = vmatpush1.bf16.msra.mxu1 %v5746_v21  ;;  %v4062_v59 = vmax.f32 %v5842_v27, 0.0 }
 0x606   :  { %v5845_v28 = vadd.f32 %v3977_v2, %v8244_v20  ;;  %v4063_v50 = vmax.f32 %v5843_v62, 0.0 }
 0x607   :  { %v4064_v14 = vmax.f32 %v5844_v0, 0.0 }
 0x608   :  { %v4065_v48 = vmax.f32 %v5845_v28, 0.0 }
 0x609   :  { %v5750_v13 = vpack.c.bf16 %v4064_v14, %v4062_v59 }
 0x60a   :  { %v5748_v1 = vpack.c.bf16 %v4065_v48, %v4063_v50  ;;  %v3981_v53 = vpop.f32.mrb[36].mxu1 }
 0x60b   :  { %v5846_v35 = vadd.f32 %v3981_v53, %v8240_v33  ;;  %v3983_v54 = vpop.f32.mrb[37].mxu1 }
 0x60c   :  { %v5847_v17 = vadd.f32 %v3983_v54, %v8244_v20  ;;  %v3985_v18 = vpop.f32.mrb[38].mxu1  ;;  %5749 = vmatprep.subr.bf16.mxu1 %v5748_v1 }
 0x60d   :  { %v5848_v47 = vadd.f32 %v3985_v18, %v8240_v33  ;;  %v3987_v57 = vpop.f32.mrb[39].mxu1  ;;  %5751 = vmatpush1.bf16.msra.mxu1 %v5750_v13  ;;  %v4066_v43 = vmax.f32 %v5846_v35, 0.0 }
 0x60e   :  { %v5849_v46 = vadd.f32 %v3987_v57, %v8244_v20  ;;  %v4067_v9 = vmax.f32 %v5847_v17, 0.0 }
 0x60f   :  { %v4068_v7 = vmax.f32 %v5848_v47, 0.0 }
 0x610   :  { %v4069_v60 = vmax.f32 %v5849_v46, 0.0 }
 0x611   :  { %v5754_v32 = vpack.c.bf16 %v4068_v7, %v4066_v43  ;;  %v6480_v7 = vld [vmem:[%s8599_s7 + $0x118] sm:$0xff]  }
 0x612   :  { %v5752_v24 = vpack.c.bf16 %v4069_v60, %v4067_v9  ;;  %v3991_v29 = vpop.f32.mrb[40].mxu1  ;;  %v8662_v9 = vmov 0   ;;  %v4087_v60 = vld [vmem:[%s8601_s6 + $0x8] sm:$0xff] }
 0x613   :  { %v5850_v22 = vadd.f32 %v3991_v29, %v8240_v33  ;;  %v3993_v37 = vpop.f32.mrb[41].mxu1  ;;  %v6447_v29 = vld [vmem:[%s8599_s7 + $0x10] sm:$0xff]  }
 0x614   :  { %v5851_v23 = vadd.f32 %v3993_v37, %v8244_v20  ;;  %v3995_v42 = vpop.f32.mrb[42].mxu1  ;;  %5753 = vmatprep.subr.bf16.mxu1 %v5752_v24  ;;  %v4088_v24 = vld [vmem:[%s8601_s6 + $0x10] sm:$0xff]  ;;  %v6448_v37 = vld [vmem:[%s8599_s7 + $0x18] sm:$0xff]  }
 0x615   :  { %v5852_v41 = vadd.f32 %v3995_v42, %v8240_v33  ;;  %v3997_v6 = vpop.f32.mrb[43].mxu1  ;;  %5755 = vmatpush1.bf16.msra.mxu1 %v5754_v32  ;;  %v4070_v11 = vmax.f32 %v5850_v22, 0.0  ;;  %v6446_v32 = vld [vmem:[%s8599_s7 + $0x8] sm:$0xff]   ;;  %v4089_v22 = vld [vmem:[%s8601_s6 + $0x18] sm:$0xff]  ;;  %v6449_v42 = vld [vmem:[%s8599_s7 + $0x20] sm:$0xff]  }
 0x616   :  { %v5853_v26 = vadd.f32 %v3997_v6, %v8244_v20  ;;  %v4071_v4 = vmax.f32 %v5851_v23, 0.0  ;;  %v4090_v23 = vld [vmem:[%s8601_s6 + $0x20] sm:$0xff]  ;;  %v6451_v6 = vld [vmem:[%s8599_s7 + $0x30] sm:$0xff]  }
 0x617   :  { %v4072_v51 = vmax.f32 %v5852_v41, 0.0  ;;  %v6450_v41 = vld [vmem:[%s8599_s7 + $0x28] sm:$0xff]  }
 0x618   :  { %v4073_v61 = vmax.f32 %v5853_v26, 0.0  ;;  %v6452_v26 = vld [vmem:[%s8599_s7 + $0x38] sm:$0xff]  }
 0x619   :  { %v5758_v16 = vpack.c.bf16 %v4072_v51, %v4070_v11  ;;  %v6453_v11 = vld [vmem:[%s8599_s7 + $0x40] sm:$0xff]   ;;  %v6454_v51 = vld [vmem:[%s8599_s7 + $0x48] sm:$0xff]  }
 0x61a   :  { %v5756_v12 = vpack.c.bf16 %v4073_v61, %v4071_v4  ;;  %v4001_v49 = vpop.f32.mrb[44].mxu1 }
 0x61b   :  { %v5854_v5 = vadd.f32 %v4001_v49, %v8240_v33  ;;  %v4003_v55 = vpop.f32.mrb[45].mxu1 }
 0x61c   :  { %v5855_v34 = vadd.f32 %v4003_v55, %v8244_v20  ;;  %v4005_v10 = vpop.f32.mrb[46].mxu1  ;;  %5757 = vmatprep.subr.bf16.mxu1 %v5756_v12 }
 0x61d   :  { %v5856_v45 = vadd.f32 %v4005_v10, %v8240_v33  ;;  %v4007_v40 = vpop.f32.mrb[47].mxu1  ;;  %5759 = vmatpush1.bf16.msra.mxu1 %v5758_v16  ;;  %v4074_v63 = vmax.f32 %v5854_v5, 0.0  ;;  %v6455_v10 = vld [vmem:[%s8599_s7 + $0x50] sm:$0xff]  }
 0x61e   :  { %v5857_v44 = vadd.f32 %v4007_v40, %v8244_v20  ;;  %v4075_v3 = vmax.f32 %v5855_v34, 0.0 }
 0x61f   :  { %v4076_v39 = vmax.f32 %v5856_v45, 0.0 }
 0x620   :  { %v4077_v25 = vmax.f32 %v5857_v44, 0.0 }
 0x621   :  { %v5762_v30 = vpack.c.bf16 %v4076_v39, %v4074_v63  ;;  %v6456_v39 = vld [vmem:[%s8599_s7 + $0x58] sm:$0xff]  }
 0x622   :  { %v5760_v38 = vpack.c.bf16 %v4077_v25, %v4075_v3  ;;  %v4011_v15 = vpop.f32.mrb[48].mxu1  ;;  %v6457_v25 = vld [vmem:[%s8599_s7 + $0x60] sm:$0xff]  }
 0x623   :  { %v5858_v19 = vadd.f32 %v4011_v15, %v8240_v33  ;;  %v4013_v8 = vpop.f32.mrb[49].mxu1  ;;  %v6460_v15 = vld [vmem:[%s8599_s7 + $0x78] sm:$0xff]  }
 0x624   :  { %v5859_v21 = vadd.f32 %v4013_v8, %v8244_v20  ;;  %v4015_v52 = vpop.f32.mrb[50].mxu1  ;;  %5761 = vmatprep.subr.bf16.mxu1 %v5760_v38  ;;  %v6459_v38 = vld [vmem:[%s8599_s7 + $0x70] sm:$0xff]  }
 0x625   :  { %v5860_v31 = vadd.f32 %v4015_v52, %v8240_v33  ;;  %v4017_v27 = vpop.f32.mrb[51].mxu1  ;;  %5763 = vmatpush1.bf16.msra.mxu1 %v5762_v30  ;;  %v4078_v62 = vmax.f32 %v5858_v19, 0.0  ;;  %v6458_v30 = vld [vmem:[%s8599_s7 + $0x68] sm:$0xff]  }
 0x626   :  { %v5861_v58 = vadd.f32 %v4017_v27, %v8244_v20  ;;  %v4079_v0 = vmax.f32 %v5859_v21, 0.0  ;;  %v6461_v21 = vld [vmem:[%s8599_s7 + $0x80] sm:$0xff]   ;;  %v6462_v52 = vld [vmem:[%s8599_s7 + $0x88] sm:$0xff]   ;;  %v6464_v27 = vld [vmem:[%s8599_s7 + $0x98] sm:$0xff]  }
 0x627   :  { %v4080_v56 = vmax.f32 %v5860_v31, 0.0  ;;  %v6463_v31 = vld [vmem:[%s8599_s7 + $0x90] sm:$0xff]  }
 0x628   :  { %v4081_v2 = vmax.f32 %v5861_v58, 0.0 }
 0x629   :  { %v5766_v28 = vpack.c.bf16 %v4080_v56, %v4078_v62  ;;  %v6465_v62 = vld [vmem:[%s8599_s7 + $0xa0] sm:$0xff]  }
 0x62a   :  { %v5764_v59 = vpack.c.bf16 %v4081_v2, %v4079_v0  ;;  %v4021_v14 = vpop.f32.mrb[52].mxu1  ;;  %v6466_v2 = vld [vmem:[%s8599_s7 + $0xa8] sm:$0xff]  }
 0x62b   :  { %v5862_v50 = vadd.f32 %v4021_v14, %v8240_v33  ;;  %v4023_v48 = vpop.f32.mrb[53].mxu1  ;;  %v6469_v14 = vld [vmem:[%s8599_s7 + $0xc0] sm:$0xff]  }
 0x62c   :  { %v5863_v13 = vadd.f32 %v4023_v48, %v8244_v20  ;;  %v4025_v1 = vpop.f32.mrb[54].mxu1  ;;  %5765 = vmatprep.subr.bf16.mxu1 %v5764_v59  ;;  %v6468_v59 = vld [vmem:[%s8599_s7 + $0xb8] sm:$0xff]   ;;  %v6471_v48 = vld [vmem:[%s8599_s7 + $0xd0] sm:$0xff]  }
 0x62d   :  { %v5864_v53 = vadd.f32 %v4025_v1, %v8240_v33  ;;  %v4027_v35 = vpop.f32.mrb[55].mxu1  ;;  %5767 = vmatpush1.bf16.msra.mxu1 %v5766_v28  ;;  %v4082_v17 = vmax.f32 %v5862_v50, 0.0  ;;  %v4086_v33 = vld [vmem:[%s8601_s6] sm:$0xff]  ;;  %v6467_v28 = vld [vmem:[%s8599_s7 + $0xb0] sm:$0xff]   ;;  %v6470_v50 = vld [vmem:[%s8599_s7 + $0xc8] sm:$0xff]  }
 0x62e   :  { %v5865_v54 = vadd.f32 %v4027_v35, %v8244_v20  ;;  %v4083_v47 = vmax.f32 %v5863_v13, 0.0  ;;  %v6445_v20 = vld [vmem:[%s8599_s7] sm:$0xff]   ;;  %v6472_v13 = vld [vmem:[%s8599_s7 + $0xd8] sm:$0xff]  }
 0x62f   :  { %v4084_v18 = vmax.f32 %v5864_v53, 0.0  ;;  %v6473_v1 = vld [vmem:[%s8599_s7 + $0xe0] sm:$0xff]   ;;  %v6474_v53 = vld [vmem:[%s8599_s7 + $0xe8] sm:$0xff]  }
 0x630   :  { %v4085_v57 = vmax.f32 %v5865_v54, 0.0  ;;  %v6475_v54 = vld [vmem:[%s8599_s7 + $0xf0] sm:$0xff]  }
 0x631   :  { %v5771_v46 = vpack.c.bf16 %v4084_v18, %v4082_v17 }
 0x632   :  { %v5768_v43 = vpack.c.bf16 %v4085_v57, %v4083_v47  ;;  %v6476_v47 = vld [vmem:[%s8599_s7 + $0xf8] sm:$0xff]   ;;  %v6477_v57 = vld [vmem:[%s8599_s7 + $0x100] sm:$0xff]  }
 0x634   :  { %5770 = vmatprep.subr.msk.bf16.mxu1 %vm7371_vm4, %v5768_v43  ;;  %v6479_v43 = vld [vmem:[%s8599_s7 + $0x110] sm:$0xff]  }
 0x635   :  { %5773 = vmatpush1.bf16.msk.msra.mxu1 %vm7371_vm4, %v5771_v46  ;;  %v6478_v46 = vld [vmem:[%s8599_s7 + $0x108] sm:$0xff]  }
 0x636   :  { %4312 = vmatprep.subr.bf16.mxu1 %v8662_v9 }
 0x638   :  { %5466 = vmatmul.mubr.msk.f32.vlgmr.msra.gmra.mrb[56].mxu1 %vm4091_vm10, %v4086_v33  ;;  %v6481_v33 = vld [vmem:[%s8599_s7 + $0x120] sm:$0xff]  }
 0x639   :  { %4183 = vmatprep.mubr.f32.mxu1 %v6515_v36  ;;  %4313 = vmatpush1.bf16.msra.mxu1 %v6445_v20  ;;  %v6482_v20 = vld [vmem:[%s8599_s7 + $0x128] sm:$0xff]  }
 0x63a   :  { %4314 = vmatprep.subr.bf16.mxu1 %v8662_v9 }
 0x63c   :  { %5467 = vmatmul.mubr.msk.f32.gmra.mrb[58].mxu1 %vm4091_vm10, %v4087_v60  ;;  %v6483_v60 = vld [vmem:[%s8599_s7 + $0x130] sm:$0xff]  }
 0x63d   :  { %4189 = vmatprep.mubr.f32.mxu1 %v6515_v36  ;;  %4315 = vmatpush1.bf16.msra.mxu1 %v6446_v32  ;;  %v6484_v32 = vld [vmem:[%s8599_s7 + $0x138] sm:$0xff]  }
 0x63e   :  { %4316 = vmatprep.subr.bf16.mxu1 %v8662_v9 }
 0x640   :  { %5468 = vmatmul.mubr.msk.f32.gmra.mrb[60].mxu1 %vm4091_vm10, %v4088_v24 }
 0x641   :  { %4195 = vmatprep.mubr.f32.mxu1 %v6515_v36  ;;  %4317 = vmatpush1.bf16.msra.mxu1 %v6447_v29  ;;  %v6485_v29 = vld [vmem:[%s8599_s7 + $0x140] sm:$0xff]  }
 0x642   :  { %4318 = vmatprep.subr.bf16.mxu1 %v8662_v9 }
 0x644   :  { %5469 = vmatmul.mubr.msk.f32.gmra.mrb[62].mxu1 %vm4091_vm10, %v4089_v22 }
 0x645   :  { %4201 = vmatprep.mubr.f32.mxu1 %v6515_v36  ;;  %4319 = vmatpush1.bf16.msra.mxu1 %v6448_v37 }
 0x646   :  { %4320 = vmatprep.subr.bf16.mxu1 %v8662_v9 }
 0x648   :  { %5470 = vmatmul.mubr.msk.f32.gmra.mrb[64].mxu1 %vm4091_vm10, %v4090_v23  ;;  %v6486_v23 = vld [vmem:[%s8599_s7 + $0x148] sm:$0xff]  }
 0x649   :  { %4321 = vmatpush1.bf16.msra.mxu1 %v6449_v42  ;;  %v6487_v42 = vld [vmem:[%s8599_s7 + $0x150] sm:$0xff]  }
 0x64a   :  { %4322 = vmatprep.subr.bf16.mxu1 %v8662_v9 }
 0x64d   :  { %4323 = vmatpush1.bf16.msra.mxu1 %v6450_v41  ;;  %v6488_v41 = vld [vmem:[%s8599_s7 + $0x158] sm:$0xff]  }
 0x64e   :  { %4324 = vmatprep.subr.bf16.mxu1 %v8662_v9 }
 0x651   :  { %4325 = vmatpush1.bf16.msra.mxu1 %v6451_v6  ;;  %v6489_v6 = vld [vmem:[%s8599_s7 + $0x160] sm:$0xff]  }
 0x652   :  { %4326 = vmatprep.subr.bf16.mxu1 %v8662_v9 }
 0x655   :  { %4327 = vmatpush1.bf16.msra.mxu1 %v6452_v26  ;;  %v6490_v26 = vld [vmem:[%s8599_s7 + $0x168] sm:$0xff]  }
 0x656   :  { %4328 = vmatprep.subr.bf16.mxu1 %v8662_v9 }
 0x659   :  { %4329 = vmatpush1.bf16.msra.mxu1 %v6453_v11  ;;  %v6491_v11 = vld [vmem:[%s8599_s7 + $0x170] sm:$0xff]  }
 0x65a   :  { %4330 = vmatprep.subr.bf16.mxu1 %v8662_v9 }
 0x65d   :  { %4331 = vmatpush1.bf16.msra.mxu1 %v6454_v51  ;;  %v6492_v51 = vld [vmem:[%s8599_s7 + $0x178] sm:$0xff]  }
 0x65e   :  { %4441 = vmatprep.subr.bf16.mxu1 %v8662_v9 }
 0x70b   :  { %v4179_v4 = vpop.f32.mrb[56].mxu1 }
 0x70c   :  { %v4181_v61 = vpop.f32.mrb[57].mxu1  ;;  %v4227_v45 = vpack.c.bf16 %v4179_v4, %v4179_v4  ;;  %v6493_v4 = vld [vmem:[%s8599_s7 + $0x180] sm:$0xff]  }
 0x70d   :  { %4209 = vst.msk [vmem:[#allocation3 + $0x8] sm:$0xff] %vm129_vm0, %v4181_v61  ;;  %v6494_v61 = vld [vmem:[%s8599_s7 + $0x188] sm:$0xff]  }
 0x70f   :  { %v4185_v16 = vpop.f32.mrb[58].mxu1 }
 0x710   :  { %v4187_v12 = vpop.f32.mrb[59].mxu1  ;;  %v4355_v0 = vpack.c.bf16 %v4185_v16, %v4185_v16  ;;  %v6495_v16 = vld [vmem:[%s8602_s9] sm:$0xff]  }
 0x711   :  { %4211 = vst.msk [vmem:[#allocation3 + $0x18] sm:$0xff] %vm129_vm0, %v4187_v12 }
 0x713   :  { %v8345_v49 = vpop.f32.mrb[60].mxu1 }
 0x714   :  { %v4226_v5 = vld [vmem:[#allocation3 + $0x8] sm:$0xff]  ;;  %v4193_v55 = vpop.f32.mrb[61].mxu1  ;;  %v4484_v18 = vpack.c.bf16 %v8345_v49, %v8345_v49 }
 0x715   :  { %v4228_v34 = vpack.c.bf16 %v4226_v5, %v4226_v5  ;;  %4213 = vst.msk [vmem:[#allocation3 + $0x28] sm:$0xff] %vm129_vm0, %v4193_v55  ;;  %v6496_v49 = vld [vmem:[%s8602_s9 + $0x8] sm:$0xff]   ;;  %v6498_v5 = vld [vmem:[%s8602_s9 + $0x18] sm:$0xff]   ;;  %v6499_v55 = vld [vmem:[%s8602_s9 + $0x20] sm:$0xff]  }
 0x717   :  { %5482 = vmatprep.mubr.msk.bf16.mxu1 %vm129_vm0, %v4228_v34  ;;  %v8352_v40 = vpop.f32.mrb[62].mxu1  ;;  %v6500_v34 = vld [vmem:[%s8602_s9 + $0x28] sm:$0xff]  }
 0x718   :  { %4345 = vmatmul.mubr.bf16.vlgmr.msra.gmra.mrb[68].mxu1 %v4227_v45  ;;  %v4354_v44 = vld [vmem:[#allocation3 + $0x18] sm:$0xff]  ;;  %v4199_v63 = vpop.f32.mrb[63].mxu1  ;;  %v4613_v37 = vpack.c.bf16 %v8352_v40, %v8352_v40 }
 0x719   :  { %4442 = vmatpush1.bf16.msra.mxu1 %v6455_v10  ;;  %v4356_v3 = vpack.c.bf16 %v4354_v44, %v4354_v44  ;;  %4215 = vst.msk [vmem:[#allocation3 + $0x38] sm:$0xff] %vm129_vm0, %v4199_v63  ;;  %v6501_v10 = vld [vmem:[%s8602_s9 + $0x30] sm:$0xff]   ;;  %v6502_v45 = vld [vmem:[%s8602_s9 + $0x38] ss:$0 sps:$4 sm:$0xff]   ;;  %v6503_v44 = vld [vmem:[%s8603_s11] sm:$0xff]  }
 0x71a   :  { %4443 = vmatprep.subr.bf16.mxu1 %v8662_v9  ;;  %v4943_v40 = vsel %vm2082_vm2, %v6502_v45, 0  ;;  %5663 = vmatpush3.bf16.msra.mxu0 %v6503_v44  ;;  %v6504_v63 = vld [vmem:[%s8603_s11 + $0x8] sm:$0xff]  }
 0x71b   :  { %5513 = vmatprep.mubr.msk.bf16.mxu1 %vm129_vm0, %v4356_v3  ;;  %v8375_v19 = vpop.f32.mrb[64].mxu1  ;;  %5664 = vmatprep.subr.bf16.mxu0 %v6515_v36  ;;  %v6506_v3 = vld [vmem:[%s8603_s11 + $0x18] sm:$0xff]  }
 0x71c   :  { %v4205_v8 = vpop.f32.mrb[65].mxu1  ;;  %v4483_v58 = vld [vmem:[#allocation3 + $0x28] sm:$0xff]  ;;  %v4742_v12 = vpack.c.bf16 %v8375_v19, %v8375_v19 }
 0x71d   :  { %4444 = vmatpush1.bf16.msra.mxu1 %v6456_v39  ;;  %4217 = vst.msk [vmem:[#allocation3 + $0x48] sm:$0xff] %vm129_vm0, %v4205_v8  ;;  %v4485_v56 = vpack.c.bf16 %v4483_v58, %v4483_v58  ;;  %v6505_v39 = vld [vmem:[%s8603_s11 + $0x10] sm:$0xff]  }
 0x71e   :  { %4445 = vmatprep.subr.bf16.mxu1 %v8662_v9  ;;  %5665 = vmatpush3.bf16.msra.mxu0 %v6504_v63 }
 0x71f   :  { %5666 = vmatprep.subr.bf16.mxu0 %v6515_v36 }
 0x720   :  { %v4612_v35 = vld [vmem:[#allocation3 + $0x38] sm:$0xff] }
 0x721   :  { %4446 = vmatpush1.bf16.msra.mxu1 %v6457_v25  ;;  %v4614_v17 = vpack.c.bf16 %v4612_v35, %v4612_v35  ;;  %v6507_v25 = vld [vmem:[%s8603_s11 + $0x20] sm:$0xff]  }
 0x722   :  { %4447 = vmatprep.subr.bf16.mxu1 %v8662_v9  ;;  %5667 = vmatpush3.bf16.msra.mxu0 %v6505_v39 }
 0x723   :  { %5668 = vmatprep.subr.bf16.mxu0 %v6515_v36 }
 0x724   :  { %v4741_v24 = vld [vmem:[#allocation3 + $0x48] sm:$0xff] }
 0x725   :  { %4448 = vmatpush1.bf16.msra.mxu1 %v6458_v30  ;;  %v4743_v22 = vpack.c.bf16 %v4741_v24, %v4741_v24  ;;  %v6508_v30 = vld [vmem:[%s8603_s11 + $0x28] ss:$0 sps:$4 sm:$0x33]  }
 0x726   :  { %4449 = vmatprep.subr.bf16.mxu1 %v8662_v9  ;;  %5669 = vmatpush3.bf16.msra.mxu0 %v6506_v3 }
 0x727   :  { %5670 = vmatprep.subr.bf16.mxu0 %v6515_v36 }
 0x729   :  { %4450 = vmatpush1.bf16.msra.mxu1 %v6459_v38  ;;  %v5044_v38 = vsel %vm5042_vm12, %v6508_v30, 0 }
 0x72a   :  { %4451 = vmatprep.subr.bf16.mxu1 %v8662_v9  ;;  %5671 = vmatpush3.bf16.msra.mxu0 %v6507_v25 }
 0x72b   :  { %5672 = vmatprep.subr.bf16.mxu0 %v6515_v36 }
 0x72d   :  { %4452 = vmatpush1.bf16.msra.mxu1 %v6460_v15  ;;  %v5471_v15 = vld [vmem:[%s8604_s8] ss:$0 sm:$0xff] }
 0x72e   :  { %4453 = vmatprep.subr.bf16.mxu1 %v8662_v9  ;;  %5673 = vmatpush3.bf16.msra.mxu0 %v5044_v38 }
 0x731   :  { %4454 = vmatpush1.bf16.msra.mxu1 %v6461_v21 }
 0x732   :  { %4455 = vmatprep.subr.bf16.mxu1 %v8662_v9 }
 0x735   :  { %4456 = vmatpush1.bf16.msra.mxu1 %v6462_v52 }
 0x736   :  { %4457 = vmatprep.subr.bf16.mxu1 %v8662_v9 }
 0x739   :  { %4458 = vmatpush1.bf16.msra.mxu1 %v6463_v31 }
 0x73a   :  { %4459 = vmatprep.subr.bf16.mxu1 %v8662_v9 }
 0x73d   :  { %4460 = vmatpush1.bf16.msra.mxu1 %v6464_v27 }
 0x73e   :  { %4570 = vmatprep.subr.bf16.mxu1 %v8662_v9 }
 0x740   :  { %4474 = vmatmul.mubr.bf16.vlgmr.msra.gmra.mrb[68].mxu1 %v4355_v0 }
 0x741   :  { %4571 = vmatpush1.bf16.msra.mxu1 %v6465_v62  ;;  %5544 = vmatprep.mubr.msk.bf16.mxu1 %vm129_vm0, %v4485_v56  ;;  %v5607_v62 = vld [vmem:[%s8605_s10] ss:$0 sm:$0xff] }
 0x742   :  { %4572 = vmatprep.subr.bf16.mxu1 %v8662_v9 }
 0x745   :  { %4573 = vmatpush1.bf16.msra.mxu1 %v6466_v2 }
 0x746   :  { %4574 = vmatprep.subr.bf16.mxu1 %v8662_v9 }
 0x749   :  { %4575 = vmatpush1.bf16.msra.mxu1 %v6467_v28 }
 0x74a   :  { %4576 = vmatprep.subr.bf16.mxu1 %v8662_v9 }
 0x74d   :  { %4577 = vmatpush1.bf16.msra.mxu1 %v6468_v59 }
 0x74e   :  { %4578 = vmatprep.subr.bf16.mxu1 %v8662_v9 }
 0x751   :  { %4579 = vmatpush1.bf16.msra.mxu1 %v6469_v14 }
 0x752   :  { %4580 = vmatprep.subr.bf16.mxu1 %v8662_v9 }
 0x755   :  { %4581 = vmatpush1.bf16.msra.mxu1 %v6470_v50  ;;  %v5617_v50 = vld [vmem:[%s8606_s12] ss:$0 sm:$0xff] }
 0x756   :  { %4582 = vmatprep.subr.bf16.mxu1 %v8662_v9 }
 0x759   :  { %4583 = vmatpush1.bf16.msra.mxu1 %v6471_v48 }
 0x75a   :  { %4584 = vmatprep.subr.bf16.mxu1 %v8662_v9 }
 0x75d   :  { %4585 = vmatpush1.bf16.msra.mxu1 %v6472_v13 }
 0x75e   :  { %4586 = vmatprep.subr.bf16.mxu1 %v8662_v9 }
 0x761   :  { %4587 = vmatpush1.bf16.msra.mxu1 %v6473_v1 }
 0x762   :  { %4588 = vmatprep.subr.bf16.mxu1 %v8662_v9 }
 0x765   :  { %4589 = vmatpush1.bf16.msra.mxu1 %v6474_v53 }
 0x766   :  { %4699 = vmatprep.subr.bf16.mxu1 %v8662_v9 }
 0x768   :  { %4603 = vmatmul.mubr.bf16.vlgmr.msra.gmra.mrb[68].mxu1 %v4484_v18 }
 0x769   :  { %4700 = vmatpush1.bf16.msra.mxu1 %v6475_v54  ;;  %5575 = vmatprep.mubr.msk.bf16.mxu1 %vm129_vm0, %v4614_v17 }
 0x76a   :  { %4701 = vmatprep.subr.bf16.mxu1 %v8662_v9 }
 0x76d   :  { %4702 = vmatpush1.bf16.msra.mxu1 %v6476_v47 }
 0x76e   :  { %4703 = vmatprep.subr.bf16.mxu1 %v8662_v9 }
 0x771   :  { %4704 = vmatpush1.bf16.msra.mxu1 %v6477_v57 }
 0x772   :  { %4705 = vmatprep.subr.bf16.mxu1 %v8662_v9 }
 0x775   :  { %4706 = vmatpush1.bf16.msra.mxu1 %v6478_v46 }
 0x776   :  { %4707 = vmatprep.subr.bf16.mxu1 %v8662_v9 }
 0x779   :  { %4708 = vmatpush1.bf16.msra.mxu1 %v6479_v43 }
 0x77a   :  { %4709 = vmatprep.subr.bf16.mxu1 %v8662_v9 }
 0x77d   :  { %4710 = vmatpush1.bf16.msra.mxu1 %v6480_v7 }
 0x77e   :  { %4711 = vmatprep.subr.bf16.mxu1 %v8662_v9 }
 0x781   :  { %4712 = vmatpush1.bf16.msra.mxu1 %v6481_v33 }
 0x782   :  { %4713 = vmatprep.subr.bf16.mxu1 %v8662_v9 }
 0x785   :  { %4714 = vmatpush1.bf16.msra.mxu1 %v6482_v20 }
 0x786   :  { %4715 = vmatprep.subr.bf16.mxu1 %v8662_v9 }
 0x789   :  { %4716 = vmatpush1.bf16.msra.mxu1 %v6483_v60 }
 0x78a   :  { %4717 = vmatprep.subr.bf16.mxu1 %v8662_v9 }
 0x78d   :  { %4718 = vmatpush1.bf16.msra.mxu1 %v6484_v32 }
 0x78e   :  { %4828 = vmatprep.subr.bf16.mxu1 %v8662_v9 }
 0x790   :  { %4732 = vmatmul.mubr.bf16.vlgmr.msra.gmra.mrb[68].mxu1 %v4613_v37 }
 0x791   :  { %4829 = vmatpush1.bf16.msra.mxu1 %v6485_v29  ;;  %5606 = vmatprep.mubr.msk.bf16.mxu1 %vm129_vm0, %v4743_v22 }
 0x792   :  { %4830 = vmatprep.subr.bf16.mxu1 %v8662_v9 }
 0x795   :  { %4831 = vmatpush1.bf16.msra.mxu1 %v6486_v23 }
 0x796   :  { %4832 = vmatprep.subr.bf16.mxu1 %v8662_v9 }
 0x799   :  { %4833 = vmatpush1.bf16.msra.mxu1 %v6487_v42 }
 0x79a   :  { %4834 = vmatprep.subr.bf16.mxu1 %v8662_v9 }
 0x79d   :  { %4835 = vmatpush1.bf16.msra.mxu1 %v6488_v41 }
 0x79e   :  { %4836 = vmatprep.subr.bf16.mxu1 %v8662_v9 }
 0x7a1   :  { %4837 = vmatpush1.bf16.msra.mxu1 %v6489_v6 }
 0x7a2   :  { %4838 = vmatprep.subr.bf16.mxu1 %v8662_v9 }
 0x7a5   :  { %4839 = vmatpush1.bf16.msra.mxu1 %v6490_v26 }
 0x7a6   :  { %4840 = vmatprep.subr.bf16.mxu1 %v8662_v9 }
 0x7a9   :  { %4841 = vmatpush1.bf16.msra.mxu1 %v6491_v11 }
 0x7aa   :  { %4842 = vmatprep.subr.bf16.mxu1 %v8662_v9 }
 0x7ad   :  { %4843 = vmatpush1.bf16.msra.mxu1 %v6492_v51 }
 0x7ae   :  { %4844 = vmatprep.subr.bf16.mxu1 %v8662_v9 }
 0x7b1   :  { %4845 = vmatpush1.bf16.msra.mxu1 %v6493_v4 }
 0x7b2   :  { %4846 = vmatprep.subr.bf16.mxu1 %v8662_v9  ;;  %v6497_v9 = vld [vmem:[%s8602_s9 + $0x10] sm:$0xff]  }
 0x7b5   :  { %4847 = vmatpush1.bf16.msra.mxu1 %v6494_v61 }
 0x7b6   :  { %5642 = vmatprep.subr.bf16.mxu1 %v6515_v36 }
 0x7b8   :  { %4861 = vmatmul.mubr.bf16.vlgmr.msra.gmra.mrb[68].mxu1 %v4742_v12 }
 0x7b9   :  { %5643 = vmatpush3.bf16.msra.mxu1 %v6495_v16  ;;  %5658 = vmatprep.mubr.msk.bf16.mxu1 %vm6516_vm11, %v6515_v36 }
 0x7ba   :  { %5644 = vmatprep.subr.bf16.mxu1 %v6515_v36 }
 0x7bd   :  { %5645 = vmatpush3.bf16.msra.mxu1 %v6496_v49 }
 0x7be   :  { %5646 = vmatprep.subr.bf16.mxu1 %v6515_v36 }
 0x7c1   :  { %5647 = vmatpush3.bf16.msra.mxu1 %v6497_v9 }
 0x7c2   :  { %5648 = vmatprep.subr.bf16.mxu1 %v6515_v36 }
 0x7c5   :  { %5649 = vmatpush3.bf16.msra.mxu1 %v6498_v5 }
 0x7c6   :  { %5650 = vmatprep.subr.bf16.mxu1 %v6515_v36 }
 0x7c9   :  { %5651 = vmatpush3.bf16.msra.mxu1 %v6499_v55 }
 0x7ca   :  { %5652 = vmatprep.subr.bf16.mxu1 %v6515_v36 }
 0x7cd   :  { %5653 = vmatpush3.bf16.msra.mxu1 %v6500_v34 }
 0x7ce   :  { %5654 = vmatprep.subr.bf16.mxu1 %v6515_v36 }
 0x7d1   :  { %5655 = vmatpush3.bf16.msra.mxu1 %v6501_v10 }
 0x7d2   :  { %5656 = vmatprep.subr.bf16.mxu1 %v6515_v36 }
 0x7d5   :  { %5657 = vmatpush3.bf16.msra.mxu1 %v4943_v40 }
 0x88b   :  { %v4862_v19 = vpop.f32.mrb[68].mxu1 }
 0x88c   :  { %v5866_v8 = vadd.f32 %v5471_v15, %v4862_v19  ;;  %v4864_v21 = vpop.f32.mrb[69].mxu1 }
 0x88d   :  { %v4865_v52 = vpop.f32.mrb[70].mxu1 }
 0x88e   :  { %v4869_v31 = vmax.f32 %v5866_v8, 0.0  ;;  %v4866_v27 = vpop.f32.mrb[71].mxu1 }
 0x890   :  { %v4870_v58 = vpack.c.bf16 %v4869_v31, %v4869_v31 }
 0x892   :  { %5659 = vmatmul.mubr.msk.bf16.vlgmr.msra.gmra.mrb[72].mxu1 %vm4938_vm13, %v4870_v58 }
 0x965   :  { %v4979_v36 = vpop.f32.mrb[72].mxu1 }
 0x966   :  { %v4980_v56 = vadd.f32 %v5607_v62, %v4979_v36  ;;  %v5660_v0 = vpop.f32.mrb[73].mxu1 }
 0x967   :  { %v4982_v2 = vpop.f32.mrb[74].mxu1 }
 0x968   :  { %v4985_v28 = vmax.f32 %v4980_v56, 0.0  ;;  %v5661_v59 = vpop.f32.mrb[75].mxu1 }
 0x96a   :  { %v4986_v14 = vpack.c.bf16 %v4985_v28, %v4985_v28 }
 0x96c   :  { %5675 = vmatmul.mubr.msk.bf16.vlgmr.msra.gmra.mrb[64].mxu0 %vm5038_vm14, %v4986_v14 }
 0xa3f   :  { %v5080_v48 = vpop.f32.mrb[64].mxu0 }
 0xa40   :  { %v5081_v13 = vadd.f32 %v5617_v50, %v5080_v48  ;;  %v5676_v1 = vpop.f32.mrb[65].mxu0 }
 0xa41   :  { %v5083_v53 = vpop.f32.mrb[66].mxu0 }
 0xa42   :  { %v5625_v35 = vmul.f32 -1.442695, %v5081_v13  ;;  %v5677_v54 = vpop.f32.mrb[67].mxu0 }
 0xa44   :  { %6509 = vpow2.f32 %v5625_v35 }
 0xa4e   :  { %v6510_v17 = vpop.eup %6509 }
 0xa4f   :  { %v5089_v18 = vadd.f32 1.0, %v6510_v17 }
 0xa51   :  { %6511 = vrcp.f32 %v5089_v18 }
 0xa5b   :  { %v6512_v47 = vpop.eup %6511 }
 0xa5c   :  { %5093 = vst.msk [vmem:[%s8607_s13] sm:$0xff] %vm5092_vm15, %v6512_v47 }

</bundles_post_ra>
